<compile_context>
chip_gen: v7x
topology: tpu7x:2x2x1
jax: 0.10.0
libtpu: 0.0.40
codegen_flags: <defaults>
</compile_context>

<pallas_src>
import functools
import math

import jax
import jax.numpy as jnp
from jax.experimental import pallas as pl
from jax.experimental.pallas import tpu as pltpu


def _round_up(a: int, b: int) -> int:
    return (a + b - 1) // b * b


def seq_cnn_kernel(x_ref, w_ref, cb_ref, fcw_ref, fcb_ref, out_ref,
                   conv_acc, out_col, *, padding, sub_b):
    # x_ref   : (TB, L, F)        input tile (time on sublanes, features on lanes)
    # w_ref   : (K, F, C)         per-tap conv weights (W_k[f, c] = conv_w[c, f, k])
    # cb_ref  : (1, C)            conv bias (f32)
    # fcw_ref : (L_out-1, C)      fc weights scattered onto even conv rows (odd = 0)
    # fcb_ref : (1, 1) SMEM       fc bias scalar
    # out_ref : (1, TB)           lane-dense per-step output
    # conv_acc: VMEM (SB, L_out, C) f32  conv accumulator (one sub-batch at a time)
    # out_col : VMEM (TB, 1) f32  per-batch fc results, transposed once at the end
    tb, L, F = x_ref.shape
    K, _, C = w_ref.shape
    _, l_out, _ = conv_acc.shape
    n_sub = tb // sub_b
    head = padding                    # conv rows whose window is entirely left pad
    tail = l_out - padding - L        # conv rows whose window is entirely right pad

    # Hoist the small loop-invariant operands into registers once.
    w_taps = [w_ref[k] for k in range(K)]      # K x (F, C)
    cbias = cb_ref[...]                        # (1, C)
    fcw = fcw_ref[...]                         # (L_out-1, C)

    @pl.loop(0, n_sub, unroll=True)
    def _sub(i):
        base = pl.multiple_of(i * sub_b, sub_b)
        # Flat (SB*L, F) matmul LHS straight from the input block - no padded
        # staging copy of x anywhere.
        x_flat = x_ref[pl.ds(base, sub_b), :, :].reshape(sub_b * L, F)

        # Conv1d as K shift-accumulated MXU matmuls (bf16-in / f32-acc path).
        # Tap k contributes to conv rows [padding - k, padding - k + L).
        tap0 = jnp.dot(x_flat, w_taps[0],
                       preferred_element_type=jnp.float32).reshape(sub_b, L, C)
        conv_acc[:, pl.ds(padding, L), :] = tap0
        if head > 0:      # pad-only rows: zero once (bias is added after pooling)
            conv_acc[:, pl.ds(0, head), :] = jnp.zeros(
                (sub_b, head, C), jnp.float32)
        if tail > 0:
            conv_acc[:, pl.ds(padding + L, tail), :] = jnp.zeros(
                (sub_b, tail, C), jnp.float32)
        for k in range(1, K):
            tap = jnp.dot(x_flat, w_taps[k],
                          preferred_element_type=jnp.float32).reshape(sub_b, L, C)
            conv_acc[:, pl.ds(padding - k, L), :] += tap

        # MaxPool1d(2) + bias + ReLU.  Pair conv row t with t+1 by reading the
        # accumulator twice with a one-row sublane offset (no roll / concat
        # materialization).  max, +bias and ReLU commute, so the pooled value
        # max(relu(a+b), relu(c+b)) == relu(max(a, c) + b) and the VPU tail
        # runs once over L_out-1 rows.  Pairs never wrap or straddle a batch
        # element by construction.
        cur = conv_acc[:, pl.ds(0, l_out - 1), :]
        nxt = conv_acc[:, pl.ds(1, l_out - 1), :]
        pooled = jnp.maximum(jnp.maximum(cur, nxt) + cbias, 0.0)
        # Flatten + Linear folded into a weighted reduction.  fcw has nonzero
        # weight only on even conv rows t < 2*L_pool, so the unused odd-row
        # pairs drop out here without any strided compaction.
        contrib = pooled * fcw
        r = jnp.sum(jnp.sum(contrib, axis=1), axis=1, keepdims=True)   # (SB, 1)
        out_col[pl.ds(base, sub_b), :] = r

    # Lane-dense (1, TB) output row; fc bias is an SMEM scalar.
    out_ref[...] = jnp.transpose(out_col[...]) + fcb_ref[0, 0]


def sequence_cnn_forward(x, conv_w, conv_b, fc_w, fc_b, *,
                         padding=5, block_b=128, sub_b=16,
                         compute_dtype=jnp.bfloat16):
    """x: (B, L, F).  conv_w: (C, F, K) torch Conv1d layout.
    fc_w: (1, C*L_pool), fc_b: (1,).  Returns (B, 1) f32."""
    B, L, F = x.shape
    C, F2, K = conv_w.shape
    assert F2 == F
    # Shift-accumulated conv assumes every tap start (padding - k) is >= 0 and
    # every tap end fits in L_out; both hold iff padding >= K - 1 (true for the
    # module: padding=5, K=3).
    assert padding >= K - 1
    L_out = L + 2 * padding - K + 1
    L_pool = L_out // 2
    assert 2 * L_pool <= L_out   # pooled pairs (2l, 2l+1) fit in the first L_out-1 rows

    # ---- batch tiling -------------------------------------------------------
    sub_b = max(1, min(sub_b, block_b))
    if B <= block_b:
        tb = _round_up(B, sub_b)            # single grid step: block == full lane extent
        # TODO(synk): on v7x (2 TCs) a single grid step leaves one core idle;
        # splitting small batches would force a lane-sparse (tb, 1) output or
        # CORE_PARALLEL, not worth it below ~2 full 128-lane tiles.
    else:
        # multi-step grid: the (1, tb) output block must be 128-lane aligned.
        tb = _round_up(block_b, math.lcm(128, sub_b))
    b_pad = _round_up(B, tb)
    grid = (b_pad // tb,)

    # ---- operand preparation (wrapper side, cheap) --------------------------
    xin = x.astype(compute_dtype)           # bf16 by default: halves HBM read traffic
    if b_pad != B:
        xin = jnp.pad(xin, ((0, b_pad - B), (0, 0), (0, 0)))

    # torch Conv1d weight (C, F, K) -> per-tap layout (K, F, C).
    w3 = jnp.transpose(conv_w, (2, 1, 0)).astype(compute_dtype)
    cb = conv_b.reshape(1, C).astype(jnp.float32)
    # torch fc weight (1, C*L_pool) flattened channel-major (c*L_pool + l):
    # reshape to (L_pool, C) and scatter onto the even rows of (L_out-1, C).
    fcw_lc = fc_w.reshape(C, L_pool).T.astype(jnp.float32)
    fcw_full = jnp.zeros((L_out - 1, C), jnp.float32).at[0:2 * L_pool:2, :].set(fcw_lc)
    fcb = fc_b.reshape(1, 1).astype(jnp.float32)

    kernel = functools.partial(seq_cnn_kernel, padding=padding, sub_b=sub_b)

    # ---- VMEM budget (explicit scoped limit, review item) -------------------
    itemsize = jnp.dtype(compute_dtype).itemsize
    est = (2 * tb * L * F * itemsize                      # double-buffered input tile
           + K * F * 128 * itemsize                       # conv weights (lane-padded)
           + 2 * _round_up(L_out, 8) * 128 * 4            # conv bias + fc weights
           + sub_b * _round_up(L_out, 8) * 128 * 4        # conv accumulator scratch
           + tb * 128 * 4                                 # out_col scratch
           + 2 * _round_up(tb, 128) * 4)                  # double-buffered output row
    vmem_limit = int(min(max(2 * est, 32 << 20), 100 << 20))

    out = pl.pallas_call(
        kernel,
        out_shape=jax.ShapeDtypeStruct((1, b_pad), jnp.float32),
        grid_spec=pltpu.PrefetchScalarGridSpec(
            num_scalar_prefetch=0,
            grid=grid,
            in_specs=[
                pl.BlockSpec((tb, L, F), lambda i: (i, 0, 0)),        # x batch tile
                pl.BlockSpec((K, F, C), lambda i: (0, 0, 0)),         # per-tap conv weights
                pl.BlockSpec((1, C), lambda i: (0, 0)),               # conv bias
                pl.BlockSpec((L_out - 1, C), lambda i: (0, 0)),       # scattered fc weights
                pl.BlockSpec(memory_space=pltpu.MemorySpace.SMEM),    # fc bias scalar
            ],
            out_specs=pl.BlockSpec((1, tb), lambda i: (0, i)),
            scratch_shapes=[
                pltpu.VMEM((sub_b, L_out, C), jnp.float32),           # conv accumulator
                pltpu.VMEM((tb, 1), jnp.float32),                     # per-batch results
            ],
        ),
        compiler_params=pltpu.CompilerParams(
            dimension_semantics=("parallel",),
            vmem_limit_bytes=vmem_limit,
        ),
    )(xin, w3, cb, fcw_full, fcb)

    return out[0, :B].reshape(B, 1)


def sequence_cnn_reference(x, conv_w, conv_b, fc_w, fc_b, padding=5):
    """Pure-JAX reference mirroring the PyTorch forward (for validation)."""
    B, L, F = x.shape
    C, _, K = conv_w.shape
    L_out = L + 2 * padding - K + 1
    L_pool = L_out // 2
    xp = jnp.pad(jnp.transpose(x, (0, 2, 1)), ((0, 0), (0, 0), (padding, padding)))
    conv = jnp.stack(
        [jnp.einsum("cfk,bfk->bc", conv_w, xp[:, :, t:t + K]) for t in range(L_out)],
        axis=-1,
    ) + conv_b[None, :, None]
    relu = jnp.maximum(conv, 0.0)
    pooled = jnp.max(relu[:, :, :2 * L_pool].reshape(B, C, L_pool, 2), axis=-1)
    flat = pooled.reshape(B, -1)
    return flat @ fc_w.T + fc_b[None, :]


if __name__ == "__main__":
    # Small, module-consistent shapes (scaled down from F=768, L=1024 defaults).
    input_features = 32     # F
    sequence_length = 16    # L
    kernel_size = 3         # K
    num_filters = 15        # C
    padding = 5
    L_out = sequence_length + 2 * padding - kernel_size + 1   # 24
    L_pool = L_out // 2                                        # 12
    flattened = num_filters * L_pool                           # 180

    key = jax.random.PRNGKey(0)
    kx, kw, kb, kfw, kfb, kx2 = jax.random.split(key, 6)

    conv_w = 0.1 * jax.random.normal(
        kw, (num_filters, input_features, kernel_size), jnp.float32)
    conv_b = 0.1 * jax.random.normal(kb, (num_filters,), jnp.float32)
    fc_w = 0.1 * jax.random.normal(kfw, (1, flattened), jnp.float32)
    fc_b = 0.1 * jax.random.normal(kfb, (1,), jnp.float32)

    # 1) Small batch, explicit f32 compute: single grid step, tight tolerance.
    B1 = 20
    x1 = jax.random.normal(kx, (B1, sequence_length, input_features), jnp.float32)
    out1 = jax.block_until_ready(
        sequence_cnn_forward(x1, conv_w, conv_b, fc_w, fc_b, padding=padding,
                             compute_dtype=jnp.float32))
    ref1 = sequence_cnn_reference(x1, conv_w, conv_b, fc_w, fc_b, padding=padding)
    assert out1.shape == (B1, 1)
    assert jnp.allclose(out1, ref1, atol=1e-4, rtol=1e-4), (out1, ref1)

    # 2) Default path (bf16 matmul inputs, f32 accumulation) -> looser tolerance.
    out2 = jax.block_until_ready(
        sequence_cnn_forward(x1, conv_w, conv_b, fc_w, fc_b, padding=padding))
    assert jnp.allclose(out2, ref1, atol=1e-1, rtol=1e-1)

    # 3) Larger batch: multi-step grid with lane-dense 128-wide output blocks, f32.
    B2 = 256
    x2 = jax.random.normal(kx2, (B2, sequence_length, input_features), jnp.float32)
    out3 = jax.block_until_ready(
        sequence_cnn_forward(x2, conv_w, conv_b, fc_w, fc_b, padding=padding,
                             block_b=128, compute_dtype=jnp.float32))
    ref3 = sequence_cnn_reference(x2, conv_w, conv_b, fc_w, fc_b, padding=padding)
    assert out3.shape == (B2, 1)
    assert jnp.allclose(out3, ref3, atol=1e-4, rtol=1e-4)

    print("KERNEL_OK")
</pallas_src>

<mosaic_0001>
module attributes {stable_mosaic.version = 11 : i64} {
  func.func @seq_cnn_kernel(%arg0: i32, %arg1: memref<32x16x32xf32, #tpu.memory_space<vmem>>, %arg2: memref<3x32x15xf32, #tpu.memory_space<vmem>>, %arg3: memref<1x15xf32, #tpu.memory_space<vmem>>, %arg4: memref<23x15xf32, #tpu.memory_space<vmem>>, %arg5: memref<1x1xf32, #tpu.memory_space<smem>>, %arg6: memref<1x32xf32, #tpu.memory_space<vmem>>, %arg7: memref<16x24x15xf32, #tpu.memory_space<vmem>>, %arg8: memref<32x1xf32, #tpu.memory_space<vmem>>) attributes {dimension_semantics = [#tpu.dimension_semantics<parallel>], iteration_bounds = array<i64: 1>, scalar_prefetch = 0 : i64, scratch_operands = 2 : i64, tpu.core_type = #tpu.core_type<tc>, window_params = [{transform_indices = @transform_0, window_bounds = array<i64: 32, 16, 32>}, {pipeline_mode = #tpu.pipeline_mode<synchronous>, transform_indices = @transform_1, window_bounds = array<i64: 3, 32, 15>}, {pipeline_mode = #tpu.pipeline_mode<synchronous>, transform_indices = @transform_2, window_bounds = array<i64: 1, 15>}, {pipeline_mode = #tpu.pipeline_mode<synchronous>, transform_indices = @transform_3, window_bounds = array<i64: 23, 15>}, {transform_indices = @transform_4, window_bounds = array<i64: 1, 1>}, {transform_indices = @transform_5, window_bounds = array<i64: 1, 32>}]} {
    %c0 = arith.constant 0 : index
    %c0_0 = arith.constant 0 : index
    %c0_1 = arith.constant 0 : index
    %0 = vector.load %arg2[%c0, %c0_0, %c0_1] : memref<3x32x15xf32, #tpu.memory_space<vmem>>, vector<1x32x15xf32>
    %1 = vector.shape_cast %0 : vector<1x32x15xf32> to vector<32x15xf32>
    %c1 = arith.constant 1 : index
    %c0_2 = arith.constant 0 : index
    %c0_3 = arith.constant 0 : index
    %2 = vector.load %arg2[%c1, %c0_2, %c0_3] : memref<3x32x15xf32, #tpu.memory_space<vmem>>, vector<1x32x15xf32>
    %3 = vector.shape_cast %2 : vector<1x32x15xf32> to vector<32x15xf32>
    %c2 = arith.constant 2 : index
    %c0_4 = arith.constant 0 : index
    %c0_5 = arith.constant 0 : index
    %4 = vector.load %arg2[%c2, %c0_4, %c0_5] : memref<3x32x15xf32, #tpu.memory_space<vmem>>, vector<1x32x15xf32>
    %5 = vector.shape_cast %4 : vector<1x32x15xf32> to vector<32x15xf32>
    %c0_6 = arith.constant 0 : index
    %c0_7 = arith.constant 0 : index
    %6 = vector.load %arg3[%c0_6, %c0_7] : memref<1x15xf32, #tpu.memory_space<vmem>>, vector<1x15xf32>
    %c0_8 = arith.constant 0 : index
    %c0_9 = arith.constant 0 : index
    %7 = vector.load %arg4[%c0_8, %c0_9] : memref<23x15xf32, #tpu.memory_space<vmem>>, vector<23x15xf32>
    %c0_i32 = arith.constant 0 : i32
    %c1_i32 = arith.constant 1 : i32
    %8 = arith.muli %c0_i32, %c1_i32 : i32
    %c0_i32_10 = arith.constant 0 : i32
    %9 = arith.addi %c0_i32_10, %8 : i32
    %c16_i32 = arith.constant 16 : i32
    %10 = arith.muli %9, %c16_i32 : i32
    %11 = tpu.assume_multiple %10, 16 : i32
    %12 = arith.index_cast %11 : i32 to index
    %c0_11 = arith.constant 0 : index
    %c0_12 = arith.constant 0 : index
    %13 = vector.load %arg1[%12, %c0_11, %c0_12] : memref<32x16x32xf32, #tpu.memory_space<vmem>>, vector<16x16x32xf32>
    %14 = vector.shape_cast %13 : vector<16x16x32xf32> to vector<256x32xf32>
    %cst = arith.constant dense<0.000000e+00> : vector<256x15xf32>
    %15 = tpu.matmul %14, %1, %cst {dimension_numbers = #tpu.dot_dimension_numbers<[1], [0], [0], [1], [0, 0, 1, 1], [], []>} : vector<256x32xf32>, vector<32x15xf32>, vector<256x15xf32> -> vector<256x15xf32>
    %16 = vector.shape_cast %15 : vector<256x15xf32> to vector<16x16x15xf32>
    %c0_13 = arith.constant 0 : index
    %c5 = arith.constant 5 : index
    %c0_14 = arith.constant 0 : index
    %17 = vector.load %arg7[%c0_13, %c5, %c0_14] : memref<16x24x15xf32, #tpu.memory_space<vmem>>, vector<16x16x15xf32>
    tpu.vector_store %arg7[%c0_13, %c5, %c0_14], %16 {strides = array<i32>} : memref<16x24x15xf32, #tpu.memory_space<vmem>>, vector<16x16x15xf32>,
    %cst_15 = arith.constant 0.000000e+00 : f32
    %18 = vector.broadcast %cst_15 : f32 to vector<16x5x15xf32>
    %c0_16 = arith.constant 0 : index
    %c0_17 = arith.constant 0 : index
    %c0_18 = arith.constant 0 : index
    %19 = vector.load %arg7[%c0_16, %c0_17, %c0_18] : memref<16x24x15xf32, #tpu.memory_space<vmem>>, vector<16x5x15xf32>
    tpu.vector_store %arg7[%c0_16, %c0_17, %c0_18], %18 {strides = array<i32>} : memref<16x24x15xf32, #tpu.memory_space<vmem>>, vector<16x5x15xf32>,
    %cst_19 = arith.constant 0.000000e+00 : f32
    %20 = vector.broadcast %cst_19 : f32 to vector<16x3x15xf32>
    %c0_20 = arith.constant 0 : index
    %c21 = arith.constant 21 : index
    %c0_21 = arith.constant 0 : index
    %21 = vector.load %arg7[%c0_20, %c21, %c0_21] : memref<16x24x15xf32, #tpu.memory_space<vmem>>, vector<16x3x15xf32>
    tpu.vector_store %arg7[%c0_20, %c21, %c0_21], %20 {strides = array<i32>} : memref<16x24x15xf32, #tpu.memory_space<vmem>>, vector<16x3x15xf32>,
    %cst_22 = arith.constant dense<0.000000e+00> : vector<256x15xf32>
    %22 = tpu.matmul %14, %3, %cst_22 {dimension_numbers = #tpu.dot_dimension_numbers<[1], [0], [0], [1], [0, 0, 1, 1], [], []>} : vector<256x32xf32>, vector<32x15xf32>, vector<256x15xf32> -> vector<256x15xf32>
    %23 = vector.shape_cast %22 : vector<256x15xf32> to vector<16x16x15xf32>
    %c0_23 = arith.constant 0 : index
    %c4 = arith.constant 4 : index
    %c0_24 = arith.constant 0 : index
    %24 = vector.load %arg7[%c0_23, %c4, %c0_24] : memref<16x24x15xf32, #tpu.memory_space<vmem>>, vector<16x16x15xf32>
    %25 = arith.addf %24, %23 : vector<16x16x15xf32>
    %c0_25 = arith.constant 0 : index
    %c4_26 = arith.constant 4 : index
    %c0_27 = arith.constant 0 : index
    %26 = vector.load %arg7[%c0_25, %c4_26, %c0_27] : memref<16x24x15xf32, #tpu.memory_space<vmem>>, vector<16x16x15xf32>
    tpu.vector_store %arg7[%c0_25, %c4_26, %c0_27], %25 {strides = array<i32>} : memref<16x24x15xf32, #tpu.memory_space<vmem>>, vector<16x16x15xf32>,
    %cst_28 = arith.constant dense<0.000000e+00> : vector<256x15xf32>
    %27 = tpu.matmul %14, %5, %cst_28 {dimension_numbers = #tpu.dot_dimension_numbers<[1], [0], [0], [1], [0, 0, 1, 1], [], []>} : vector<256x32xf32>, vector<32x15xf32>, vector<256x15xf32> -> vector<256x15xf32>
    %28 = vector.shape_cast %27 : vector<256x15xf32> to vector<16x16x15xf32>
    %c0_29 = arith.constant 0 : index
    %c3 = arith.constant 3 : index
    %c0_30 = arith.constant 0 : index
    %29 = vector.load %arg7[%c0_29, %c3, %c0_30] : memref<16x24x15xf32, #tpu.memory_space<vmem>>, vector<16x16x15xf32>
    %30 = arith.addf %29, %28 : vector<16x16x15xf32>
    %c0_31 = arith.constant 0 : index
    %c3_32 = arith.constant 3 : index
    %c0_33 = arith.constant 0 : index
    %31 = vector.load %arg7[%c0_31, %c3_32, %c0_33] : memref<16x24x15xf32, #tpu.memory_space<vmem>>, vector<16x16x15xf32>
    tpu.vector_store %arg7[%c0_31, %c3_32, %c0_33], %30 {strides = array<i32>} : memref<16x24x15xf32, #tpu.memory_space<vmem>>, vector<16x16x15xf32>,
    %c0_34 = arith.constant 0 : index
    %c0_35 = arith.constant 0 : index
    %c0_36 = arith.constant 0 : index
    %32 = vector.load %arg7[%c0_34, %c0_35, %c0_36] : memref<16x24x15xf32, #tpu.memory_space<vmem>>, vector<16x23x15xf32>
    %c0_37 = arith.constant 0 : index
    %c1_38 = arith.constant 1 : index
    %c0_39 = arith.constant 0 : index
    %33 = vector.load %arg7[%c0_37, %c1_38, %c0_39] : memref<16x24x15xf32, #tpu.memory_space<vmem>>, vector<16x23x15xf32>
    %34 = arith.maximumf %32, %33 : vector<16x23x15xf32>
    %35 = vector.shape_cast %6 : vector<1x15xf32> to vector<1x1x15xf32>
    %36 = vector.broadcast %35 : vector<1x1x15xf32> to vector<16x23x15xf32>
    %37 = arith.addf %34, %36 : vector<16x23x15xf32>
    %cst_40 = arith.constant 0.000000e+00 : f32
    %38 = vector.broadcast %cst_40 : f32 to vector<16x23x15xf32>
    %39 = arith.maximumf %37, %38 : vector<16x23x15xf32>
    %40 = vector.shape_cast %7 : vector<23x15xf32> to vector<1x23x15xf32>
    %41 = vector.broadcast %40 : vector<1x23x15xf32> to vector<16x23x15xf32>
    %42 = arith.mulf %39, %41 : vector<16x23x15xf32>
    %cst_41 = arith.constant dense<0.000000e+00> : vector<16x15xf32>
    %43 = vector.multi_reduction <add>, %42, %cst_41 [1] : vector<16x23x15xf32> to vector<16x15xf32>
    %cst_42 = arith.constant dense<0.000000e+00> : vector<16xf32>
    %44 = vector.multi_reduction <add>, %43, %cst_42 [1] : vector<16x15xf32> to vector<16xf32>
    %45 = vector.shape_cast %44 : vector<16xf32> to vector<16x1xf32>
    %46 = arith.index_cast %11 : i32 to index
    %c0_43 = arith.constant 0 : index
    %47 = vector.load %arg8[%46, %c0_43] : memref<32x1xf32, #tpu.memory_space<vmem>>, vector<16x1xf32>
    tpu.vector_store %arg8[%46, %c0_43], %45 {strides = array<i32>} : memref<32x1xf32, #tpu.memory_space<vmem>>, vector<16x1xf32>,
    %c1_i32_44 = arith.constant 1 : i32
    %c1_i32_45 = arith.constant 1 : i32
    %48 = arith.muli %c1_i32_44, %c1_i32_45 : i32
    %c0_i32_46 = arith.constant 0 : i32
    %49 = arith.addi %c0_i32_46, %48 : i32
    %c16_i32_47 = arith.constant 16 : i32
    %50 = arith.muli %49, %c16_i32_47 : i32
    %51 = tpu.assume_multiple %50, 16 : i32
    %52 = arith.index_cast %51 : i32 to index
    %c0_48 = arith.constant 0 : index
    %c0_49 = arith.constant 0 : index
    %53 = vector.load %arg1[%52, %c0_48, %c0_49] : memref<32x16x32xf32, #tpu.memory_space<vmem>>, vector<16x16x32xf32>
    %54 = vector.shape_cast %53 : vector<16x16x32xf32> to vector<256x32xf32>
    %cst_50 = arith.constant dense<0.000000e+00> : vector<256x15xf32>
    %55 = tpu.matmul %54, %1, %cst_50 {dimension_numbers = #tpu.dot_dimension_numbers<[1], [0], [0], [1], [0, 0, 1, 1], [], []>} : vector<256x32xf32>, vector<32x15xf32>, vector<256x15xf32> -> vector<256x15xf32>
    %56 = vector.shape_cast %55 : vector<256x15xf32> to vector<16x16x15xf32>
    %c0_51 = arith.constant 0 : index
    %c5_52 = arith.constant 5 : index
    %c0_53 = arith.constant 0 : index
    %57 = vector.load %arg7[%c0_51, %c5_52, %c0_53] : memref<16x24x15xf32, #tpu.memory_space<vmem>>, vector<16x16x15xf32>
    tpu.vector_store %arg7[%c0_51, %c5_52, %c0_53], %56 {strides = array<i32>} : memref<16x24x15xf32, #tpu.memory_space<vmem>>, vector<16x16x15xf32>,
    %cst_54 = arith.constant 0.000000e+00 : f32
    %58 = vector.broadcast %cst_54 : f32 to vector<16x5x15xf32>
    %c0_55 = arith.constant 0 : index
    %c0_56 = arith.constant 0 : index
    %c0_57 = arith.constant 0 : index
    %59 = vector.load %arg7[%c0_55, %c0_56, %c0_57] : memref<16x24x15xf32, #tpu.memory_space<vmem>>, vector<16x5x15xf32>
    tpu.vector_store %arg7[%c0_55, %c0_56, %c0_57], %58 {strides = array<i32>} : memref<16x24x15xf32, #tpu.memory_space<vmem>>, vector<16x5x15xf32>,
    %cst_58 = arith.constant 0.000000e+00 : f32
    %60 = vector.broadcast %cst_58 : f32 to vector<16x3x15xf32>
    %c0_59 = arith.constant 0 : index
    %c21_60 = arith.constant 21 : index
    %c0_61 = arith.constant 0 : index
    %61 = vector.load %arg7[%c0_59, %c21_60, %c0_61] : memref<16x24x15xf32, #tpu.memory_space<vmem>>, vector<16x3x15xf32>
    tpu.vector_store %arg7[%c0_59, %c21_60, %c0_61], %60 {strides = array<i32>} : memref<16x24x15xf32, #tpu.memory_space<vmem>>, vector<16x3x15xf32>,
    %cst_62 = arith.constant dense<0.000000e+00> : vector<256x15xf32>
    %62 = tpu.matmul %54, %3, %cst_62 {dimension_numbers = #tpu.dot_dimension_numbers<[1], [0], [0], [1], [0, 0, 1, 1], [], []>} : vector<256x32xf32>, vector<32x15xf32>, vector<256x15xf32> -> vector<256x15xf32>
    %63 = vector.shape_cast %62 : vector<256x15xf32> to vector<16x16x15xf32>
    %c0_63 = arith.constant 0 : index
    %c4_64 = arith.constant 4 : index
    %c0_65 = arith.constant 0 : index
    %64 = vector.load %arg7[%c0_63, %c4_64, %c0_65] : memref<16x24x15xf32, #tpu.memory_space<vmem>>, vector<16x16x15xf32>
    %65 = arith.addf %64, %63 : vector<16x16x15xf32>
    %c0_66 = arith.constant 0 : index
    %c4_67 = arith.constant 4 : index
    %c0_68 = arith.constant 0 : index
    %66 = vector.load %arg7[%c0_66, %c4_67, %c0_68] : memref<16x24x15xf32, #tpu.memory_space<vmem>>, vector<16x16x15xf32>
    tpu.vector_store %arg7[%c0_66, %c4_67, %c0_68], %65 {strides = array<i32>} : memref<16x24x15xf32, #tpu.memory_space<vmem>>, vector<16x16x15xf32>,
    %cst_69 = arith.constant dense<0.000000e+00> : vector<256x15xf32>
    %67 = tpu.matmul %54, %5, %cst_69 {dimension_numbers = #tpu.dot_dimension_numbers<[1], [0], [0], [1], [0, 0, 1, 1], [], []>} : vector<256x32xf32>, vector<32x15xf32>, vector<256x15xf32> -> vector<256x15xf32>
    %68 = vector.shape_cast %67 : vector<256x15xf32> to vector<16x16x15xf32>
    %c0_70 = arith.constant 0 : index
    %c3_71 = arith.constant 3 : index
    %c0_72 = arith.constant 0 : index
    %69 = vector.load %arg7[%c0_70, %c3_71, %c0_72] : memref<16x24x15xf32, #tpu.memory_space<vmem>>, vector<16x16x15xf32>
    %70 = arith.addf %69, %68 : vector<16x16x15xf32>
    %c0_73 = arith.constant 0 : index
    %c3_74 = arith.constant 3 : index
    %c0_75 = arith.constant 0 : index
    %71 = vector.load %arg7[%c0_73, %c3_74, %c0_75] : memref<16x24x15xf32, #tpu.memory_space<vmem>>, vector<16x16x15xf32>
    tpu.vector_store %arg7[%c0_73, %c3_74, %c0_75], %70 {strides = array<i32>} : memref<16x24x15xf32, #tpu.memory_space<vmem>>, vector<16x16x15xf32>,
    %c0_76 = arith.constant 0 : index
    %c0_77 = arith.constant 0 : index
    %c0_78 = arith.constant 0 : index
    %72 = vector.load %arg7[%c0_76, %c0_77, %c0_78] : memref<16x24x15xf32, #tpu.memory_space<vmem>>, vector<16x23x15xf32>
    %c0_79 = arith.constant 0 : index
    %c1_80 = arith.constant 1 : index
    %c0_81 = arith.constant 0 : index
    %73 = vector.load %arg7[%c0_79, %c1_80, %c0_81] : memref<16x24x15xf32, #tpu.memory_space<vmem>>, vector<16x23x15xf32>
    %74 = arith.maximumf %72, %73 : vector<16x23x15xf32>
    %75 = vector.shape_cast %6 : vector<1x15xf32> to vector<1x1x15xf32>
    %76 = vector.broadcast %75 : vector<1x1x15xf32> to vector<16x23x15xf32>
    %77 = arith.addf %74, %76 : vector<16x23x15xf32>
    %cst_82 = arith.constant 0.000000e+00 : f32
    %78 = vector.broadcast %cst_82 : f32 to vector<16x23x15xf32>
    %79 = arith.maximumf %77, %78 : vector<16x23x15xf32>
    %80 = vector.shape_cast %7 : vector<23x15xf32> to vector<1x23x15xf32>
    %81 = vector.broadcast %80 : vector<1x23x15xf32> to vector<16x23x15xf32>
    %82 = arith.mulf %79, %81 : vector<16x23x15xf32>
    %cst_83 = arith.constant dense<0.000000e+00> : vector<16x15xf32>
    %83 = vector.multi_reduction <add>, %82, %cst_83 [1] : vector<16x23x15xf32> to vector<16x15xf32>
    %cst_84 = arith.constant dense<0.000000e+00> : vector<16xf32>
    %84 = vector.multi_reduction <add>, %83, %cst_84 [1] : vector<16x15xf32> to vector<16xf32>
    %85 = vector.shape_cast %84 : vector<16xf32> to vector<16x1xf32>
    %86 = arith.index_cast %51 : i32 to index
    %c0_85 = arith.constant 0 : index
    %87 = vector.load %arg8[%86, %c0_85] : memref<32x1xf32, #tpu.memory_space<vmem>>, vector<16x1xf32>
    tpu.vector_store %arg8[%86, %c0_85], %85 {strides = array<i32>} : memref<32x1xf32, #tpu.memory_space<vmem>>, vector<16x1xf32>,
    %c2_i32 = arith.constant 2 : i32
    %c0_86 = arith.constant 0 : index
    %c0_87 = arith.constant 0 : index
    %88 = vector.load %arg8[%c0_86, %c0_87] : memref<32x1xf32, #tpu.memory_space<vmem>>, vector<32x1xf32>
    %89 = tpu.transpose %88, [1, 0] : vector<32x1xf32> -> vector<1x32xf32>
    %c0_88 = arith.constant 0 : index
    %c0_89 = arith.constant 0 : index
    %90 = memref.load %arg5[%c0_88, %c0_89] : memref<1x1xf32, #tpu.memory_space<smem>>
    %91 = vector.broadcast %90 : f32 to vector<1x32xf32>
    %92 = arith.addf %89, %91 : vector<1x32xf32>
    %c0_90 = arith.constant 0 : index
    %c0_91 = arith.constant 0 : index
    %93 = vector.load %arg6[%c0_90, %c0_91] : memref<1x32xf32, #tpu.memory_space<vmem>>, vector<1x32xf32>
    tpu.vector_store %arg6[%c0_90, %c0_91], %92 {strides = array<i32>} : memref<1x32xf32, #tpu.memory_space<vmem>>, vector<1x32xf32>,
    return
  }
  func.func @transform_0(%arg0: i32) -> (i32, i32, i32) {
    %c0_i32 = arith.constant 0 : i32
    %c0_i32_0 = arith.constant 0 : i32
    %c0_i32_1 = arith.constant 0 : i32
    return %arg0, %c0_i32, %c0_i32_0 : i32, i32, i32
  }
  func.func @transform_1(%arg0: i32) -> (i32, i32, i32) {
    %c0_i32 = arith.constant 0 : i32
    %c0_i32_0 = arith.constant 0 : i32
    %c0_i32_1 = arith.constant 0 : i32
    %c0_i32_2 = arith.constant 0 : i32
    return %c0_i32, %c0_i32_0, %c0_i32_1 : i32, i32, i32
  }
  func.func @transform_2(%arg0: i32) -> (i32, i32) {
    %c0_i32 = arith.constant 0 : i32
    %c0_i32_0 = arith.constant 0 : i32
    %c0_i32_1 = arith.constant 0 : i32
    return %c0_i32, %c0_i32_0 : i32, i32
  }
  func.func @transform_3(%arg0: i32) -> (i32, i32) {
    %c0_i32 = arith.constant 0 : i32
    %c0_i32_0 = arith.constant 0 : i32
    %c0_i32_1 = arith.constant 0 : i32
    return %c0_i32, %c0_i32_0 : i32, i32
  }
  func.func @transform_4(%arg0: i32) -> (i32, i32) {
    %c0_i32 = arith.constant 0 : i32
    %c0_i32_0 = arith.constant 0 : i32
    %c0_i32_1 = arith.constant 0 : i32
    return %c0_i32, %c0_i32_0 : i32, i32
  }
  func.func @transform_5(%arg0: i32) -> (i32, i32) {
    %c0_i32 = arith.constant 0 : i32
    %c0_i32_0 = arith.constant 0 : i32
    return %c0_i32, %arg0 : i32, i32
  }
}

</mosaic_0001>

<bundles_post_ra>
// kernel: tpu_custom_call.1
= control target key start
LH: loop header
LB: loop body
LE: loop exit
PB: predicated region body
PF: predicated region fallthrough
CT: control target
= control target key end

     0   :  { %11 = vsyncpa [#allocation6], 0  ;;  %s6312_s0 = inlined_call_operand.hbm [shape: f32[32,16,32], index: 0, kind: input, shape index: {}]   ;;  %s6313_s1 = inlined_call_operand.vmem [shape: f32[3,32,15], index: 1, kind: input, shape index: {}]   ;;  %s6314_s2 = inlined_call_operand.vmem [shape: f32[1,15], index: 2, kind: input, shape index: {}]   ;;  %s6315_s3 = inlined_call_operand.vmem [shape: f32[23,15], index: 3, kind: input, shape index: {}]   ;;  %s6316_s4 = inlined_call_operand.<no memory space> [shape: f32[1,1], index: 4, kind: input, shape index: {}]   ;;  %s6317_s5 = inlined_call_operand.hbm [shape: f32[1,32], index: 5, kind: output, shape index: {}]  }
   0x1   :  { %12 = vsyncpa [#allocation7], 0  ;;  %s4123_s18 = smov [#allocation5]   ;;  %s4075_s22 = scalar_lea.hbm %s6312_s0, 8192 }
   0x2   :  { %s18_s19 = sshll.u32 %s4123_s18, 4  ;;  %p4076_p0 = scmp.ne.s32.totalorder %s6312_s0, %s4075_s22  ;;  %s19_s19 = int_to_ptr.vmem [resolvable:$true] %s18_s19 }
   0x3   :  { %p4079_p1 = scmp.lt.u32.totalorder %s4075_s22, %s6312_s0 }
   0x5   :  { %p4081_p2 = pnand %p4079_p1, %p4076_p0 }
   0x7   :  { %4084 = shalt.err (!%p4081_p2)
}
   0x8   :  { %s4085_s27 = scalar_lea.vmem %s19_s19, 8192  ;;  %p4090_p4 = scmp.lt.s32.totalorder %s19_s19, %s19_s19 }
   0x9   :  { %p4086_p3 = scmp.ne.s32.totalorder %s19_s19, %s4085_s27  ;;  %p4091_p5 = scmp.lt.s32.totalorder %s4085_s27, %s4085_s27 }
   0xb   :  { %p4092_p6 = por %p4091_p5, %p4090_p4 }
   0xd   :  { %p4093_p7 = pnand %p4092_p6, %p4086_p3 }
   0xf   :  { %4096 = shalt.err (!%p4093_p7)
}
  0x10   :  { %s4124_s28 = smov 128   ;;  %s4125_s29 = smov 8  }
  0x11   :  { %24 = dma.hbm_to_vmem [thread:$0]  %s6312_s0, 8192, %s19_s19, [#allocation6], %s4124_s28, %s4124_s28, %s4125_s29  }
  0x12   :  { %4119 = dma.done.wait [#allocation6], 8192  }
  0x13   :  { %4120 = vsyncadd [#allocation6], 4294959104  ;;  %vm88_vm0 = vcmask 261120   ;;  %v36_v0 = vld [vmem:[%s6313_s1] sm:$0xff]  ;;  %v37_v1 = vld [vmem:[%s6313_s1 + $0x8] sm:$0xff]  ;;  %vm443_vm1 = vcmask 118784  }
  0x14   :  { %v38_v2 = vld [vmem:[%s6313_s1 + $0x10] sm:$0xff]  ;;  %v4014_v3 = vpack.c.bf16 %v37_v1, %v36_v0  ;;  %v39_v4 = vld [vmem:[%s6313_s1 + $0x18] sm:$0xff]  ;;  %v4182_v5 = vld [vmem:[#allocation5] sm:$0xff]  ;;  %v6318_v63 = vmov 0.0   ;;  %vm460_vm2 = vcmask 116736   ;;  %vm410_vm3 = vcmask 121856  }
  0x15   :  { %v4018_v6 = vpack.c.bf16 %v39_v4, %v38_v2  ;;  %3686 = vmatprep.mubr.msk.f32.mxu0 %vm88_vm0, %v4182_v5  ;;  %v3261_v7 = vld [vmem:[%s6313_s1 + $0x20] sm:$0xff]  ;;  %v3262_v8 = vld [vmem:[%s6313_s1 + $0x28] sm:$0xff]  ;;  %3742 = vmatprep.mubr.msk.f32.mxu1 %vm88_vm0, %v4182_v5  ;;  %v3263_v12 = vld [vmem:[%s6313_s1 + $0x30] sm:$0xff]  ;;  %444 = vst.msk [vmem:[#allocation2] sm:$0x1f] %vm443_vm1, %v6318_v63  ;;  %vm1416_vm4 = vcmask 120832  }
  0x16   :  { %v3265_v9 = vld [vmem:[%s6313_s1 + $0x40] sm:$0xff]  ;;  %4015 = vmatprep.subr.bf16.mxu0 %v4014_v3  ;;  %v4197_v10 = vpack.c.bf16 %v3262_v8, %v3261_v7  ;;  %v3266_v11 = vld [vmem:[%s6313_s1 + $0x48] sm:$0xff]  ;;  %v3264_v13 = vld [vmem:[%s6313_s1 + $0x38] sm:$0xff]  ;;  %445 = vst.msk [vmem:[#allocation2 + $0x18] sm:$0x1f] %vm443_vm1, %v6318_v63  ;;  %vm1606_vm5 = vcmask 1041409  }
  0x17   :  { %4017 = vmatpush3.bf16.msra.mxu0 %v4014_v3  ;;  %v4209_v14 = vpack.c.bf16 %v3266_v11, %v3265_v9  ;;  %v4211_v15 = vpack.c.bf16 %v3264_v13, %v3263_v12  ;;  %v4215_v16 = vld [vmem:[#allocation5 + $0x8] sm:$0xff]  ;;  %v4218_v17 = vld [vmem:[#allocation5 + $0x10] sm:$0xff]  ;;  %v3268_v19 = vld [vmem:[%s6313_s1 + $0x58] sm:$0xff]  ;;  %446 = vst.msk [vmem:[#allocation2 + $0x30] sm:$0x1f] %vm443_vm1, %v6318_v63  ;;  %vm1608_vm6 = vcmask 1042434  }
  0x18   :  { %4019 = vmatprep.subr.bf16.mxu0 %v4018_v6  ;;  %4023 = vmatprep.subr.bf16.mxu1 %v4197_v10  ;;  %v3267_v18 = vld [vmem:[%s6313_s1 + $0x50] sm:$0xff]  ;;  %v4234_v21 = vld [vmem:[#allocation5 + $0x18] sm:$0xff]  ;;  %v4236_v22 = vld [vmem:[#allocation5 + $0x20] sm:$0xff]  ;;  %447 = vst.msk [vmem:[#allocation2 + $0x48] sm:$0x1f] %vm443_vm1, %v6318_v63  ;;  %vm1610_vm7 = vcmask 1043459  }
  0x19   :  { %4025 = vmatpush3.bf16.msra.mxu1 %v4197_v10  ;;  %v4227_v20 = vpack.c.bf16 %v3268_v19, %v3267_v18  ;;  %v4247_v23 = vld [vmem:[#allocation5 + $0x28] sm:$0xff]  ;;  %v4250_v24 = vld [vmem:[#allocation5 + $0x30] sm:$0xff]  ;;  %v4262_v25 = vld [vmem:[#allocation5 + $0x38] sm:$0xff]  ;;  %448 = vst.msk [vmem:[#allocation2 + $0x60] sm:$0x1f] %vm443_vm1, %v6318_v63  ;;  %vm1612_vm8 = vcmask 1044484  }
  0x1a   :  { %4027 = vmatprep.subr.bf16.mxu1 %v4211_v15  ;;  %v4264_v26 = vld [vmem:[#allocation5 + $0x40] sm:$0xff]  ;;  %v4274_v27 = vld [vmem:[#allocation5 + $0x48] sm:$0xff]  ;;  %v4276_v28 = vld [vmem:[#allocation5 + $0x50] sm:$0xff]  ;;  %449 = vst.msk [vmem:[#allocation2 + $0x78] sm:$0x1f] %vm443_vm1, %v6318_v63  ;;  %vm1614_vm9 = vcmask 1045509  }
  0x1b   :  { %4021 = vmatpush3.bf16.msra.mxu0 %v4018_v6  ;;  %v4286_v29 = vld [vmem:[#allocation5 + $0x58] sm:$0xff]  ;;  %v4288_v30 = vld [vmem:[#allocation5 + $0x60] sm:$0xff]  ;;  %v4298_v31 = vld [vmem:[#allocation5 + $0x68] sm:$0xff]  ;;  %450 = vst.msk [vmem:[#allocation2 + $0x90] sm:$0x1f] %vm443_vm1, %v6318_v63  ;;  %vm1616_vm10 = vcmask 1046534  }
  0x1c   :  { %4031 = vmatprep.subr.bf16.mxu0 %v4209_v14  ;;  %v4300_v32 = vld [vmem:[#allocation5 + $0x70] sm:$0xff]  ;;  %v4310_v33 = vld [vmem:[#allocation5 + $0x78] sm:$0xff]  ;;  %v4312_v34 = vld [vmem:[#allocation5 + $0x80] sm:$0xff]  ;;  %451 = vst.msk [vmem:[#allocation2 + $0xa8] sm:$0x1f] %vm443_vm1, %v6318_v63  ;;  %vm1618_vm11 = vcmask 1047559  }
  0x1d   :  { %4029 = vmatpush3.bf16.msra.mxu1 %v4211_v15  ;;  %v4322_v35 = vld [vmem:[#allocation5 + $0x88] sm:$0xff]  ;;  %v4324_v36 = vld [vmem:[#allocation5 + $0x90] sm:$0xff]  ;;  %v4334_v37 = vld [vmem:[#allocation5 + $0x98] sm:$0xff]  ;;  %452 = vst.msk [vmem:[#allocation2 + $0xc0] sm:$0x1f] %vm443_vm1, %v6318_v63  ;;  %vm1635_vm12 = vcmask 7168  }
  0x1e   :  { %3687 = vmatmul.mubr.msk.f32.vlgmr.msra.gmra.mrb[0].mxu0 %vm88_vm0, %v4215_v16  ;;  %4039 = vmatprep.subr.bf16.mxu1 %v4014_v3  ;;  %v4336_v38 = vld [vmem:[#allocation5 + $0xa0] sm:$0xff]  ;;  %v4346_v39 = vld [vmem:[#allocation5 + $0xa8] sm:$0xff]  ;;  %v4348_v40 = vld [vmem:[#allocation5 + $0xb0] sm:$0xff]  ;;  %453 = vst.msk [vmem:[#allocation2 + $0xd8] sm:$0x1f] %vm443_vm1, %v6318_v63  ;;  %s4127_s27 = smov [#allocation8]  }
  0x1f   :  { %4033 = vmatpush3.bf16.msra.mxu0 %v4209_v14  ;;  %3689 = vmatprep.mubr.msk.f32.mxu0 %vm88_vm0, %v4218_v17  ;;  %v4358_v41 = vld [vmem:[#allocation5 + $0xb8] sm:$0xff]  ;;  %v4360_v42 = vld [vmem:[#allocation5 + $0xc0] sm:$0xff]  ;;  %v4370_v43 = vld [vmem:[#allocation5 + $0xc8] sm:$0xff]  ;;  %454 = vst.msk [vmem:[#allocation2 + $0xf0] sm:$0x1f] %vm443_vm1, %v6318_v63  ;;  %s3251_s28 = sshll.u32 %s4127_s27, 4  ;;  %s3252_s28 = int_to_ptr.vmem [resolvable:$true] %s3251_s28 }
  0x20   :  { %3743 = vmatmul.mubr.msk.f32.vlgmr.msra.gmra.mrb[0].mxu1 %vm88_vm0, %v4215_v16  ;;  %4035 = vmatprep.subr.bf16.mxu0 %v4227_v20  ;;  %v4372_v44 = vld [vmem:[#allocation5 + $0xd0] sm:$0xff]  ;;  %v4382_v45 = vld [vmem:[#allocation5 + $0xd8] sm:$0xff]  ;;  %v4384_v46 = vld [vmem:[#allocation5 + $0xe0] sm:$0xff]  ;;  %455 = vst.msk [vmem:[#allocation2 + $0x108] sm:$0x1f] %vm443_vm1, %v6318_v63  ;;  %vm3243_vm13 = vcmask 253952   ;;  %p4102_p9 = scmp.lt.s32.totalorder %s3252_s28, %s3252_s28 }
  0x21   :  { %3745 = vmatprep.mubr.msk.f32.mxu1 %vm88_vm0, %v4218_v17  ;;  %4041 = vmatpush3.bf16.msra.mxu1 %v4014_v3  ;;  %v4394_v47 = vld [vmem:[#allocation5 + $0xe8] sm:$0xff]  ;;  %v4396_v48 = vld [vmem:[#allocation5 + $0xf0] sm:$0xff]  ;;  %v4406_v49 = vld [vmem:[#allocation5 + $0xf8] sm:$0xff]  ;;  %456 = vst.msk [vmem:[#allocation2 + $0x120] sm:$0x1f] %vm443_vm1, %v6318_v63  ;;  %s4097_s29 = scalar_lea.vmem %s3252_s28, 16 }
  0x22   :  { %3690 = vmatmul.mubr.msk.f32.gmra.mrb[2].mxu0 %vm88_vm0, %v4234_v21  ;;  %4043 = vmatprep.subr.bf16.mxu1 %v4018_v6  ;;  %v4414_v50 = vld [vmem:[#allocation5 + $0x100] sm:$0xff]  ;;  %v4422_v51 = vld [vmem:[#allocation5 + $0x108] sm:$0xff]  ;;  %v4426_v52 = vld [vmem:[#allocation5 + $0x110] sm:$0xff]  ;;  %457 = vst.msk [vmem:[#allocation2 + $0x138] sm:$0x1f] %vm443_vm1, %v6318_v63  ;;  %p4098_p8 = scmp.ne.s32.totalorder %s3252_s28, %s4097_s29  ;;  %s4101_s1 = scalar_lea.vmem %s3252_s28, 32 }
  0x23   :  { %3692 = vmatprep.mubr.msk.f32.mxu0 %vm88_vm0, %v4236_v22  ;;  %4037 = vmatpush3.bf16.msra.mxu0 %v4227_v20  ;;  %v4437_v53 = vld [vmem:[#allocation5 + $0x118] sm:$0xff]  ;;  %v4441_v54 = vld [vmem:[#allocation5 + $0x120] sm:$0xff]  ;;  %v4451_v55 = vld [vmem:[#allocation5 + $0x128] sm:$0xff]  ;;  %458 = vst.msk [vmem:[#allocation2 + $0x150] sm:$0x1f] %vm443_vm1, %v6318_v63  ;;  %p4103_p10 = scmp.lt.s32.totalorder %s4101_s1, %s4097_s29 }
  0x24   :  { %3746 = vmatmul.mubr.msk.f32.gmra.mrb[2].mxu1 %vm88_vm0, %v4234_v21  ;;  %4047 = vmatprep.subr.bf16.mxu0 %v4197_v10  ;;  %v4456_v56 = vld [vmem:[#allocation5 + $0x130] sm:$0xff]  ;;  %v4464_v57 = vld [vmem:[#allocation5 + $0x138] sm:$0xff]  ;;  %v4468_v58 = vld [vmem:[#allocation5 + $0x140] sm:$0xff]  ;;  %459 = vst.msk [vmem:[#allocation2 + $0x168] sm:$0x1f] %vm443_vm1, %v6318_v63 }
  0x25   :  { %3748 = vmatprep.mubr.msk.f32.mxu1 %vm88_vm0, %v4236_v22  ;;  %4045 = vmatpush3.bf16.msra.mxu1 %v4018_v6  ;;  %v4476_v59 = vld [vmem:[#allocation5 + $0x148] sm:$0xff]  ;;  %v4480_v60 = vld [vmem:[#allocation5 + $0x150] sm:$0xff]  ;;  %v4488_v61 = vld [vmem:[#allocation5 + $0x158] sm:$0xff]  ;;  %461 = vst.msk [vmem:[#allocation2 + $0x15] sm:$0x7] %vm460_vm2, %v6318_v63  ;;  %p4104_p11 = por %p4103_p10, %p4102_p9 }
  0x26   :  { %3693 = vmatmul.mubr.msk.f32.gmra.mrb[4].mxu0 %vm88_vm0, %v4247_v23  ;;  %4055 = vmatprep.subr.bf16.mxu1 %v4209_v14  ;;  %v4492_v62 = vld [vmem:[#allocation5 + $0x160] sm:$0xff]  ;;  %v4532_v0 = vld [vmem:[#allocation5 + $0x168] sm:$0xff]  ;;  %v4536_v1 = vld [vmem:[#allocation5 + $0x170] sm:$0xff]  ;;  %462 = vst.msk [vmem:[#allocation2 + $0x2d] sm:$0x7] %vm460_vm2, %v6318_v63 }
  0x27   :  { %3695 = vmatprep.mubr.msk.f32.mxu0 %vm88_vm0, %v4250_v24  ;;  %v4544_v2 = vld [vmem:[#allocation5 + $0x178] sm:$0xff]  ;;  %v4548_v3 = vld [vmem:[#allocation5 + $0x180] sm:$0xff]  ;;  %v4556_v4 = vld [vmem:[#allocation5 + $0x188] sm:$0xff]  ;;  %463 = vst.msk [vmem:[#allocation2 + $0x45] sm:$0x7] %vm460_vm2, %v6318_v63  ;;  %p4105_p12 = pnand %p4104_p11, %p4098_p8 }
  0x28   :  { %3749 = vmatmul.mubr.msk.f32.gmra.mrb[4].mxu1 %vm88_vm0, %v4247_v23  ;;  %v4568_v6 = vld [vmem:[#allocation5 + $0x198] sm:$0xff]  ;;  %v4572_v7 = vld [vmem:[#allocation5 + $0x1a0] sm:$0xff]  ;;  %v4580_v8 = vld [vmem:[#allocation5 + $0x1a8] sm:$0xff]  ;;  %464 = vst.msk [vmem:[#allocation2 + $0x5d] sm:$0x7] %vm460_vm2, %v6318_v63 }
  0x29   :  { %3751 = vmatprep.mubr.msk.f32.mxu1 %vm88_vm0, %v4250_v24  ;;  %v4584_v9 = vld [vmem:[#allocation5 + $0x1b0] sm:$0xff]  ;;  %v4596_v11 = vld [vmem:[#allocation5 + $0x1c0] sm:$0xff]  ;;  %v4604_v12 = vld [vmem:[#allocation5 + $0x1c8] sm:$0xff]  ;;  %465 = vst.msk [vmem:[#allocation2 + $0x75] sm:$0x7] %vm460_vm2, %v6318_v63 }
  0x2a   :  { %3696 = vmatmul.mubr.msk.f32.gmra.mrb[6].mxu0 %vm88_vm0, %v4262_v25  ;;  %v4608_v13 = vld [vmem:[#allocation5 + $0x1d0] sm:$0xff]  ;;  %v4640_v18 = vld [vmem:[#allocation5 + $0x1f8] sm:$0xff]  ;;  %466 = vst.msk [vmem:[#allocation2 + $0x8d] sm:$0x7] %vm460_vm2, %v6318_v63  ;;  %467 = vst.msk [vmem:[#allocation2 + $0xa5] sm:$0x7] %vm460_vm2, %v6318_v63 }
  0x2b   :  { %3698 = vmatprep.mubr.msk.f32.mxu0 %vm88_vm0, %v4264_v26  ;;  %468 = vst.msk [vmem:[#allocation2 + $0xbd] sm:$0x7] %vm460_vm2, %v6318_v63  ;;  %469 = vst.msk [vmem:[#allocation2 + $0xd5] sm:$0x7] %vm460_vm2, %v6318_v63 }
  0x2c   :  { %3752 = vmatmul.mubr.msk.f32.gmra.mrb[6].mxu1 %vm88_vm0, %v4262_v25  ;;  %470 = vst.msk [vmem:[#allocation2 + $0xed] sm:$0x7] %vm460_vm2, %v6318_v63  ;;  %471 = vst.msk [vmem:[#allocation2 + $0x105] sm:$0x7] %vm460_vm2, %v6318_v63 }
  0x2d   :  { %3754 = vmatprep.mubr.msk.f32.mxu1 %vm88_vm0, %v4264_v26  ;;  %472 = vst.msk [vmem:[#allocation2 + $0x11d] sm:$0x7] %vm460_vm2, %v6318_v63  ;;  %473 = vst.msk [vmem:[#allocation2 + $0x135] sm:$0x7] %vm460_vm2, %v6318_v63 }
  0x2e   :  { %3699 = vmatmul.mubr.msk.f32.gmra.mrb[8].mxu0 %vm88_vm0, %v4274_v27  ;;  %474 = vst.msk [vmem:[#allocation2 + $0x14d] sm:$0x7] %vm460_vm2, %v6318_v63  ;;  %475 = vst.msk [vmem:[#allocation2 + $0x165] sm:$0x7] %vm460_vm2, %v6318_v63 }
  0x2f   :  { %3701 = vmatprep.mubr.msk.f32.mxu0 %vm88_vm0, %v4276_v28  ;;  %476 = vst.msk [vmem:[#allocation2 + $0x17d] sm:$0x7] %vm460_vm2, %v6318_v63 }
  0x30   :  { %3755 = vmatmul.mubr.msk.f32.gmra.mrb[8].mxu1 %vm88_vm0, %v4274_v27 }
  0x31   :  { %3757 = vmatprep.mubr.msk.f32.mxu1 %vm88_vm0, %v4276_v28 }
  0x32   :  { %3702 = vmatmul.mubr.msk.f32.gmra.mrb[10].mxu0 %vm88_vm0, %v4286_v29 }
  0x33   :  { %3704 = vmatprep.mubr.msk.f32.mxu0 %vm88_vm0, %v4288_v30 }
  0x34   :  { %3758 = vmatmul.mubr.msk.f32.gmra.mrb[10].mxu1 %vm88_vm0, %v4286_v29 }
  0x35   :  { %3760 = vmatprep.mubr.msk.f32.mxu1 %vm88_vm0, %v4288_v30 }
  0x36   :  { %3705 = vmatmul.mubr.msk.f32.gmra.mrb[12].mxu0 %vm88_vm0, %v4298_v31 }
  0x37   :  { %3707 = vmatprep.mubr.msk.f32.mxu0 %vm88_vm0, %v4300_v32 }
  0x38   :  { %3761 = vmatmul.mubr.msk.f32.gmra.mrb[12].mxu1 %vm88_vm0, %v4298_v31 }
  0x39   :  { %3763 = vmatprep.mubr.msk.f32.mxu1 %vm88_vm0, %v4300_v32 }
  0x3a   :  { %3708 = vmatmul.mubr.msk.f32.gmra.mrb[14].mxu0 %vm88_vm0, %v4310_v33 }
  0x3b   :  { %3710 = vmatprep.mubr.msk.f32.mxu0 %vm88_vm0, %v4312_v34 }
  0x3c   :  { %3764 = vmatmul.mubr.msk.f32.gmra.mrb[14].mxu1 %vm88_vm0, %v4310_v33 }
  0x3d   :  { %3766 = vmatprep.mubr.msk.f32.mxu1 %vm88_vm0, %v4312_v34 }
  0x3e   :  { %3711 = vmatmul.mubr.msk.f32.gmra.mrb[16].mxu0 %vm88_vm0, %v4322_v35 }
  0x3f   :  { %3713 = vmatprep.mubr.msk.f32.mxu0 %vm88_vm0, %v4324_v36 }
  0x40   :  { %3767 = vmatmul.mubr.msk.f32.gmra.mrb[16].mxu1 %vm88_vm0, %v4322_v35 }
  0x41   :  { %3769 = vmatprep.mubr.msk.f32.mxu1 %vm88_vm0, %v4324_v36 }
  0x42   :  { %3714 = vmatmul.mubr.msk.f32.gmra.mrb[18].mxu0 %vm88_vm0, %v4334_v37 }
  0x43   :  { %3716 = vmatprep.mubr.msk.f32.mxu0 %vm88_vm0, %v4336_v38 }
  0x44   :  { %3770 = vmatmul.mubr.msk.f32.gmra.mrb[18].mxu1 %vm88_vm0, %v4334_v37 }
  0x45   :  { %3772 = vmatprep.mubr.msk.f32.mxu1 %vm88_vm0, %v4336_v38 }
  0x46   :  { %3717 = vmatmul.mubr.msk.f32.gmra.mrb[20].mxu0 %vm88_vm0, %v4346_v39 }
  0x47   :  { %3719 = vmatprep.mubr.msk.f32.mxu0 %vm88_vm0, %v4348_v40 }
  0x48   :  { %3773 = vmatmul.mubr.msk.f32.gmra.mrb[20].mxu1 %vm88_vm0, %v4346_v39 }
  0x49   :  { %3775 = vmatprep.mubr.msk.f32.mxu1 %vm88_vm0, %v4348_v40 }
  0x4a   :  { %3720 = vmatmul.mubr.msk.f32.gmra.mrb[22].mxu0 %vm88_vm0, %v4358_v41 }
  0x4b   :  { %3722 = vmatprep.mubr.msk.f32.mxu0 %vm88_vm0, %v4360_v42 }
  0x4c   :  { %3776 = vmatmul.mubr.msk.f32.gmra.mrb[22].mxu1 %vm88_vm0, %v4358_v41 }
  0x4d   :  { %3778 = vmatprep.mubr.msk.f32.mxu1 %vm88_vm0, %v4360_v42 }
  0x4e   :  { %3723 = vmatmul.mubr.msk.f32.gmra.mrb[24].mxu0 %vm88_vm0, %v4370_v43 }
  0x4f   :  { %3725 = vmatprep.mubr.msk.f32.mxu0 %vm88_vm0, %v4372_v44 }
  0x50   :  { %3779 = vmatmul.mubr.msk.f32.gmra.mrb[24].mxu1 %vm88_vm0, %v4370_v43 }
  0x51   :  { %3781 = vmatprep.mubr.msk.f32.mxu1 %vm88_vm0, %v4372_v44 }
  0x52   :  { %3726 = vmatmul.mubr.msk.f32.gmra.mrb[26].mxu0 %vm88_vm0, %v4382_v45 }
  0x53   :  { %3728 = vmatprep.mubr.msk.f32.mxu0 %vm88_vm0, %v4384_v46 }
  0x54   :  { %3782 = vmatmul.mubr.msk.f32.gmra.mrb[26].mxu1 %vm88_vm0, %v4382_v45 }
  0x55   :  { %3784 = vmatprep.mubr.msk.f32.mxu1 %vm88_vm0, %v4384_v46 }
  0x56   :  { %3729 = vmatmul.mubr.msk.f32.gmra.mrb[28].mxu0 %vm88_vm0, %v4394_v47 }
  0x57   :  { %3731 = vmatprep.mubr.msk.f32.mxu0 %vm88_vm0, %v4396_v48 }
  0x58   :  { %3785 = vmatmul.mubr.msk.f32.gmra.mrb[28].mxu1 %vm88_vm0, %v4394_v47 }
  0x59   :  { %3787 = vmatprep.mubr.msk.f32.mxu1 %vm88_vm0, %v4396_v48 }
  0x5a   :  { %3732 = vmatmul.mubr.msk.f32.gmra.mrb[30].mxu0 %vm88_vm0, %v4406_v49 }
  0x5b   :  { %3798 = vmatprep.mubr.msk.f32.mxu0 %vm88_vm0, %v4182_v5  ;;  %v4560_v5 = vld [vmem:[#allocation5 + $0x190] sm:$0xff] }
  0x5c   :  { %3788 = vmatmul.mubr.msk.f32.gmra.mrb[30].mxu1 %vm88_vm0, %v4406_v49 }
  0x5d   :  { %3854 = vmatprep.mubr.msk.f32.mxu1 %vm88_vm0, %v4414_v50 }
  0x5e   :  { %3799 = vmatmul.mubr.msk.f32.vlgmr.msra.gmra.mrb[32].mxu0 %vm88_vm0, %v4215_v16  ;;  %v4628_v16 = vld [vmem:[#allocation5 + $0x1e8] sm:$0xff] }
  0x5f   :  { %4049 = vmatpush3.bf16.msra.mxu0 %v4197_v10  ;;  %3801 = vmatprep.mubr.msk.f32.mxu0 %vm88_vm0, %v4218_v17  ;;  %v4592_v10 = vld [vmem:[#allocation5 + $0x1b8] sm:$0xff]  ;;  %v4632_v17 = vld [vmem:[#allocation5 + $0x1f0] sm:$0xff] }
  0x60   :  { %3855 = vmatmul.mubr.msk.f32.vlgmr.msra.gmra.mrb[32].mxu1 %vm88_vm0, %v4422_v51  ;;  %4051 = vmatprep.subr.bf16.mxu0 %v4211_v15 }
  0x61   :  { %4057 = vmatpush3.bf16.msra.mxu1 %v4209_v14  ;;  %3857 = vmatprep.mubr.msk.f32.mxu1 %vm88_vm0, %v4426_v52  ;;  %v4616_v14 = vld [vmem:[#allocation5 + $0x1d8] sm:$0xff] }
  0x62   :  { %3802 = vmatmul.mubr.msk.f32.gmra.mrb[34].mxu0 %vm88_vm0, %v4234_v21  ;;  %4059 = vmatprep.subr.bf16.mxu1 %v4227_v20 }
  0x63   :  { %3804 = vmatprep.mubr.msk.f32.mxu0 %vm88_vm0, %v4236_v22  ;;  %4053 = vmatpush3.bf16.msra.mxu0 %v4211_v15  ;;  %v4620_v15 = vld [vmem:[#allocation5 + $0x1e0] sm:$0xff] }
  0x64   :  { %3858 = vmatmul.mubr.msk.f32.gmra.mrb[34].mxu1 %vm88_vm0, %v4437_v53 }
  0x65   :  { %3860 = vmatprep.mubr.msk.f32.mxu1 %vm88_vm0, %v4441_v54  ;;  %4061 = vmatpush3.bf16.msra.mxu1 %v4227_v20 }
  0x66   :  { %3805 = vmatmul.mubr.msk.f32.gmra.mrb[36].mxu0 %vm88_vm0, %v4247_v23 }
  0x67   :  { %3807 = vmatprep.mubr.msk.f32.mxu0 %vm88_vm0, %v4250_v24 }
  0x68   :  { %3861 = vmatmul.mubr.msk.f32.gmra.mrb[36].mxu1 %vm88_vm0, %v4451_v55 }
  0x69   :  { %3863 = vmatprep.mubr.msk.f32.mxu1 %vm88_vm0, %v4456_v56 }
  0x6a   :  { %3808 = vmatmul.mubr.msk.f32.gmra.mrb[38].mxu0 %vm88_vm0, %v4262_v25 }
  0x6b   :  { %3810 = vmatprep.mubr.msk.f32.mxu0 %vm88_vm0, %v4264_v26 }
  0x6c   :  { %3864 = vmatmul.mubr.msk.f32.gmra.mrb[38].mxu1 %vm88_vm0, %v4464_v57 }
  0x6d   :  { %3866 = vmatprep.mubr.msk.f32.mxu1 %vm88_vm0, %v4468_v58 }
  0x6e   :  { %3811 = vmatmul.mubr.msk.f32.gmra.mrb[40].mxu0 %vm88_vm0, %v4274_v27 }
  0x6f   :  { %3813 = vmatprep.mubr.msk.f32.mxu0 %vm88_vm0, %v4276_v28 }
  0x70   :  { %3867 = vmatmul.mubr.msk.f32.gmra.mrb[40].mxu1 %vm88_vm0, %v4476_v59 }
  0x71   :  { %3869 = vmatprep.mubr.msk.f32.mxu1 %vm88_vm0, %v4480_v60 }
  0x72   :  { %3814 = vmatmul.mubr.msk.f32.gmra.mrb[42].mxu0 %vm88_vm0, %v4286_v29 }
  0x73   :  { %3816 = vmatprep.mubr.msk.f32.mxu0 %vm88_vm0, %v4288_v30 }
  0x74   :  { %3870 = vmatmul.mubr.msk.f32.gmra.mrb[42].mxu1 %vm88_vm0, %v4488_v61 }
  0x75   :  { %3872 = vmatprep.mubr.msk.f32.mxu1 %vm88_vm0, %v4492_v62 }
  0x76   :  { %3817 = vmatmul.mubr.msk.f32.gmra.mrb[44].mxu0 %vm88_vm0, %v4298_v31 }
  0x77   :  { %3819 = vmatprep.mubr.msk.f32.mxu0 %vm88_vm0, %v4300_v32 }
  0x78   :  { %3873 = vmatmul.mubr.msk.f32.gmra.mrb[44].mxu1 %vm88_vm0, %v4532_v0 }
  0x79   :  { %3875 = vmatprep.mubr.msk.f32.mxu1 %vm88_vm0, %v4536_v1 }
  0x7a   :  { %3820 = vmatmul.mubr.msk.f32.gmra.mrb[46].mxu0 %vm88_vm0, %v4310_v33 }
  0x7b   :  { %3822 = vmatprep.mubr.msk.f32.mxu0 %vm88_vm0, %v4312_v34 }
  0x7c   :  { %3876 = vmatmul.mubr.msk.f32.gmra.mrb[46].mxu1 %vm88_vm0, %v4544_v2 }
  0x7d   :  { %3878 = vmatprep.mubr.msk.f32.mxu1 %vm88_vm0, %v4548_v3 }
  0x7e   :  { %3823 = vmatmul.mubr.msk.f32.gmra.mrb[48].mxu0 %vm88_vm0, %v4322_v35 }
  0x7f   :  { %3825 = vmatprep.mubr.msk.f32.mxu0 %vm88_vm0, %v4324_v36 }
  0x80   :  { %3879 = vmatmul.mubr.msk.f32.gmra.mrb[48].mxu1 %vm88_vm0, %v4556_v4 }
  0x81   :  { %3881 = vmatprep.mubr.msk.f32.mxu1 %vm88_vm0, %v4560_v5 }
  0x82   :  { %3826 = vmatmul.mubr.msk.f32.gmra.mrb[50].mxu0 %vm88_vm0, %v4334_v37 }
  0x83   :  { %3828 = vmatprep.mubr.msk.f32.mxu0 %vm88_vm0, %v4336_v38 }
  0x84   :  { %3882 = vmatmul.mubr.msk.f32.gmra.mrb[50].mxu1 %vm88_vm0, %v4568_v6 }
  0x85   :  { %3884 = vmatprep.mubr.msk.f32.mxu1 %vm88_vm0, %v4572_v7 }
  0x86   :  { %3829 = vmatmul.mubr.msk.f32.gmra.mrb[52].mxu0 %vm88_vm0, %v4346_v39 }
  0x87   :  { %3831 = vmatprep.mubr.msk.f32.mxu0 %vm88_vm0, %v4348_v40 }
  0x88   :  { %3885 = vmatmul.mubr.msk.f32.gmra.mrb[52].mxu1 %vm88_vm0, %v4580_v8 }
  0x89   :  { %3887 = vmatprep.mubr.msk.f32.mxu1 %vm88_vm0, %v4584_v9 }
  0x8a   :  { %3832 = vmatmul.mubr.msk.f32.gmra.mrb[54].mxu0 %vm88_vm0, %v4358_v41 }
  0x8b   :  { %3834 = vmatprep.mubr.msk.f32.mxu0 %vm88_vm0, %v4360_v42 }
  0x8c   :  { %3888 = vmatmul.mubr.msk.f32.gmra.mrb[54].mxu1 %vm88_vm0, %v4592_v10 }
  0x8d   :  { %3890 = vmatprep.mubr.msk.f32.mxu1 %vm88_vm0, %v4596_v11 }
  0x8e   :  { %3835 = vmatmul.mubr.msk.f32.gmra.mrb[56].mxu0 %vm88_vm0, %v4370_v43 }
  0x8f   :  { %3837 = vmatprep.mubr.msk.f32.mxu0 %vm88_vm0, %v4372_v44 }
  0x90   :  { %3891 = vmatmul.mubr.msk.f32.gmra.mrb[56].mxu1 %vm88_vm0, %v4604_v12 }
  0x91   :  { %3893 = vmatprep.mubr.msk.f32.mxu1 %vm88_vm0, %v4608_v13 }
  0x92   :  { %3838 = vmatmul.mubr.msk.f32.gmra.mrb[58].mxu0 %vm88_vm0, %v4382_v45 }
  0x93   :  { %3840 = vmatprep.mubr.msk.f32.mxu0 %vm88_vm0, %v4384_v46 }
  0x94   :  { %3894 = vmatmul.mubr.msk.f32.gmra.mrb[58].mxu1 %vm88_vm0, %v4616_v14 }
  0x95   :  { %3896 = vmatprep.mubr.msk.f32.mxu1 %vm88_vm0, %v4620_v15 }
  0x96   :  { %3841 = vmatmul.mubr.msk.f32.gmra.mrb[60].mxu0 %vm88_vm0, %v4394_v47 }
  0x97   :  { %3843 = vmatprep.mubr.msk.f32.mxu0 %vm88_vm0, %v4396_v48 }
  0x98   :  { %3897 = vmatmul.mubr.msk.f32.gmra.mrb[60].mxu1 %vm88_vm0, %v4628_v16 }
  0x99   :  { %3899 = vmatprep.mubr.msk.f32.mxu1 %vm88_vm0, %v4632_v17 }
  0x9a   :  { %3844 = vmatmul.mubr.msk.f32.gmra.mrb[62].mxu0 %vm88_vm0, %v4406_v49 }
  0x9b   :  { %3910 = vmatprep.mubr.msk.f32.mxu0 %vm88_vm0, %v4414_v50 }
  0x9c   :  { %3900 = vmatmul.mubr.msk.f32.gmra.mrb[62].mxu1 %vm88_vm0, %v4640_v18 }
  0x9d   :  { %3966 = vmatprep.mubr.msk.f32.mxu1 %vm88_vm0, %v4414_v50 }
  0x9e   :  { %3911 = vmatmul.mubr.msk.f32.vlgmr.msra.gmra.mrb[64].mxu0 %vm88_vm0, %v4422_v51 }
  0x9f   :  { %3913 = vmatprep.mubr.msk.f32.mxu0 %vm88_vm0, %v4426_v52 }
  0xa0   :  { %3967 = vmatmul.mubr.msk.f32.vlgmr.msra.gmra.mrb[64].mxu1 %vm88_vm0, %v4422_v51 }
  0xa1   :  { %3969 = vmatprep.mubr.msk.f32.mxu1 %vm88_vm0, %v4426_v52 }
  0xa2   :  { %3914 = vmatmul.mubr.msk.f32.gmra.mrb[66].mxu0 %vm88_vm0, %v4437_v53 }
  0xa3   :  { %3916 = vmatprep.mubr.msk.f32.mxu0 %vm88_vm0, %v4441_v54 }
  0xa4   :  { %3970 = vmatmul.mubr.msk.f32.gmra.mrb[66].mxu1 %vm88_vm0, %v4437_v53 }
  0xa5   :  { %3972 = vmatprep.mubr.msk.f32.mxu1 %vm88_vm0, %v4441_v54 }
  0xa6   :  { %3917 = vmatmul.mubr.msk.f32.gmra.mrb[68].mxu0 %vm88_vm0, %v4451_v55 }
  0xa7   :  { %3919 = vmatprep.mubr.msk.f32.mxu0 %vm88_vm0, %v4456_v56 }
  0xa8   :  { %3973 = vmatmul.mubr.msk.f32.gmra.mrb[68].mxu1 %vm88_vm0, %v4451_v55 }
  0xa9   :  { %3975 = vmatprep.mubr.msk.f32.mxu1 %vm88_vm0, %v4456_v56 }
  0xaa   :  { %3920 = vmatmul.mubr.msk.f32.gmra.mrb[70].mxu0 %vm88_vm0, %v4464_v57 }
  0xab   :  { %3922 = vmatprep.mubr.msk.f32.mxu0 %vm88_vm0, %v4468_v58 }
  0xac   :  { %3976 = vmatmul.mubr.msk.f32.gmra.mrb[70].mxu1 %vm88_vm0, %v4464_v57 }
  0xad   :  { %3978 = vmatprep.mubr.msk.f32.mxu1 %vm88_vm0, %v4468_v58 }
  0xae   :  { %3923 = vmatmul.mubr.msk.f32.gmra.mrb[72].mxu0 %vm88_vm0, %v4476_v59 }
  0xaf   :  { %3925 = vmatprep.mubr.msk.f32.mxu0 %vm88_vm0, %v4480_v60 }
  0xb0   :  { %3979 = vmatmul.mubr.msk.f32.gmra.mrb[72].mxu1 %vm88_vm0, %v4476_v59 }
  0xb1   :  { %3981 = vmatprep.mubr.msk.f32.mxu1 %vm88_vm0, %v4480_v60 }
  0xb2   :  { %3926 = vmatmul.mubr.msk.f32.gmra.mrb[74].mxu0 %vm88_vm0, %v4488_v61 }
  0xb3   :  { %3928 = vmatprep.mubr.msk.f32.mxu0 %vm88_vm0, %v4492_v62 }
  0xb4   :  { %3982 = vmatmul.mubr.msk.f32.gmra.mrb[74].mxu1 %vm88_vm0, %v4488_v61 }
  0xb5   :  { %3984 = vmatprep.mubr.msk.f32.mxu1 %vm88_vm0, %v4492_v62 }
  0xb6   :  { %3929 = vmatmul.mubr.msk.f32.gmra.mrb[76].mxu0 %vm88_vm0, %v4532_v0 }
  0xb7   :  { %3931 = vmatprep.mubr.msk.f32.mxu0 %vm88_vm0, %v4536_v1 }
  0xb8   :  { %3985 = vmatmul.mubr.msk.f32.gmra.mrb[76].mxu1 %vm88_vm0, %v4532_v0 }
  0xb9   :  { %3987 = vmatprep.mubr.msk.f32.mxu1 %vm88_vm0, %v4536_v1 }
  0xba   :  { %3932 = vmatmul.mubr.msk.f32.gmra.mrb[78].mxu0 %vm88_vm0, %v4544_v2 }
  0xbb   :  { %3934 = vmatprep.mubr.msk.f32.mxu0 %vm88_vm0, %v4548_v3 }
  0xbc   :  { %3988 = vmatmul.mubr.msk.f32.gmra.mrb[78].mxu1 %vm88_vm0, %v4544_v2 }
  0xbd   :  { %3990 = vmatprep.mubr.msk.f32.mxu1 %vm88_vm0, %v4548_v3 }
  0xbe   :  { %3935 = vmatmul.mubr.msk.f32.gmra.mrb[80].mxu0 %vm88_vm0, %v4556_v4 }
  0xbf   :  { %3937 = vmatprep.mubr.msk.f32.mxu0 %vm88_vm0, %v4560_v5 }
  0xc0   :  { %3991 = vmatmul.mubr.msk.f32.gmra.mrb[80].mxu1 %vm88_vm0, %v4556_v4 }
  0xc1   :  { %3993 = vmatprep.mubr.msk.f32.mxu1 %vm88_vm0, %v4560_v5 }
  0xc2   :  { %3938 = vmatmul.mubr.msk.f32.gmra.mrb[82].mxu0 %vm88_vm0, %v4568_v6 }
  0xc3   :  { %3940 = vmatprep.mubr.msk.f32.mxu0 %vm88_vm0, %v4572_v7 }
  0xc4   :  { %3994 = vmatmul.mubr.msk.f32.gmra.mrb[82].mxu1 %vm88_vm0, %v4568_v6 }
  0xc5   :  { %3996 = vmatprep.mubr.msk.f32.mxu1 %vm88_vm0, %v4572_v7 }
  0xc6   :  { %3941 = vmatmul.mubr.msk.f32.gmra.mrb[84].mxu0 %vm88_vm0, %v4580_v8 }
  0xc7   :  { %3943 = vmatprep.mubr.msk.f32.mxu0 %vm88_vm0, %v4584_v9 }
  0xc8   :  { %3997 = vmatmul.mubr.msk.f32.gmra.mrb[84].mxu1 %vm88_vm0, %v4580_v8 }
  0xc9   :  { %3999 = vmatprep.mubr.msk.f32.mxu1 %vm88_vm0, %v4584_v9 }
  0xca   :  { %3944 = vmatmul.mubr.msk.f32.gmra.mrb[86].mxu0 %vm88_vm0, %v4592_v10 }
  0xcb   :  { %3946 = vmatprep.mubr.msk.f32.mxu0 %vm88_vm0, %v4596_v11 }
  0xcc   :  { %4000 = vmatmul.mubr.msk.f32.gmra.mrb[86].mxu1 %vm88_vm0, %v4592_v10 }
  0xcd   :  { %4002 = vmatprep.mubr.msk.f32.mxu1 %vm88_vm0, %v4596_v11 }
  0xce   :  { %3947 = vmatmul.mubr.msk.f32.gmra.mrb[88].mxu0 %vm88_vm0, %v4604_v12 }
  0xcf   :  { %3949 = vmatprep.mubr.msk.f32.mxu0 %vm88_vm0, %v4608_v13 }
  0xd0   :  { %4003 = vmatmul.mubr.msk.f32.gmra.mrb[88].mxu1 %vm88_vm0, %v4604_v12 }
  0xd1   :  { %4005 = vmatprep.mubr.msk.f32.mxu1 %vm88_vm0, %v4608_v13 }
  0xd2   :  { %3950 = vmatmul.mubr.msk.f32.gmra.mrb[90].mxu0 %vm88_vm0, %v4616_v14 }
  0xd3   :  { %3952 = vmatprep.mubr.msk.f32.mxu0 %vm88_vm0, %v4620_v15 }
  0xd4   :  { %4006 = vmatmul.mubr.msk.f32.gmra.mrb[90].mxu1 %vm88_vm0, %v4616_v14 }
  0xd5   :  { %4008 = vmatprep.mubr.msk.f32.mxu1 %vm88_vm0, %v4620_v15 }
  0xd6   :  { %3953 = vmatmul.mubr.msk.f32.gmra.mrb[92].mxu0 %vm88_vm0, %v4628_v16 }
  0xd7   :  { %3955 = vmatprep.mubr.msk.f32.mxu0 %vm88_vm0, %v4632_v17 }
  0xd8   :  { %4009 = vmatmul.mubr.msk.f32.gmra.mrb[92].mxu1 %vm88_vm0, %v4628_v16 }
  0xd9   :  { %4011 = vmatprep.mubr.msk.f32.mxu1 %vm88_vm0, %v4632_v17 }
  0xda   :  { %3956 = vmatmul.mubr.msk.f32.gmra.mrb[94].mxu0 %vm88_vm0, %v4640_v18 }
  0xdc   :  { %4012 = vmatmul.mubr.msk.f32.gmra.mrb[94].mxu1 %vm88_vm0, %v4640_v18 }
  0xf1   :  { %v3688_v19 = vpop.f32.mrb[0].mxu0 }
  0xf2   :  { %412 = vst.msk [vmem:[#allocation2 + $0xd] sm:$0xff] %vm410_vm3, %v3688_v19  ;;  %v251_v20 = vpop.f32.mrb[1].mxu0 }
  0xf3   :  { %411 = vst.msk [vmem:[#allocation2 + $0x5] sm:$0xff] %vm410_vm3, %v251_v20  ;;  %v3744_v21 = vpop.f32.mrb[0].mxu1 }
  0xf4   :  { %v543_v22 = vpop.f32.mrb[1].mxu1 }
  0xf5   :  { %v3691_v23 = vpop.f32.mrb[2].mxu0 }
  0xf6   :  { %414 = vst.msk [vmem:[#allocation2 + $0x25] sm:$0xff] %vm410_vm3, %v3691_v23  ;;  %v261_v24 = vpop.f32.mrb[3].mxu0 }
  0xf7   :  { %413 = vst.msk [vmem:[#allocation2 + $0x1d] sm:$0xff] %vm410_vm3, %v261_v24  ;;  %v3747_v25 = vpop.f32.mrb[2].mxu1 }
  0xf8   :  { %v553_v26 = vpop.f32.mrb[3].mxu1 }
  0xf9   :  { %v3694_v27 = vpop.f32.mrb[4].mxu0 }
  0xfa   :  { %416 = vst.msk [vmem:[#allocation2 + $0x3d] sm:$0xff] %vm410_vm3, %v3694_v27  ;;  %v703_v28 = vld [vmem:[#allocation2 + $0xc] sm:$0xff]  ;;  %v271_v29 = vpop.f32.mrb[5].mxu0  ;;  %v702_v30 = vld [vmem:[#allocation2 + $0x4] sm:$0xff] }
  0xfb   :  { %v735_v31 = vadd.f32 %v3744_v21, %v703_v28  ;;  %415 = vst.msk [vmem:[#allocation2 + $0x35] sm:$0xff] %vm410_vm3, %v271_v29  ;;  %v734_v32 = vadd.f32 %v702_v30, %v543_v22  ;;  %v3750_v33 = vpop.f32.mrb[4].mxu1 }
  0xfc   :  { %v563_v34 = vpop.f32.mrb[5].mxu1 }
  0xfd   :  { %767 = vst.msk [vmem:[#allocation2 + $0xc] sm:$0xff] %vm410_vm3, %v735_v31  ;;  %766 = vst.msk [vmem:[#allocation2 + $0x4] sm:$0xff] %vm410_vm3, %v734_v32  ;;  %v3697_v35 = vpop.f32.mrb[6].mxu0 }
  0xfe   :  { %418 = vst.msk [vmem:[#allocation2 + $0x55] sm:$0xff] %vm410_vm3, %v3697_v35  ;;  %v705_v36 = vld [vmem:[#allocation2 + $0x24] sm:$0xff]  ;;  %v281_v37 = vpop.f32.mrb[7].mxu0  ;;  %v704_v38 = vld [vmem:[#allocation2 + $0x1c] sm:$0xff] }
  0xff   :  { %v737_v39 = vadd.f32 %v3747_v25, %v705_v36  ;;  %417 = vst.msk [vmem:[#allocation2 + $0x4d] sm:$0xff] %vm410_vm3, %v281_v37  ;;  %v736_v40 = vadd.f32 %v704_v38, %v553_v26  ;;  %v3753_v41 = vpop.f32.mrb[6].mxu1 }
 0x100   :  { %v573_v42 = vpop.f32.mrb[7].mxu1 }
 0x101   :  { %769 = vst.msk [vmem:[#allocation2 + $0x24] sm:$0xff] %vm410_vm3, %v737_v39  ;;  %768 = vst.msk [vmem:[#allocation2 + $0x1c] sm:$0xff] %vm410_vm3, %v736_v40  ;;  %v3700_v43 = vpop.f32.mrb[8].mxu0 }
 0x102   :  { %420 = vst.msk [vmem:[#allocation2 + $0x6d] sm:$0xff] %vm410_vm3, %v3700_v43  ;;  %v707_v44 = vld [vmem:[#allocation2 + $0x3c] sm:$0xff]  ;;  %v291_v45 = vpop.f32.mrb[9].mxu0  ;;  %v706_v46 = vld [vmem:[#allocation2 + $0x34] sm:$0xff] }
 0x103   :  { %v739_v47 = vadd.f32 %v3750_v33, %v707_v44  ;;  %419 = vst.msk [vmem:[#allocation2 + $0x65] sm:$0xff] %vm410_vm3, %v291_v45  ;;  %v738_v48 = vadd.f32 %v706_v46, %v563_v34  ;;  %v3756_v49 = vpop.f32.mrb[8].mxu1 }
 0x104   :  { %v583_v50 = vpop.f32.mrb[9].mxu1 }
 0x105   :  { %771 = vst.msk [vmem:[#allocation2 + $0x3c] sm:$0xff] %vm410_vm3, %v739_v47  ;;  %770 = vst.msk [vmem:[#allocation2 + $0x34] sm:$0xff] %vm410_vm3, %v738_v48  ;;  %v3703_v51 = vpop.f32.mrb[10].mxu0 }
 0x106   :  { %422 = vst.msk [vmem:[#allocation2 + $0x85] sm:$0xff] %vm410_vm3, %v3703_v51  ;;  %v709_v52 = vld [vmem:[#allocation2 + $0x54] sm:$0xff]  ;;  %v301_v53 = vpop.f32.mrb[11].mxu0  ;;  %v708_v54 = vld [vmem:[#allocation2 + $0x4c] sm:$0xff] }
 0x107   :  { %v741_v55 = vadd.f32 %v3753_v41, %v709_v52  ;;  %421 = vst.msk [vmem:[#allocation2 + $0x7d] sm:$0xff] %vm410_vm3, %v301_v53  ;;  %v740_v56 = vadd.f32 %v708_v54, %v573_v42  ;;  %v3759_v57 = vpop.f32.mrb[10].mxu1 }
 0x108   :  { %v593_v58 = vpop.f32.mrb[11].mxu1 }
 0x109   :  { %773 = vst.msk [vmem:[#allocation2 + $0x54] sm:$0xff] %vm410_vm3, %v741_v55  ;;  %772 = vst.msk [vmem:[#allocation2 + $0x4c] sm:$0xff] %vm410_vm3, %v740_v56  ;;  %v3706_v59 = vpop.f32.mrb[12].mxu0 }
 0x10a   :  { %424 = vst.msk [vmem:[#allocation2 + $0x9d] sm:$0xff] %vm410_vm3, %v3706_v59  ;;  %v711_v60 = vld [vmem:[#allocation2 + $0x6c] sm:$0xff]  ;;  %v311_v61 = vpop.f32.mrb[13].mxu0  ;;  %v710_v62 = vld [vmem:[#allocation2 + $0x64] sm:$0xff] }
 0x10b   :  { %v743_v0 = vadd.f32 %v3756_v49, %v711_v60  ;;  %423 = vst.msk [vmem:[#allocation2 + $0x95] sm:$0xff] %vm410_vm3, %v311_v61  ;;  %v742_v1 = vadd.f32 %v710_v62, %v583_v50  ;;  %v3762_v2 = vpop.f32.mrb[12].mxu1 }
 0x10c   :  { %v603_v3 = vpop.f32.mrb[13].mxu1 }
 0x10d   :  { %775 = vst.msk [vmem:[#allocation2 + $0x6c] sm:$0xff] %vm410_vm3, %v743_v0  ;;  %774 = vst.msk [vmem:[#allocation2 + $0x64] sm:$0xff] %vm410_vm3, %v742_v1  ;;  %v3709_v4 = vpop.f32.mrb[14].mxu0 }
 0x10e   :  { %426 = vst.msk [vmem:[#allocation2 + $0xb5] sm:$0xff] %vm410_vm3, %v3709_v4  ;;  %v713_v5 = vld [vmem:[#allocation2 + $0x84] sm:$0xff]  ;;  %v321_v6 = vpop.f32.mrb[15].mxu0  ;;  %v712_v7 = vld [vmem:[#allocation2 + $0x7c] sm:$0xff] }
 0x10f   :  { %v745_v8 = vadd.f32 %v3759_v57, %v713_v5  ;;  %425 = vst.msk [vmem:[#allocation2 + $0xad] sm:$0xff] %vm410_vm3, %v321_v6  ;;  %v744_v9 = vadd.f32 %v712_v7, %v593_v58  ;;  %v3765_v10 = vpop.f32.mrb[14].mxu1 }
 0x110   :  { %v613_v11 = vpop.f32.mrb[15].mxu1 }
 0x111   :  { %777 = vst.msk [vmem:[#allocation2 + $0x84] sm:$0xff] %vm410_vm3, %v745_v8  ;;  %776 = vst.msk [vmem:[#allocation2 + $0x7c] sm:$0xff] %vm410_vm3, %v744_v9  ;;  %v3712_v12 = vpop.f32.mrb[16].mxu0 }
 0x112   :  { %428 = vst.msk [vmem:[#allocation2 + $0xcd] sm:$0xff] %vm410_vm3, %v3712_v12  ;;  %v715_v13 = vld [vmem:[#allocation2 + $0x9c] sm:$0xff]  ;;  %v331_v14 = vpop.f32.mrb[17].mxu0  ;;  %v714_v15 = vld [vmem:[#allocation2 + $0x94] sm:$0xff] }
 0x113   :  { %v747_v16 = vadd.f32 %v3762_v2, %v715_v13  ;;  %427 = vst.msk [vmem:[#allocation2 + $0xc5] sm:$0xff] %vm410_vm3, %v331_v14  ;;  %v746_v17 = vadd.f32 %v714_v15, %v603_v3  ;;  %v3768_v18 = vpop.f32.mrb[16].mxu1  ;;  %v1024_v14 = vld [vmem:[#allocation2 + $0xb] sm:$0xff] }
 0x114   :  { %v623_v19 = vpop.f32.mrb[17].mxu1 }
 0x115   :  { %779 = vst.msk [vmem:[#allocation2 + $0x9c] sm:$0xff] %vm410_vm3, %v747_v16  ;;  %778 = vst.msk [vmem:[#allocation2 + $0x94] sm:$0xff] %vm410_vm3, %v746_v17  ;;  %v3715_v20 = vpop.f32.mrb[18].mxu0 }
 0x116   :  { %430 = vst.msk [vmem:[#allocation2 + $0xe5] sm:$0xff] %vm410_vm3, %v3715_v20  ;;  %v717_v21 = vld [vmem:[#allocation2 + $0xb4] sm:$0xff]  ;;  %v341_v22 = vpop.f32.mrb[19].mxu0  ;;  %v716_v23 = vld [vmem:[#allocation2 + $0xac] sm:$0xff] }
 0x117   :  { %v749_v24 = vadd.f32 %v3765_v10, %v717_v21  ;;  %429 = vst.msk [vmem:[#allocation2 + $0xdd] sm:$0xff] %vm410_vm3, %v341_v22  ;;  %v748_v25 = vadd.f32 %v716_v23, %v613_v11  ;;  %v3771_v26 = vpop.f32.mrb[18].mxu1 }
 0x118   :  { %v633_v27 = vpop.f32.mrb[19].mxu1 }
 0x119   :  { %781 = vst.msk [vmem:[#allocation2 + $0xb4] sm:$0xff] %vm410_vm3, %v749_v24  ;;  %780 = vst.msk [vmem:[#allocation2 + $0xac] sm:$0xff] %vm410_vm3, %v748_v25  ;;  %v3718_v28 = vpop.f32.mrb[20].mxu0 }
 0x11a   :  { %432 = vst.msk [vmem:[#allocation2 + $0xfd] sm:$0xff] %vm410_vm3, %v3718_v28  ;;  %v719_v29 = vld [vmem:[#allocation2 + $0xcc] sm:$0xff]  ;;  %v351_v30 = vpop.f32.mrb[21].mxu0  ;;  %v718_v31 = vld [vmem:[#allocation2 + $0xc4] sm:$0xff] }
 0x11b   :  { %v751_v32 = vadd.f32 %v3768_v18, %v719_v29  ;;  %431 = vst.msk [vmem:[#allocation2 + $0xf5] sm:$0xff] %vm410_vm3, %v351_v30  ;;  %v750_v33 = vadd.f32 %v718_v31, %v623_v19  ;;  %v3774_v34 = vpop.f32.mrb[20].mxu1  ;;  %v1023_v19 = vld [vmem:[#allocation2 + $0x3] sm:$0xff]  ;;  %v1025_v31 = vld [vmem:[#allocation2 + $0x1b] sm:$0xff] }
 0x11c   :  { %v643_v35 = vpop.f32.mrb[21].mxu1 }
 0x11d   :  { %783 = vst.msk [vmem:[#allocation2 + $0xcc] sm:$0xff] %vm410_vm3, %v751_v32  ;;  %782 = vst.msk [vmem:[#allocation2 + $0xc4] sm:$0xff] %vm410_vm3, %v750_v33  ;;  %v3721_v36 = vpop.f32.mrb[22].mxu0 }
 0x11e   :  { %434 = vst.msk [vmem:[#allocation2 + $0x115] sm:$0xff] %vm410_vm3, %v3721_v36  ;;  %v721_v37 = vld [vmem:[#allocation2 + $0xe4] sm:$0xff]  ;;  %v361_v38 = vpop.f32.mrb[23].mxu0  ;;  %v720_v39 = vld [vmem:[#allocation2 + $0xdc] sm:$0xff] }
 0x11f   :  { %v753_v40 = vadd.f32 %v3771_v26, %v721_v37  ;;  %433 = vst.msk [vmem:[#allocation2 + $0x10d] sm:$0xff] %vm410_vm3, %v361_v38  ;;  %v752_v41 = vadd.f32 %v720_v39, %v633_v27  ;;  %v3777_v42 = vpop.f32.mrb[22].mxu1  ;;  %v1026_v26 = vld [vmem:[#allocation2 + $0x23] sm:$0xff]  ;;  %v1028_v38 = vld [vmem:[#allocation2 + $0x3b] sm:$0xff] }
 0x120   :  { %v653_v43 = vpop.f32.mrb[23].mxu1 }
 0x121   :  { %785 = vst.msk [vmem:[#allocation2 + $0xe4] sm:$0xff] %vm410_vm3, %v753_v40  ;;  %784 = vst.msk [vmem:[#allocation2 + $0xdc] sm:$0xff] %vm410_vm3, %v752_v41  ;;  %v3724_v44 = vpop.f32.mrb[24].mxu0  ;;  %v1027_v41 = vld [vmem:[#allocation2 + $0x33] sm:$0xff] }
 0x122   :  { %436 = vst.msk [vmem:[#allocation2 + $0x12d] sm:$0xff] %vm410_vm3, %v3724_v44  ;;  %v723_v45 = vld [vmem:[#allocation2 + $0xfc] sm:$0xff]  ;;  %v371_v46 = vpop.f32.mrb[25].mxu0  ;;  %v722_v47 = vld [vmem:[#allocation2 + $0xf4] sm:$0xff] }
 0x123   :  { %v755_v48 = vadd.f32 %v3774_v34, %v723_v45  ;;  %435 = vst.msk [vmem:[#allocation2 + $0x125] sm:$0xff] %vm410_vm3, %v371_v46  ;;  %v754_v49 = vadd.f32 %v722_v47, %v643_v35  ;;  %v3780_v50 = vpop.f32.mrb[24].mxu1 }
 0x124   :  { %v663_v51 = vpop.f32.mrb[25].mxu1 }
 0x125   :  { %787 = vst.msk [vmem:[#allocation2 + $0xfc] sm:$0xff] %vm410_vm3, %v755_v48  ;;  %786 = vst.msk [vmem:[#allocation2 + $0xf4] sm:$0xff] %vm410_vm3, %v754_v49  ;;  %v3727_v52 = vpop.f32.mrb[26].mxu0 }
 0x126   :  { %438 = vst.msk [vmem:[#allocation2 + $0x145] sm:$0xff] %vm410_vm3, %v3727_v52  ;;  %v725_v53 = vld [vmem:[#allocation2 + $0x114] sm:$0xff]  ;;  %v381_v54 = vpop.f32.mrb[27].mxu0  ;;  %v724_v55 = vld [vmem:[#allocation2 + $0x10c] sm:$0xff] }
 0x127   :  { %v757_v56 = vadd.f32 %v3777_v42, %v725_v53  ;;  %437 = vst.msk [vmem:[#allocation2 + $0x13d] sm:$0xff] %vm410_vm3, %v381_v54  ;;  %v756_v57 = vadd.f32 %v724_v55, %v653_v43  ;;  %v3783_v58 = vpop.f32.mrb[26].mxu1  ;;  %v4877_v42 = vld [vmem:[%s6314_s2] ss:$0 sm:$0xff]  ;;  %v1030_v54 = vld [vmem:[#allocation2 + $0x53] sm:$0xff] }
 0x128   :  { %v673_v59 = vpop.f32.mrb[27].mxu1 }
 0x129   :  { %789 = vst.msk [vmem:[#allocation2 + $0x114] sm:$0xff] %vm410_vm3, %v757_v56  ;;  %788 = vst.msk [vmem:[#allocation2 + $0x10c] sm:$0xff] %vm410_vm3, %v756_v57  ;;  %v3730_v60 = vpop.f32.mrb[28].mxu0 }
 0x12a   :  { %440 = vst.msk [vmem:[#allocation2 + $0x15d] sm:$0xff] %vm410_vm3, %v3730_v60  ;;  %v727_v61 = vld [vmem:[#allocation2 + $0x12c] sm:$0xff]  ;;  %v391_v62 = vpop.f32.mrb[29].mxu0  ;;  %v726_v0 = vld [vmem:[#allocation2 + $0x124] sm:$0xff] }
 0x12b   :  { %v759_v1 = vadd.f32 %v3780_v50, %v727_v61  ;;  %439 = vst.msk [vmem:[#allocation2 + $0x155] sm:$0xff] %vm410_vm3, %v391_v62  ;;  %v758_v2 = vadd.f32 %v726_v0, %v663_v51  ;;  %v3786_v3 = vpop.f32.mrb[28].mxu1 }
 0x12c   :  { %v683_v4 = vpop.f32.mrb[29].mxu1 }
 0x12d   :  { %791 = vst.msk [vmem:[#allocation2 + $0x12c] sm:$0xff] %vm410_vm3, %v759_v1  ;;  %790 = vst.msk [vmem:[#allocation2 + $0x124] sm:$0xff] %vm410_vm3, %v758_v2  ;;  %v3733_v5 = vpop.f32.mrb[30].mxu0  ;;  %v4897_v2 = vld [vmem:[%s6315_s3] sm:$0xff] }
 0x12e   :  { %442 = vst.msk [vmem:[#allocation2 + $0x175] sm:$0xff] %vm410_vm3, %v3733_v5  ;;  %v729_v6 = vld [vmem:[#allocation2 + $0x144] sm:$0xff]  ;;  %v401_v7 = vpop.f32.mrb[31].mxu0  ;;  %v728_v8 = vld [vmem:[#allocation2 + $0x13c] sm:$0xff] }
 0x12f   :  { %v761_v9 = vadd.f32 %v3783_v58, %v729_v6  ;;  %441 = vst.msk [vmem:[#allocation2 + $0x16d] sm:$0xff] %vm410_vm3, %v401_v7  ;;  %v760_v10 = vadd.f32 %v728_v8, %v673_v59  ;;  %v3789_v11 = vpop.f32.mrb[30].mxu1  ;;  %v1029_v58 = vld [vmem:[#allocation2 + $0x4b] sm:$0xff] }
 0x130   :  { %v693_v12 = vpop.f32.mrb[31].mxu1 }
 0x131   :  { %793 = vst.msk [vmem:[#allocation2 + $0x144] sm:$0xff] %vm410_vm3, %v761_v9  ;;  %792 = vst.msk [vmem:[#allocation2 + $0x13c] sm:$0xff] %vm410_vm3, %v760_v10  ;;  %v3800_v13 = vpop.f32.mrb[32].mxu0 }
 0x132   :  { %v731_v15 = vld [vmem:[#allocation2 + $0x15c] sm:$0xff]  ;;  %v1056_v16 = vadd.f32 %v3800_v13, %v1024_v14  ;;  %v730_v17 = vld [vmem:[#allocation2 + $0x154] sm:$0xff]  ;;  %v864_v18 = vpop.f32.mrb[33].mxu0  ;;  %v1032_v13 = vld [vmem:[#allocation2 + $0x6b] sm:$0xff] }
 0x133   :  { %v763_v20 = vadd.f32 %v3786_v3, %v731_v15  ;;  %v762_v21 = vadd.f32 %v730_v17, %v683_v4  ;;  %v1055_v22 = vadd.f32 %v1023_v19, %v864_v18  ;;  %v3856_v23 = vpop.f32.mrb[32].mxu1  ;;  %v4912_v14 = vld [vmem:[%s6315_s3 + $0x10] sm:$0x7f]  ;;  %v1031_v19 = vld [vmem:[#allocation2 + $0x63] sm:$0xff] }
 0x134   :  { %1088 = vst.msk [vmem:[#allocation2 + $0xb] sm:$0xff] %vm410_vm3, %v1056_v16  ;;  %v1834_v24 = vpop.f32.mrb[33].mxu1 }
 0x135   :  { %795 = vst.msk [vmem:[#allocation2 + $0x15c] sm:$0xff] %vm410_vm3, %v763_v20  ;;  %794 = vst.msk [vmem:[#allocation2 + $0x154] sm:$0xff] %vm410_vm3, %v762_v21  ;;  %v3803_v25 = vpop.f32.mrb[34].mxu0  ;;  %v4919_v20 = vld [vmem:[%s6315_s3 + $0x8] sm:$0xff] }
 0x136   :  { %1087 = vst.msk [vmem:[#allocation2 + $0x3] sm:$0xff] %vm410_vm3, %v1055_v22  ;;  %v733_v27 = vld [vmem:[#allocation2 + $0x174] sm:$0xff]  ;;  %v1058_v28 = vadd.f32 %v3803_v25, %v1026_v26  ;;  %v732_v29 = vld [vmem:[#allocation2 + $0x16c] sm:$0xff]  ;;  %v874_v30 = vpop.f32.mrb[35].mxu0 }
 0x137   :  { %v765_v32 = vadd.f32 %v3789_v11, %v733_v27  ;;  %v764_v33 = vadd.f32 %v732_v29, %v693_v12  ;;  %v1057_v34 = vadd.f32 %v1025_v31, %v874_v30  ;;  %v3859_v35 = vpop.f32.mrb[34].mxu1 }
 0x138   :  { %1090 = vst.msk [vmem:[#allocation2 + $0x23] sm:$0xff] %vm410_vm3, %v1058_v28  ;;  %v1844_v36 = vpop.f32.mrb[35].mxu1 }
 0x139   :  { %797 = vst.msk [vmem:[#allocation2 + $0x174] sm:$0xff] %vm410_vm3, %v765_v32  ;;  %796 = vst.msk [vmem:[#allocation2 + $0x16c] sm:$0xff] %vm410_vm3, %v764_v33  ;;  %v3806_v37 = vpop.f32.mrb[36].mxu0 }
 0x13a   :  { %1089 = vst.msk [vmem:[#allocation2 + $0x1b] sm:$0xff] %vm410_vm3, %v1057_v34  ;;  %v1060_v39 = vadd.f32 %v3806_v37, %v1028_v38  ;;  %v884_v40 = vpop.f32.mrb[37].mxu0 }
 0x13b   :  { %v1121_v43 = vld [vmem:[#allocation2 + $0x10] sm:$0x7f]  ;;  %v1059_v45 = vadd.f32 %v1027_v41, %v884_v40  ;;  %v4879_v46 = vpop.f32.mrb[36].mxu1  ;;  %v1034_v40 = vld [vmem:[#allocation2 + $0x83] sm:$0xff] }
 0x13c   :  { %v1169_v44 = vld [vmem:[#allocation2 + $0x11] sm:$0x7f]  ;;  %1092 = vst.msk [vmem:[#allocation2 + $0x3b] sm:$0xff] %vm410_vm3, %v1060_v39  ;;  %v4884_v50 = vpop.f32.mrb[37].mxu1 }
 0x13d   :  { %2041 = vst.msk [vmem:[#allocation2 + $0x15] sm:$0x7] %vm460_vm2, %v6318_v63  ;;  %v1119_v47 = vld [vmem:[#allocation2] sm:$0xff]  ;;  %v1120_v48 = vld [vmem:[#allocation2 + $0x8] sm:$0xff]  ;;  %v1217_v51 = vmax.f32 %v1121_v43, %v1169_v44  ;;  %v3809_v53 = vpop.f32.mrb[38].mxu0 }
 0x13e   :  { %v1167_v49 = vld [vmem:[#allocation2 + $0x1] sm:$0xff]  ;;  %v1168_v52 = vld [vmem:[#allocation2 + $0x9] sm:$0xff]  ;;  %1091 = vst.msk [vmem:[#allocation2 + $0x33] sm:$0xff] %vm410_vm3, %v1059_v45  ;;  %v1062_v56 = vadd.f32 %v3809_v53, %v1030_v54  ;;  %v894_v57 = vpop.f32.mrb[39].mxu0 }
 0x13f   :  { %2025 = vst.msk [vmem:[#allocation2] sm:$0x1f] %vm443_vm1, %v6318_v63  ;;  %v1215_v55 = vmax.f32 %v1119_v47, %v1167_v49  ;;  %v1216_v59 = vmax.f32 %v1120_v48, %v1168_v52  ;;  %v1271_v60 = vadd.f32 %v4877_v42, %v1217_v51  ;;  %v1124_v61 = vld [vmem:[#allocation2 + $0x28] sm:$0x7f]  ;;  %v1061_v0 = vadd.f32 %v1029_v58, %v894_v57  ;;  %v4892_v1 = vpop.f32.mrb[38].mxu1  ;;  %v1033_v49 = vld [vmem:[#allocation2 + $0x7b] sm:$0xff] }
 0x140   :  { %1994 = vst.msk [vmem:[#allocation2 + $0xd] sm:$0xff] %vm410_vm3, %v3856_v23  ;;  %1993 = vst.msk [vmem:[#allocation2 + $0x5] sm:$0xff] %vm410_vm3, %v1834_v24  ;;  %v1172_v62 = vld [vmem:[#allocation2 + $0x29] sm:$0x7f]  ;;  %v4903_v7 = vpop.f32.mrb[39].mxu1 }
 0x141   :  { %v1269_v3 = vadd.f32 %v4877_v42, %v1215_v55  ;;  %2042 = vst.msk [vmem:[#allocation2 + $0x2d] sm:$0x7] %vm460_vm2, %v6318_v63  ;;  %v1122_v4 = vld [vmem:[#allocation2 + $0x18] sm:$0xff]  ;;  %v1123_v5 = vld [vmem:[#allocation2 + $0x20] sm:$0xff]  ;;  %v1220_v8 = vmax.f32 %v1124_v61, %v1172_v62  ;;  %v1270_v9 = vadd.f32 %v4877_v42, %v1216_v59  ;;  %v1319_v10 = vmax.f32 %v1271_v60, 0.0  ;;  %v3812_v12 = vpop.f32.mrb[40].mxu0 }
 0x142   :  { %v1170_v6 = vld [vmem:[#allocation2 + $0x19] sm:$0xff]  ;;  %1094 = vst.msk [vmem:[#allocation2 + $0x53] sm:$0xff] %vm410_vm3, %v1062_v56  ;;  %v1171_v11 = vld [vmem:[#allocation2 + $0x21] sm:$0xff]  ;;  %1093 = vst.msk [vmem:[#allocation2 + $0x4b] sm:$0xff] %vm410_vm3, %v1061_v0  ;;  %v1064_v17 = vadd.f32 %v3812_v12, %v1032_v13  ;;  %v904_v18 = vpop.f32.mrb[41].mxu0 }
 0x143   :  { %2026 = vst.msk [vmem:[#allocation2 + $0x18] sm:$0x1f] %vm443_vm1, %v6318_v63  ;;  %v1218_v15 = vmax.f32 %v1122_v4, %v1170_v6  ;;  %v1317_v16 = vmax.f32 %v1269_v3, 0.0  ;;  %v1219_v21 = vmax.f32 %v1123_v5, %v1171_v11  ;;  %v1274_v22 = vadd.f32 %v4877_v42, %v1220_v8  ;;  %v1127_v24 = vld [vmem:[#allocation2 + $0x40] sm:$0x7f]  ;;  %v4922_v27 = vpop.f32.mrb[40].mxu1 }
 0x144   :  { %1996 = vst.msk [vmem:[#allocation2 + $0x25] sm:$0xff] %vm410_vm3, %v3859_v35  ;;  %1995 = vst.msk [vmem:[#allocation2 + $0x1d] sm:$0xff] %vm410_vm3, %v1844_v36  ;;  %v1318_v23 = vmax.f32 %v1270_v9, 0.0  ;;  %v1175_v25 = vld [vmem:[#allocation2 + $0x41] sm:$0x7f]  ;;  %v1063_v26 = vadd.f32 %v1031_v19, %v904_v18  ;;  %v4929_v33 = vpop.f32.mrb[41].mxu1  ;;  %v1367_v37 = vmul.f32 %v1319_v10, %v4912_v14 }
 0x145   :  { %v1272_v28 = vadd.f32 %v4877_v42, %v1218_v15  ;;  %v1365_v29 = vmul.f32 %v1317_v16, %v4897_v2  ;;  %2043 = vst.msk [vmem:[#allocation2 + $0x45] sm:$0x7] %vm460_vm2, %v6318_v63  ;;  %v1125_v30 = vld [vmem:[#allocation2 + $0x30] sm:$0xff]  ;;  %v1126_v31 = vld [vmem:[#allocation2 + $0x38] sm:$0xff]  ;;  %v1223_v34 = vmax.f32 %v1127_v24, %v1175_v25  ;;  %v1273_v35 = vadd.f32 %v4877_v42, %v1219_v21  ;;  %v3815_v39 = vpop.f32.mrb[42].mxu0 }
 0x146   :  { %v1173_v32 = vld [vmem:[#allocation2 + $0x31] sm:$0xff]  ;;  %1096 = vst.msk [vmem:[#allocation2 + $0x6b] sm:$0xff] %vm410_vm3, %v1064_v17  ;;  %v1322_v36 = vmax.f32 %v1274_v22, 0.0  ;;  %v1174_v38 = vld [vmem:[#allocation2 + $0x39] sm:$0xff]  ;;  %1095 = vst.msk [vmem:[#allocation2 + $0x63] sm:$0xff] %vm410_vm3, %v1063_v26  ;;  %v1366_v44 = vmul.f32 %v1318_v23, %v4919_v20  ;;  %v1066_v47 = vadd.f32 %v3815_v39, %v1034_v40  ;;  %v914_v48 = vpop.f32.mrb[43].mxu0 }
 0x147   :  { %2027 = vst.msk [vmem:[#allocation2 + $0x30] sm:$0x1f] %vm443_vm1, %v6318_v63  ;;  %v1221_v41 = vmax.f32 %v1125_v30, %v1173_v32  ;;  %v1320_v43 = vmax.f32 %v1272_v28, 0.0  ;;  %v4938_v45 = vsel %vm410_vm3, %v1365_v29, 0.0  ;;  %v1222_v51 = vmax.f32 %v1126_v31, %v1174_v38  ;;  %v4945_v57 = vpop.f32.mrb[42].mxu1  ;;  %v1036_v9 = vld [vmem:[#allocation2 + $0x9b] sm:$0xff] }
 0x148   :  { %1998 = vst.msk [vmem:[#allocation2 + $0x3d] sm:$0xff] %vm410_vm3, %v4879_v46  ;;  %1997 = vst.msk [vmem:[#allocation2 + $0x35] sm:$0xff] %vm410_vm3, %v4884_v50  ;;  %v1277_v52 = vadd.f32 %v4877_v42, %v1223_v34  ;;  %v1321_v53 = vmax.f32 %v1273_v35, 0.0  ;;  %v1065_v56 = vadd.f32 %v1033_v49, %v914_v48  ;;  %v4950_v46 = vmul.f32 %v1322_v36, %v4912_v14  ;;  %v4955_v62 = vpop.f32.mrb[43].mxu1  ;;  %v1035_v17 = vld [vmem:[#allocation2 + $0x93] sm:$0xff]  ;;  %v1037_v49 = vld [vmem:[#allocation2 + $0xab] sm:$0xff] }
 0x149   :  { %v1130_v54 = vld [vmem:[#allocation2 + $0x58] sm:$0x7f]  ;;  %v1275_v58 = vadd.f32 %v4877_v42, %v1221_v41  ;;  %v1368_v59 = vmul.f32 %v1320_v43, %v4897_v2  ;;  %v1128_v50 = vld [vmem:[#allocation2 + $0x48] sm:$0xff]  ;;  %v1129_v60 = vld [vmem:[#allocation2 + $0x50] sm:$0xff]  ;;  %1098 = vst.msk [vmem:[#allocation2 + $0x83] sm:$0xff] %vm410_vm3, %v1066_v47  ;;  %v1276_v3 = vadd.f32 %v4877_v42, %v1222_v51  ;;  %v3818_v8 = vpop.f32.mrb[44].mxu0 }
 0x14a   :  { %v1178_v55 = vld [vmem:[#allocation2 + $0x59] sm:$0x7f]  ;;  %v1176_v61 = vld [vmem:[#allocation2 + $0x49] sm:$0xff]  ;;  %v1325_v4 = vmax.f32 %v1277_v52, 0.0  ;;  %v4959_v5 = vmul.f32 %v1321_v53, %v4919_v20  ;;  %v1177_v6 = vld [vmem:[#allocation2 + $0x51] sm:$0xff]  ;;  %1097 = vst.msk [vmem:[#allocation2 + $0x7b] sm:$0xff] %vm410_vm3, %v1065_v56  ;;  %v1068_v15 = vadd.f32 %v3818_v8, %v1036_v9 }
 0x14b   :  { %2044 = vst.msk [vmem:[#allocation2 + $0x5d] sm:$0x7] %vm460_vm2, %v6318_v63  ;;  %v1226_v0 = vmax.f32 %v1130_v54, %v1178_v55  ;;  %v1224_v10 = vmax.f32 %v1128_v50, %v1176_v61  ;;  %v1323_v11 = vmax.f32 %v1275_v58, 0.0  ;;  %v1414_v12 = vsel %vm410_vm3, %v1366_v44, 0.0  ;;  %v924_v16 = vpop.f32.mrb[45].mxu0  ;;  %v4973_v25 = vpop.f32.mrb[44].mxu1 }
 0x14c   :  { %2028 = vst.msk [vmem:[#allocation2 + $0x48] sm:$0x1f] %vm443_vm1, %v6318_v63  ;;  %v4966_v13 = vsel %vm1416_vm4, %v1367_v37, 0.0  ;;  %v1225_v18 = vmax.f32 %v1129_v60, %v1177_v6  ;;  %v1324_v21 = vmax.f32 %v1276_v3, 0.0  ;;  %v1067_v24 = vadd.f32 %v1035_v17, %v924_v16  ;;  %v4985_v31 = vpop.f32.mrb[45].mxu1  ;;  %v1038_v39 = vld [vmem:[#allocation2 + $0xb3] sm:$0xff] }
 0x14d   :  { %2000 = vst.msk [vmem:[#allocation2 + $0x55] sm:$0xff] %vm410_vm3, %v4892_v1  ;;  %1999 = vst.msk [vmem:[#allocation2 + $0x4d] sm:$0xff] %vm410_vm3, %v4903_v7  ;;  %v1280_v19 = vadd.f32 %v4877_v42, %v1226_v0  ;;  %v1133_v22 = vld [vmem:[#allocation2 + $0x70] sm:$0x7f]  ;;  %v1278_v26 = vadd.f32 %v4877_v42, %v1224_v10  ;;  %v4977_v28 = vmul.f32 %v1323_v11, %v4897_v2  ;;  %v1131_v7 = vld [vmem:[#allocation2 + $0x60] sm:$0xff]  ;;  %v3821_v38 = vpop.f32.mrb[46].mxu0 }
 0x14e   :  { %v1181_v23 = vld [vmem:[#allocation2 + $0x71] sm:$0x7f]  ;;  %v4980_v1 = vmul.f32 %v1325_v4, %v4912_v14  ;;  %v1132_v29 = vld [vmem:[#allocation2 + $0x68] sm:$0xff]  ;;  %1100 = vst.msk [vmem:[#allocation2 + $0x9b] sm:$0xff] %vm410_vm3, %v1068_v15  ;;  %v1279_v34 = vadd.f32 %v4877_v42, %v1225_v18  ;;  %v4989_v36 = vmul.f32 %v1324_v21, %v4919_v20  ;;  %1099 = vst.msk [vmem:[#allocation2 + $0x93] sm:$0xff] %vm410_vm3, %v1067_v24  ;;  %v4996_v44 = vsel %vm410_vm3, %v1368_v59, 0.0 }
 0x14f   :  { %2045 = vst.msk [vmem:[#allocation2 + $0x75] sm:$0x7] %vm460_vm2, %v6318_v63  ;;  %v1179_v30 = vld [vmem:[#allocation2 + $0x61] sm:$0xff]  ;;  %v1229_v32 = vmax.f32 %v1133_v22, %v1181_v23  ;;  %v1328_v35 = vmax.f32 %v1280_v19, 0.0  ;;  %v1180_v37 = vld [vmem:[#allocation2 + $0x69] sm:$0xff]  ;;  %v1326_v41 = vmax.f32 %v1278_v26, 0.0  ;;  %v1415_v43 = vadd.f32 %v1414_v12, %v4938_v45 }
 0x150   :  { %2029 = vst.msk [vmem:[#allocation2 + $0x60] sm:$0x1f] %vm443_vm1, %v6318_v63  ;;  %v1227_v40 = vmax.f32 %v1131_v7, %v1179_v30  ;;  %v1070_v47 = vadd.f32 %v3821_v38, %v1038_v39  ;;  %v934_v48 = vpop.f32.mrb[47].mxu0  ;;  %v1228_v51 = vmax.f32 %v1132_v29, %v1180_v37  ;;  %v1327_v53 = vmax.f32 %v1279_v34, 0.0  ;;  %v1136_v54 = vld [vmem:[#allocation2 + $0x88] sm:$0x7f] }
 0x151   :  { %2002 = vst.msk [vmem:[#allocation2 + $0x6d] sm:$0xff] %vm410_vm3, %v4922_v27  ;;  %2001 = vst.msk [vmem:[#allocation2 + $0x65] sm:$0xff] %vm410_vm3, %v4929_v33  ;;  %v1283_v52 = vadd.f32 %v4877_v42, %v1229_v32  ;;  %v1184_v55 = vld [vmem:[#allocation2 + $0x89] sm:$0x7f]  ;;  %v1069_v56 = vadd.f32 %v1037_v49, %v934_v48  ;;  %v5003_v45 = vpop.f32.mrb[46].mxu1  ;;  %v5007_v59 = vmul.f32 %v1326_v41, %v4897_v2  ;;  %v1134_v33 = vld [vmem:[#allocation2 + $0x78] sm:$0xff] }
 0x152   :  { %v1281_v58 = vadd.f32 %v4877_v42, %v1227_v40  ;;  %v5010_v27 = vmul.f32 %v1328_v35, %v4912_v14  ;;  %2046 = vst.msk [vmem:[#allocation2 + $0x8d] sm:$0x7] %vm460_vm2, %v6318_v63  ;;  %v1135_v50 = vld [vmem:[#allocation2 + $0x80] sm:$0xff]  ;;  %v5015_v61 = vpop.f32.mrb[47].mxu1  ;;  %v1232_v0 = vmax.f32 %v1136_v54, %v1184_v55  ;;  %v1282_v3 = vadd.f32 %v4877_v42, %v1228_v51  ;;  %v3824_v9 = vpop.f32.mrb[48].mxu0  ;;  %v1040_v10 = vld [vmem:[#allocation2 + $0xcb] sm:$0xff] }
 0x153   :  { %v1182_v60 = vld [vmem:[#allocation2 + $0x79] sm:$0xff]  ;;  %1102 = vst.msk [vmem:[#allocation2 + $0xb3] sm:$0xff] %vm410_vm3, %v1070_v47  ;;  %v1331_v4 = vmax.f32 %v1283_v52, 0.0  ;;  %v5019_v6 = vmul.f32 %v1327_v53, %v4919_v20  ;;  %v1183_v8 = vld [vmem:[#allocation2 + $0x81] sm:$0xff]  ;;  %1101 = vst.msk [vmem:[#allocation2 + $0xab] sm:$0xff] %vm410_vm3, %v1069_v56  ;;  %v5025_v15 = vadd.f32 %v4966_v13, %v1415_v43  ;;  %v1426_v16 = vsel %vm410_vm3, %v4959_v5, 0.0 }
 0x154   :  { %2030 = vst.msk [vmem:[#allocation2 + $0x78] sm:$0x1f] %vm443_vm1, %v6318_v63  ;;  %v1230_v11 = vmax.f32 %v1134_v33, %v1182_v60  ;;  %v1329_v12 = vmax.f32 %v1281_v58, 0.0  ;;  %v1072_v17 = vadd.f32 %v3824_v9, %v1040_v10  ;;  %v944_v18 = vpop.f32.mrb[49].mxu0  ;;  %v1039_v19 = vld [vmem:[#allocation2 + $0xc3] sm:$0xff]  ;;  %v1231_v21 = vmax.f32 %v1135_v50, %v1183_v8  ;;  %v5034_v7 = vpop.f32.mrb[48].mxu1 }
 0x155   :  { %2004 = vst.msk [vmem:[#allocation2 + $0x85] sm:$0xff] %vm410_vm3, %v4945_v57  ;;  %2003 = vst.msk [vmem:[#allocation2 + $0x7d] sm:$0xff] %vm410_vm3, %v4955_v62  ;;  %v1286_v22 = vadd.f32 %v4877_v42, %v1232_v0  ;;  %v1330_v23 = vmax.f32 %v1282_v3, 0.0  ;;  %v1139_v24 = vld [vmem:[#allocation2 + $0xa0] sm:$0x7f]  ;;  %v1071_v13 = vadd.f32 %v1039_v19, %v944_v18  ;;  %v5041_v57 = vmul.f32 %v1331_v4, %v4912_v14  ;;  %v1137_v62 = vld [vmem:[#allocation2 + $0x90] sm:$0xff] }
 0x156   :  { %v1187_v26 = vld [vmem:[#allocation2 + $0xa1] sm:$0x7f]  ;;  %v1284_v5 = vadd.f32 %v4877_v42, %v1230_v11  ;;  %v5038_v29 = vmul.f32 %v1329_v12, %v4897_v2  ;;  %v1138_v30 = vld [vmem:[#allocation2 + $0x98] sm:$0xff]  ;;  %1104 = vst.msk [vmem:[#allocation2 + $0xcb] sm:$0xff] %vm410_vm3, %v1072_v17  ;;  %v5046_v34 = vpop.f32.mrb[49].mxu1  ;;  %v1285_v37 = vadd.f32 %v4877_v42, %v1231_v21  ;;  %v3827_v41 = vpop.f32.mrb[50].mxu0  ;;  %v5057_v51 = vadd.f32 %v1426_v16, %v4996_v44 }
 0x157   :  { %2047 = vst.msk [vmem:[#allocation2 + $0xa5] sm:$0x7] %vm460_vm2, %v6318_v63  ;;  %v1185_v32 = vld [vmem:[#allocation2 + $0x91] sm:$0xff]  ;;  %v1235_v35 = vmax.f32 %v1139_v24, %v1187_v26  ;;  %v1334_v38 = vmax.f32 %v1286_v22, 0.0  ;;  %v5050_v39 = vmul.f32 %v1330_v23, %v4919_v20  ;;  %v1186_v40 = vld [vmem:[#allocation2 + $0x99] sm:$0xff]  ;;  %v1042_v43 = vld [vmem:[#allocation2 + $0xe3] sm:$0xff] }
 0x158   :  { %2031 = vst.msk [vmem:[#allocation2 + $0x90] sm:$0x1f] %vm443_vm1, %v6318_v63  ;;  %v1233_v47 = vmax.f32 %v1137_v62, %v1185_v32  ;;  %v1332_v48 = vmax.f32 %v1284_v5, 0.0  ;;  %v1419_v49 = vrot.slane %v5025_v15, 4  ;;  %v1074_v52 = vadd.f32 %v3827_v41, %v1042_v43  ;;  %v954_v53 = vpop.f32.mrb[51].mxu0  ;;  %v1041_v54 = vld [vmem:[#allocation2 + $0xdb] sm:$0xff] }
 0x159   :  { %1103 = vst.msk [vmem:[#allocation2 + $0xc3] sm:$0xff] %vm410_vm3, %v1071_v13  ;;  %2006 = vst.msk [vmem:[#allocation2 + $0x9d] sm:$0xff] %vm410_vm3, %v4973_v25  ;;  %v1234_v55 = vmax.f32 %v1138_v30, %v1186_v40  ;;  %v1289_v56 = vadd.f32 %v4877_v42, %v1235_v35  ;;  %v1333_v58 = vmax.f32 %v1285_v37, 0.0  ;;  %v1073_v60 = vadd.f32 %v1041_v54, %v954_v53  ;;  %v5064_v0 = vpop.f32.mrb[50].mxu1  ;;  %v3830_v18 = vpop.f32.mrb[52].mxu0  ;;  %v1044_v19 = vld [vmem:[#allocation2 + $0xfb] sm:$0xff] }
 0x15a   :  { %2005 = vst.msk [vmem:[#allocation2 + $0x95] sm:$0xff] %vm410_vm3, %v4985_v31  ;;  %v1142_v33 = vld [vmem:[#allocation2 + $0xb8] sm:$0x7f]  ;;  %v1287_v44 = vadd.f32 %v4877_v42, %v1233_v47  ;;  %v5068_v3 = vmul.f32 %v1332_v48, %v4897_v2  ;;  %v5071_v25 = vmul.f32 %v1334_v38, %v4912_v14  ;;  %v1140_v31 = vld [vmem:[#allocation2 + $0xa8] sm:$0xff]  ;;  %v1141_v4 = vld [vmem:[#allocation2 + $0xb0] sm:$0xff]  ;;  %v5076_v9 = vpop.f32.mrb[51].mxu1  ;;  %v1420_v23 = vadd.f32 %v1419_v49, %v5025_v15 }
 0x15b   :  { %v1190_v50 = vld [vmem:[#allocation2 + $0xb9] sm:$0x7f]  ;;  %v1188_v8 = vld [vmem:[#allocation2 + $0xa9] sm:$0xff]  ;;  %1106 = vst.msk [vmem:[#allocation2 + $0xe3] sm:$0xff] %vm410_vm3, %v1074_v52  ;;  %v1288_v11 = vadd.f32 %v4877_v42, %v1234_v55  ;;  %v1337_v12 = vmax.f32 %v1289_v56, 0.0  ;;  %v5080_v16 = vmul.f32 %v1333_v58, %v4919_v20  ;;  %v1189_v17 = vld [vmem:[#allocation2 + $0xb1] sm:$0xff]  ;;  %v1076_v26 = vadd.f32 %v3830_v18, %v1044_v19 }
 0x15c   :  { %2048 = vst.msk [vmem:[#allocation2 + $0xbd] sm:$0x7] %vm460_vm2, %v6318_v63  ;;  %v1238_v10 = vmax.f32 %v1142_v33, %v1190_v50  ;;  %v1236_v21 = vmax.f32 %v1140_v31, %v1188_v8  ;;  %v1335_v22 = vmax.f32 %v1287_v44, 0.0  ;;  %v1428_v24 = vsel %vm1416_vm4, %v4950_v46, 0.0  ;;  %v964_v13 = vpop.f32.mrb[53].mxu0  ;;  %v1043_v5 = vld [vmem:[#allocation2 + $0xf3] sm:$0xff] }
 0x15d   :  { %2032 = vst.msk [vmem:[#allocation2 + $0xa8] sm:$0x1f] %vm443_vm1, %v6318_v63  ;;  %v1237_v62 = vmax.f32 %v1141_v4, %v1189_v17  ;;  %v1336_v32 = vmax.f32 %v1288_v11, 0.0  ;;  %v5093_v35 = vld [vmem:[#allocation2 + $0xd0] sm:$0x7f]  ;;  %v1075_v15 = vadd.f32 %v1043_v5, %v964_v13  ;;  %v5097_v38 = vpop.f32.mrb[52].mxu1  ;;  %v1429_v33 = vadd.f32 %v1428_v24, %v5057_v51 }
 0x15e   :  { %1105 = vst.msk [vmem:[#allocation2 + $0xdb] sm:$0xff] %vm410_vm3, %v1073_v60  ;;  %2008 = vst.msk [vmem:[#allocation2 + $0xb5] sm:$0xff] %vm410_vm3, %v5003_v45  ;;  %v1292_v30 = vadd.f32 %v4877_v42, %v1238_v10  ;;  %v5095_v37 = vld [vmem:[#allocation2 + $0xd1] sm:$0x7f]  ;;  %v1290_v46 = vadd.f32 %v4877_v42, %v1236_v21  ;;  %v5101_v45 = vmul.f32 %v1335_v22, %v4897_v2  ;;  %v5115_v47 = vpop.f32.mrb[53].mxu1  ;;  %v1421_v53 = vrot.slane %v1420_v23, 2 }
 0x15f   :  { %2007 = vst.msk [vmem:[#allocation2 + $0xad] sm:$0xff] %vm410_vm3, %v5015_v61  ;;  %v5104_v61 = vmul.f32 %v1337_v12, %v4912_v14  ;;  %1108 = vst.msk [vmem:[#allocation2 + $0xfb] sm:$0xff] %vm410_vm3, %v1076_v26  ;;  %v1291_v48 = vadd.f32 %v4877_v42, %v1237_v62  ;;  %v5119_v52 = vmul.f32 %v1336_v32, %v4919_v20  ;;  %v3833_v55 = vpop.f32.mrb[54].mxu0  ;;  %v1046_v56 = vld [vmem:[#allocation2 + $0x113] sm:$0xff]  ;;  %v1436_v42 = vsel %vm410_vm3, %v4977_v28, 0.0  ;;  %v1045_v31 = vld [vmem:[#allocation2 + $0x10b] sm:$0xff] }
 0x160   :  { %2049 = vst.msk [vmem:[#allocation2 + $0xd5] sm:$0x7] %vm460_vm2, %v6318_v63  ;;  %v5108_v40 = vld [vmem:[#allocation2 + $0xc0] sm:$0xff]  ;;  %v5110_v41 = vld [vmem:[#allocation2 + $0xc8] sm:$0xff]  ;;  %v1340_v49 = vmax.f32 %v1292_v30, 0.0  ;;  %v1338_v58 = vmax.f32 %v1290_v46, 0.0  ;;  %v1078_v60 = vadd.f32 %v3833_v55, %v1046_v56  ;;  %v1422_v51 = vadd.f32 %v1421_v53, %v1420_v23 }
 0x161   :  { %v5112_v43 = vld [vmem:[#allocation2 + $0xc1] sm:$0xff]  ;;  %v5121_v54 = vld [vmem:[#allocation2 + $0xc9] sm:$0xff]  ;;  %1107 = vst.msk [vmem:[#allocation2 + $0xf3] sm:$0xff] %vm410_vm3, %v1075_v15  ;;  %v1437_v50 = vsel %vm410_vm3, %v4989_v36, 0.0  ;;  %v974_v44 = vpop.f32.mrb[55].mxu0  ;;  %v1339_v4 = vmax.f32 %v1291_v48, 0.0 }
 0x162   :  { %2033 = vst.msk [vmem:[#allocation2 + $0xc0] sm:$0x1f] %vm443_vm1, %v6318_v63  ;;  %v5136_v8 = vmul.f32 %v1340_v49, %v4912_v14  ;;  %v5138_v10 = vld [vmem:[#allocation2 + $0xe8] sm:$0x7f]  ;;  %v1077_v11 = vadd.f32 %v1045_v31, %v974_v44  ;;  %v5142_v36 = vpop.f32.mrb[54].mxu1  ;;  %v1430_v12 = vrot.slane %v1429_v33, 4 }
 0x163   :  { %2010 = vst.msk [vmem:[#allocation2 + $0xcd] sm:$0xff] %vm410_vm3, %v5034_v7  ;;  %2009 = vst.msk [vmem:[#allocation2 + $0xc5] sm:$0xff] %vm410_vm3, %v5046_v34  ;;  %v5140_v28 = vld [vmem:[#allocation2 + $0xe9] sm:$0x7f]  ;;  %v5145_v7 = vmul.f32 %v1338_v58, %v4897_v2  ;;  %v1438_v34 = vadd.f32 %v1437_v50, %v1436_v42  ;;  %v5156_v19 = vpop.f32.mrb[55].mxu1  ;;  %v5159_v21 = vmul.f32 %v1339_v4, %v4919_v20  ;;  %v1423_v2 = vrot.slane %v1422_v51, 1 }
 0x164   :  { %2050 = vst.msk [vmem:[#allocation2 + $0xed] sm:$0x7] %vm460_vm2, %v6318_v63  ;;  %v1439_v22 = vsel %vm1416_vm4, %v4980_v1, 0.0  ;;  %v3836_v26 = vpop.f32.mrb[56].mxu0  ;;  %v1048_v13 = vld [vmem:[#allocation2 + $0x12b] sm:$0xff]  ;;  %v1431_v5 = vadd.f32 %v1430_v12, %v1429_v33  ;;  %v1447_v62 = vsel %vm410_vm3, %v5007_v59, 0.0 }
 0x165   :  { %v5149_v17 = vld [vmem:[#allocation2 + $0xd8] sm:$0xff]  ;;  %v5151_v14 = vld [vmem:[#allocation2 + $0xe0] sm:$0xff]  ;;  %1110 = vst.msk [vmem:[#allocation2 + $0x113] sm:$0xff] %vm410_vm3, %v1078_v60  ;;  %1109 = vst.msk [vmem:[#allocation2 + $0x10b] sm:$0xff] %vm410_vm3, %v1077_v11  ;;  %v1440_v20 = vadd.f32 %v1439_v22, %v1438_v34  ;;  %v1448_v1 = vsel %vm410_vm3, %v5019_v6, 0.0  ;;  %v1080_v30 = vadd.f32 %v3836_v26, %v1048_v13  ;;  %v984_v32 = vpop.f32.mrb[57].mxu0  ;;  %v5178_v46 = vadd.f32 %v1423_v2, %v1422_v51 }
 0x166   :  { %v5153_v18 = vld [vmem:[#allocation2 + $0xd9] sm:$0xff]  ;;  %v5165_v24 = vld [vmem:[#allocation2 + $0xe1] sm:$0xff]  ;;  %v1449_v48 = vadd.f32 %v1448_v1, %v1447_v62  ;;  %v1450_v49 = vsel %vm1416_vm4, %v5010_v27, 0.0  ;;  %v5186_v55 = vpop.f32.mrb[56].mxu1  ;;  %v1458_v44 = vsel %vm410_vm3, %v5038_v29, 0.0  ;;  %v3839_v51 = vpop.f32.mrb[58].mxu0 }
 0x167   :  { %2034 = vst.msk [vmem:[#allocation2 + $0xd8] sm:$0x1f] %vm443_vm1, %v6318_v63  ;;  %v1047_v15 = vld [vmem:[#allocation2 + $0x123] sm:$0xff]  ;;  %v5201_v42 = vpop.f32.mrb[57].mxu1  ;;  %v1441_v50 = vrot.slane %v1440_v20, 4  ;;  %v1459_v34 = vsel %vm410_vm3, %v5050_v39, 0.0 }
 0x168   :  { %2012 = vst.msk [vmem:[#allocation2 + $0xe5] sm:$0xff] %vm410_vm3, %v5064_v0  ;;  %2011 = vst.msk [vmem:[#allocation2 + $0xdd] sm:$0xff] %vm410_vm3, %v5076_v9  ;;  %v5182_v53 = vld [vmem:[#allocation2 + $0x100] sm:$0x7f]  ;;  %v1079_v6 = vadd.f32 %v1047_v15, %v984_v32  ;;  %v1432_v0 = vrot.slane %v1431_v5, 2  ;;  %v5194_v58 = vld [vmem:[#allocation2 + $0xf0] sm:$0xff]  ;;  %v1451_v60 = vadd.f32 %v1450_v49, %v1449_v48  ;;  %v1460_v1 = vadd.f32 %v1459_v34, %v1458_v44 }
 0x169   :  { %v5184_v59 = vld [vmem:[#allocation2 + $0x101] sm:$0x7f]  ;;  %v5196_v27 = vld [vmem:[#allocation2 + $0xf8] sm:$0xff]  ;;  %1112 = vst.msk [vmem:[#allocation2 + $0x12b] sm:$0xff] %vm410_vm3, %v1080_v30  ;;  %v1461_v2 = vsel %vm1416_vm4, %v5041_v57, 0.0  ;;  %v1469_v29 = vsel %vm410_vm3, %v5068_v3, 0.0 }
 0x16a   :  { %2051 = vst.msk [vmem:[#allocation2 + $0x105] sm:$0x7] %vm460_vm2, %v6318_v63  ;;  %v5198_v33 = vld [vmem:[#allocation2 + $0xf1] sm:$0xff]  ;;  %v5207_v4 = vld [vmem:[#allocation2 + $0xf9] sm:$0xff]  ;;  %v1050_v11 = vld [vmem:[#allocation2 + $0x143] sm:$0xff]  ;;  %v1433_v12 = vadd.f32 %v1432_v0, %v1431_v5  ;;  %v994_v26 = vpop.f32.mrb[59].mxu0  ;;  %v1442_v5 = vadd.f32 %v1441_v50, %v1440_v20  ;;  %v1462_v50 = vadd.f32 %v1461_v2, %v1460_v1 }
 0x16b   :  { %2035 = vst.msk [vmem:[#allocation2 + $0xf0] sm:$0x1f] %vm443_vm1, %v6318_v63  ;;  %v1082_v22 = vadd.f32 %v3839_v51, %v1050_v11  ;;  %v1049_v13 = vld [vmem:[#allocation2 + $0x13b] sm:$0xff]  ;;  %v1452_v62 = vrot.slane %v1451_v60, 4  ;;  %v5226_v32 = vpop.f32.mrb[58].mxu1  ;;  %v1470_v44 = vsel %vm410_vm3, %v5080_v16, 0.0 }
 0x16c   :  { %1111 = vst.msk [vmem:[#allocation2 + $0x123] sm:$0xff] %vm410_vm3, %v1079_v6  ;;  %2014 = vst.msk [vmem:[#allocation2 + $0xfd] sm:$0xff] %vm410_vm3, %v5097_v38  ;;  %v5222_v39 = vld [vmem:[#allocation2 + $0x118] sm:$0x7f]  ;;  %v1081_v57 = vadd.f32 %v1049_v13, %v994_v26  ;;  %v1434_v3 = vrot.slane %v1433_v12, 1  ;;  %v5234_v20 = vld [vmem:[#allocation2 + $0x108] sm:$0xff]  ;;  %v1471_v13 = vadd.f32 %v1470_v44, %v1469_v29 }
 0x16d   :  { %2013 = vst.msk [vmem:[#allocation2 + $0xf5] sm:$0xff] %vm410_vm3, %v5115_v47  ;;  %6338 = vst [vmem:[#allocation11_spill] sm:$0xff] %v5222_v39  ;;  %v5224_v30 = vld [vmem:[#allocation2 + $0x119] sm:$0x7f]  ;;  %v5236_v15 = vld [vmem:[#allocation2 + $0x110] sm:$0xff]  ;;  %v5241_v49 = vpop.f32.mrb[59].mxu1  ;;  %v1453_v0 = vadd.f32 %v1452_v62, %v1451_v60 }
 0x16e   :  { %6339 = vst [vmem:[#allocation12_spill] sm:$0xff] %v5224_v30  ;;  %2052 = vst.msk [vmem:[#allocation2 + $0x11d] sm:$0x7] %vm460_vm2, %v6318_v63  ;;  %v5238_v48 = vld [vmem:[#allocation2 + $0x109] sm:$0xff]  ;;  %v1443_v6 = vrot.slane %v1442_v5, 2  ;;  %v5245_v51 = vld [vmem:[#allocation2 + $0x111] sm:$0xff]  ;;  %v1435_v26 = vadd.f32 %v1434_v3, %v1433_v12 }
 0x16f   :  { %6340 = vst [vmem:[#allocation13_spill] sm:$0xff] %v5236_v15  ;;  %6341 = vst [vmem:[#allocation14_spill] sm:$0xff] %v5238_v48  ;;  %v3842_v11 = vpop.f32.mrb[60].mxu0  ;;  %v1052_v34 = vld [vmem:[#allocation2 + $0x15b] sm:$0xff]  ;;  %v1480_v60 = vsel %vm410_vm3, %v5101_v45, 0.0  ;;  %v1051_v62 = vld [vmem:[#allocation2 + $0x153] sm:$0xff] }
 0x170   :  { %1114 = vst.msk [vmem:[#allocation2 + $0x143] sm:$0xff] %vm410_vm3, %v1082_v22  ;;  %6342 = vst [vmem:[#allocation15_spill] sm:$0xff] %v5245_v51  ;;  %v1472_v22 = vsel %vm1416_vm4, %v5071_v25, 0.0  ;;  %v1084_v16 = vadd.f32 %v3842_v11, %v1052_v34  ;;  %v1004_v2 = vpop.f32.mrb[61].mxu0  ;;  %v1444_v1 = vadd.f32 %v1443_v6, %v1442_v5  ;;  %v1463_v47 = vrot.slane %v1462_v50, 4  ;;  %v1054_v3 = vld [vmem:[#allocation2 + $0x173] sm:$0xff] }
 0x171   :  { %2036 = vst.msk [vmem:[#allocation2 + $0x108] sm:$0x1f] %vm443_vm1, %v6318_v63  ;;  %v5258_v12 = vld [vmem:[#allocation2 + $0x130] sm:$0x7f]  ;;  %v1083_v25 = vadd.f32 %v1051_v62, %v1004_v2  ;;  %v5262_v44 = vpop.f32.mrb[60].mxu1  ;;  %v1473_v45 = vadd.f32 %v1472_v22, %v1471_v13  ;;  %v1483_v38 = vsel %vm1416_vm4, %v5104_v61, 0.0 }
 0x172   :  { %1113 = vst.msk [vmem:[#allocation2 + $0x13b] sm:$0xff] %vm410_vm3, %v1081_v57  ;;  %2016 = vst.msk [vmem:[#allocation2 + $0x115] sm:$0xff] %vm410_vm3, %v5142_v36  ;;  %v1454_v57 = vrot.slane %v1453_v0, 2  ;;  %v5260_v29 = vld [vmem:[#allocation2 + $0x131] sm:$0x7f]  ;;  %v1481_v36 = vsel %vm410_vm3, %v5119_v52, 0.0  ;;  %v1464_v52 = vadd.f32 %v1463_v47, %v1462_v50 }
 0x173   :  { %2015 = vst.msk [vmem:[#allocation2 + $0x10d] sm:$0xff] %vm410_vm3, %v5156_v19  ;;  %v1607_v19 = vsel %vm1606_vm5, %v1435_v26, %v5178_v46  ;;  %v5270_v5 = vld [vmem:[#allocation2 + $0x120] sm:$0xff]  ;;  %v5272_v6 = vld [vmem:[#allocation2 + $0x128] sm:$0xff]  ;;  %1116 = vst.msk [vmem:[#allocation2 + $0x15b] sm:$0xff] %vm410_vm3, %v1084_v16  ;;  %v5277_v34 = vpop.f32.mrb[61].mxu1  ;;  %v1445_v13 = vrot.slane %v1444_v1, 1  ;;  %v1482_v2 = vadd.f32 %v1481_v36, %v1480_v60 }
 0x174   :  { %2053 = vst.msk [vmem:[#allocation2 + $0x135] sm:$0x7] %vm460_vm2, %v6318_v63  ;;  %v5274_v11 = vld [vmem:[#allocation2 + $0x121] sm:$0xff]  ;;  %v1455_v22 = vadd.f32 %v1454_v57, %v1453_v0  ;;  %v5279_v62 = vld [vmem:[#allocation2 + $0x129] sm:$0xff]  ;;  %v3845_v46 = vpop.f32.mrb[62].mxu0  ;;  %v1474_v26 = vrot.slane %v1473_v45, 4 }
 0x175   :  { %2037 = vst.msk [vmem:[#allocation2 + $0x120] sm:$0x1f] %vm443_vm1, %v6318_v63  ;;  %v1491_v16 = vsel %vm410_vm3, %v5145_v7, 0.0  ;;  %v1492_v0 = vsel %vm410_vm3, %v5159_v21, 0.0  ;;  %v1086_v47 = vadd.f32 %v3845_v46, %v1054_v3  ;;  %v1014_v50 = vpop.f32.mrb[63].mxu0  ;;  %v1053_v60 = vld [vmem:[#allocation2 + $0x16b] sm:$0xff]  ;;  %v1446_v57 = vadd.f32 %v1445_v13, %v1444_v1 }
 0x176   :  { %1115 = vst.msk [vmem:[#allocation2 + $0x153] sm:$0xff] %vm410_vm3, %v1083_v25  ;;  %2018 = vst.msk [vmem:[#allocation2 + $0x12d] sm:$0xff] %vm410_vm3, %v5186_v55  ;;  %v1456_v25 = vrot.slane %v1455_v22, 1  ;;  %v1465_v36 = vrot.slane %v1464_v52, 2  ;;  %v1085_v7 = vadd.f32 %v1053_v60, %v1014_v50  ;;  %v1475_v56 = vadd.f32 %v1474_v26, %v1473_v45  ;;  %v5298_v23 = vpop.f32.mrb[62].mxu1  ;;  %v3912_v26 = vpop.f32.mrb[64].mxu0 }
 0x177   :  { %2017 = vst.msk [vmem:[#allocation2 + $0x125] sm:$0xff] %vm410_vm3, %v5201_v42  ;;  %v5294_v61 = vld [vmem:[#allocation2 + $0x148] sm:$0x7f]  ;;  %v1484_v21 = vadd.f32 %v1483_v38, %v1482_v2  ;;  %v1493_v9 = vadd.f32 %v1492_v0, %v1491_v16  ;;  %1118 = vst.msk [vmem:[#allocation2 + $0x173] sm:$0xff] %vm410_vm3, %v1086_v47  ;;  %v1494_v45 = vsel %vm1416_vm4, %v5136_v8, 0.0  ;;  %v1609_v38 = vsel %vm1608_vm6, %v1446_v57, %v1607_v19  ;;  %v5312_v2 = vpop.f32.mrb[63].mxu1 }
 0x178   :  { %v5296_v31 = vld [vmem:[#allocation2 + $0x149] sm:$0x7f]  ;;  %v1457_v3 = vadd.f32 %v1456_v25, %v1455_v22  ;;  %v1466_v13 = vadd.f32 %v1465_v36, %v1464_v52  ;;  %1117 = vst.msk [vmem:[#allocation2 + $0x16b] sm:$0xff] %vm410_vm3, %v1085_v7  ;;  %v1476_v0 = vrot.slane %v1475_v56, 2  ;;  %v2123_v19 = vpop.f32.mrb[65].mxu0  ;;  %v2284_v15 = vld [vmem:[#allocation2 + $0x1c] sm:$0xff] }
 0x179   :  { %2054 = vst.msk [vmem:[#allocation2 + $0x14d] sm:$0x7] %vm460_vm2, %v6318_v63  ;;  %v5302_v55 = vld [vmem:[#allocation2 + $0x138] sm:$0xff]  ;;  %v5304_v42 = vld [vmem:[#allocation2 + $0x140] sm:$0xff]  ;;  %v2283_v16 = vld [vmem:[#allocation2 + $0xc] sm:$0xff]  ;;  %v1485_v47 = vrot.slane %v1484_v21, 4  ;;  %v1495_v22 = vadd.f32 %v1494_v45, %v1493_v9 }
 0x17a   :  { %v5306_v1 = vld [vmem:[#allocation2 + $0x139] sm:$0xff]  ;;  %v5314_v46 = vld [vmem:[#allocation2 + $0x141] sm:$0xff]  ;;  %v2315_v8 = vadd.f32 %v3912_v26, %v2283_v16  ;;  %v1467_v60 = vrot.slane %v1466_v13, 1  ;;  %v1611_v57 = vsel %vm1610_vm7, %v1457_v3, %v1609_v38  ;;  %v1477_v45 = vadd.f32 %v1476_v0, %v1475_v56 }
 0x17b   :  { %2038 = vst.msk [vmem:[#allocation2 + $0x138] sm:$0x1f] %vm443_vm1, %v6318_v63  ;;  %v2282_v50 = vld [vmem:[#allocation2 + $0x4] sm:$0xff]  ;;  %v1496_v52 = vrot.slane %v1495_v22, 4  ;;  %v5332_v63 = vpop.f32.mrb[64].mxu1 }
 0x17c   :  { %2020 = vst.msk [vmem:[#allocation2 + $0x145] sm:$0xff] %vm410_vm3, %v5226_v32  ;;  %2019 = vst.msk [vmem:[#allocation2 + $0x13d] sm:$0xff] %vm410_vm3, %v5241_v49  ;;  %v5328_v9 = vld [vmem:[#allocation2 + $0x160] sm:$0x7f]  ;;  %v2314_v7 = vadd.f32 %v2282_v50, %v2123_v19  ;;  %v1486_v32 = vadd.f32 %v1485_v47, %v1484_v21  ;;  %v6343_v49 = vmov 0.0   ;;  %v1468_v16 = vadd.f32 %v1467_v60, %v1466_v13  ;;  %v5343_v25 = vpop.f32.mrb[65].mxu1 }
 0x17d   :  { %v5330_v36 = vld [vmem:[#allocation2 + $0x161] sm:$0x7f]  ;;  %v5336_v26 = vld [vmem:[#allocation2 + $0x150] sm:$0xff]  ;;  %v5338_v3 = vld [vmem:[#allocation2 + $0x158] sm:$0xff]  ;;  %2347 = vst.msk [vmem:[#allocation2 + $0xc] sm:$0xff] %vm410_vm3, %v2315_v8  ;;  %v1478_v13 = vrot.slane %v1477_v45, 1  ;;  %v1497_v19 = vadd.f32 %v1496_v52, %v1495_v22 }
 0x17e   :  { %2055 = vst.msk [vmem:[#allocation2 + $0x165] sm:$0x7] %vm460_vm2, %v6343_v49  ;;  %v5340_v38 = vld [vmem:[#allocation2 + $0x151] sm:$0xff]  ;;  %v5351_v47 = vld [vmem:[#allocation2 + $0x159] sm:$0xff]  ;;  %v1487_v8 = vrot.slane %v1486_v32, 2  ;;  %v3915_v50 = vpop.f32.mrb[66].mxu0  ;;  %v1613_v0 = vsel %vm1612_vm8, %v1468_v16, %v1611_v57 }
 0x17f   :  { %6344 = vst [vmem:[#allocation16_spill] sm:$0xff] %v5340_v38  ;;  %2039 = vst.msk [vmem:[#allocation2 + $0x150] sm:$0x1f] %vm443_vm1, %v6343_v49  ;;  %v2285_v60 = vld [vmem:[#allocation2 + $0x24] sm:$0xff]  ;;  %v2133_v51 = vpop.f32.mrb[67].mxu0  ;;  %v1479_v30 = vadd.f32 %v1478_v13, %v1477_v45  ;;  %v1498_v39 = vrot.slane %v1497_v19, 2 }
 0x180   :  { %2346 = vst.msk [vmem:[#allocation2 + $0x4] sm:$0xff] %vm410_vm3, %v2314_v7  ;;  %2022 = vst.msk [vmem:[#allocation2 + $0x15d] sm:$0xff] %vm410_vm3, %v5262_v44  ;;  %v2317_v21 = vadd.f32 %v3915_v50, %v2285_v60  ;;  %v5367_v52 = vld [vmem:[#allocation2 + $0x178] sm:$0x7f]  ;;  %v1488_v44 = vadd.f32 %v1487_v8, %v1486_v32  ;;  %v2316_v48 = vadd.f32 %v2284_v15, %v2133_v51  ;;  %v5375_v57 = vld [vmem:[#allocation2 + $0x168] sm:$0xff]  ;;  %v3918_v45 = vpop.f32.mrb[68].mxu0 }
 0x181   :  { %2021 = vst.msk [vmem:[#allocation2 + $0x155] sm:$0xff] %vm410_vm3, %v5277_v34  ;;  %v5369_v56 = vld [vmem:[#allocation2 + $0x179] sm:$0x7f]  ;;  %v5371_v34 = vpop.f32.mrb[66].mxu1  ;;  %v5377_v16 = vld [vmem:[#allocation2 + $0x170] sm:$0xff]  ;;  %v1499_v8 = vadd.f32 %v1498_v39, %v1497_v19  ;;  %v1615_v22 = vsel %vm1614_vm9, %v1479_v30, %v1613_v0  ;;  %v2143_v51 = vpop.f32.mrb[69].mxu0  ;;  %v6348_v30 = vmax.f32 %v5093_v35, %v5095_v37  ;;  %v6349_v35 = vmax.f32 %v5149_v17, %v5153_v18 }
 0x182   :  { %2056 = vst.msk [vmem:[#allocation2 + $0x17d] sm:$0x7] %vm460_vm2, %v6343_v49  ;;  %v5379_v50 = vld [vmem:[#allocation2 + $0x169] sm:$0xff]  ;;  %v5382_v60 = vpop.f32.mrb[67].mxu1  ;;  %v5392_v13 = vld [vmem:[#allocation2 + $0x171] sm:$0xff]  ;;  %v2287_v7 = vld [vmem:[#allocation2 + $0x3c] sm:$0xff] }
 0x183   :  { %2349 = vst.msk [vmem:[#allocation2 + $0x24] sm:$0xff] %vm410_vm3, %v2317_v21  ;;  %v1489_v21 = vrot.slane %v1488_v44, 1  ;;  %2348 = vst.msk [vmem:[#allocation2 + $0x1c] sm:$0xff] %vm410_vm3, %v2316_v48  ;;  %v2319_v32 = vadd.f32 %v3918_v45, %v2287_v7  ;;  %v1500_v19 = vrot.slane %v1499_v8, 1  ;;  %v5410_v38 = vpop.f32.mrb[68].mxu1 }
 0x184   :  { %2040 = vst.msk [vmem:[#allocation2 + $0x168] sm:$0x1f] %vm443_vm1, %v6343_v49  ;;  %v2286_v49 = vld [vmem:[#allocation2 + $0x34] sm:$0xff]  ;;  %v5415_v45 = vpop.f32.mrb[69].mxu1 }
 0x185   :  { %2024 = vst.msk [vmem:[#allocation2 + $0x175] sm:$0xff] %vm410_vm3, %v5298_v23  ;;  %2023 = vst.msk [vmem:[#allocation2 + $0x16d] sm:$0xff] %vm410_vm3, %v5312_v2  ;;  %v1490_v0 = vadd.f32 %v1489_v21, %v1488_v44  ;;  %v2318_v15 = vadd.f32 %v2286_v49, %v2143_v51  ;;  %v5422_v44 = vld [vmem:[%s6314_s2] ss:$0 sm:$0xff]  ;;  %v6345_v51 = vmax.f32 %v5108_v40, %v5112_v43  ;;  %v5467_v18 = vpop.f32.mrb[70].mxu1 }
 0x186   :  { %2351 = vst.msk [vmem:[#allocation2 + $0x3c] sm:$0xff] %vm410_vm3, %v2319_v32  ;;  %v6346_v32 = vmax.f32 %v5110_v41, %v5121_v54  ;;  %v5440_v23 = vadd.f32 %v5422_v44, %v6348_v30  ;;  %v1501_v48 = vadd.f32 %v1500_v19, %v1499_v8  ;;  %v2289_v41 = vld [vmem:[#allocation2 + $0x54] sm:$0xff]  ;;  %v5450_v37 = vadd.f32 %v5422_v44, %v6349_v35 }
 0x187   :  { %v2604_v2 = vld [vmem:[#allocation2 + $0xb] sm:$0xff]  ;;  %v2603_v7 = vld [vmem:[#allocation2 + $0x3] sm:$0xff]  ;;  %v5428_v21 = vadd.f32 %v5422_v44, %v6345_v51  ;;  %v1617_v39 = vsel %vm1616_vm10, %v1490_v0, %v1615_v22  ;;  %2350 = vst.msk [vmem:[#allocation2 + $0x34] sm:$0xff] %vm410_vm3, %v2318_v15  ;;  %v3921_v51 = vpop.f32.mrb[70].mxu0  ;;  %v6350_v22 = vmax.f32 %v5151_v14, %v5165_v24  ;;  %v6352_v14 = vmax.f32 %v5194_v58, %v5198_v33  ;;  %v5483_v0 = vpop.f32.mrb[71].mxu1  ;;  %v6355_v19 = vld [vmem:[#allocation14_spill] sm:$0xff] }
 0x188   :  { %v5434_v49 = vadd.f32 %v5422_v44, %v6346_v32  ;;  %v2636_v40 = vadd.f32 %v5332_v63, %v2604_v2  ;;  %v2635_v43 = vadd.f32 %v2603_v7, %v5343_v25  ;;  %v2321_v54 = vadd.f32 %v3921_v51, %v2289_v41  ;;  %v2153_v32 = vpop.f32.mrb[71].mxu0  ;;  %v6357_v2 = vld [vmem:[#allocation13_spill] sm:$0xff]  ;;  %v6358_v7 = vld [vmem:[#allocation15_spill] sm:$0xff] }
 0x189   :  { %v5456_v15 = vadd.f32 %v5422_v44, %v6350_v22  ;;  %v6351_v63 = vmax.f32 %v5138_v10, %v5140_v28  ;;  %v1619_v8 = vsel %vm1618_vm11, %v1501_v48, %v1617_v39  ;;  %v5473_v24 = vadd.f32 %v5422_v44, %v6352_v14  ;;  %v2291_v51 = vld [vmem:[#allocation2 + $0x6c] sm:$0xff]  ;;  %v6360_v41 = vld [vmem:[#allocation11_spill] sm:$0xff] }
 0x18a   :  { %6347 = vst [vmem:[#allocation17_spill] sm:$0xff] %v5434_v49  ;;  %v2288_v49 = vld [vmem:[#allocation2 + $0x4c] sm:$0xff]  ;;  %2668 = vst.msk [vmem:[#allocation2 + $0xb] sm:$0xff] %vm410_vm3, %v2636_v40  ;;  %v6353_v10 = vmax.f32 %v5196_v27, %v5207_v4  ;;  %v1629_v39 = vsel %vm410_vm3, %v1619_v8, 0.0  ;;  %v2606_v30 = vld [vmem:[#allocation2 + $0x23] sm:$0xff]  ;;  %v6354_v58 = vmax.f32 %v5182_v53, %v5184_v59  ;;  %v6356_v27 = vmax.f32 %v5234_v20, %v6355_v19 }
 0x18b   :  { %v5462_v25 = vadd.f32 %v5422_v44, %v6351_v63  ;;  %2667 = vst.msk [vmem:[#allocation2 + $0x3] sm:$0xff] %vm410_vm3, %v2635_v43  ;;  %v2320_v17 = vadd.f32 %v2288_v49, %v2153_v32  ;;  %2353 = vst.msk [vmem:[#allocation2 + $0x54] sm:$0xff] %vm410_vm3, %v2321_v54  ;;  %v2605_v48 = vld [vmem:[#allocation2 + $0x1b] sm:$0xff]  ;;  %v6359_v49 = vmax.f32 %v6357_v2, %v6358_v7  ;;  %1630 = vadd.xlane.f32.xlu0 %v1629_v39  ;;  %v3924_v43 = vpop.f32.mrb[72].mxu0  ;;  %v6361_v20 = vld [vmem:[#allocation12_spill] sm:$0xff] }
 0x18c   :  { %v5479_v28 = vadd.f32 %v5422_v44, %v6353_v10  ;;  %v5489_v33 = vadd.f32 %v5422_v44, %v6354_v58  ;;  %v5495_v4 = vadd.f32 %v5422_v44, %v6356_v27  ;;  %v2638_v53 = vadd.f32 %v5371_v34, %v2606_v30  ;;  %v2163_v8 = vpop.f32.mrb[73].mxu0 }
 0x18d   :  { %v5501_v40 = vadd.f32 %v5422_v44, %v6359_v49  ;;  %2352 = vst.msk [vmem:[#allocation2 + $0x4c] sm:$0xff] %vm410_vm3, %v2320_v17  ;;  %v2637_v59 = vadd.f32 %v2605_v48, %v5382_v60  ;;  %v6362_v54 = vmax.f32 %v6360_v41, %v6361_v20  ;;  %v6363_v35 = vmax.f32 %v5270_v5, %v5274_v11  ;;  %v2290_v17 = vld [vmem:[#allocation2 + $0x64] sm:$0xff] }
 0x18e   :  { %v2323_v63 = vadd.f32 %v3924_v43, %v2291_v51  ;;  %v6364_v34 = vmax.f32 %v5272_v6, %v5279_v62  ;;  %v6365_v14 = vmax.f32 %v5258_v12, %v5260_v29  ;;  %v6366_v5 = vmax.f32 %v5302_v55, %v5306_v1  ;;  %2670 = vst.msk [vmem:[#allocation2 + $0x23] sm:$0xff] %vm410_vm3, %v2638_v53  ;;  %v5538_v62 = vpop.f32.mrb[72].mxu1  ;;  %v6369_v1 = vld [vmem:[#allocation16_spill] sm:$0xff]  ;;  %v2608_v58 = vld [vmem:[#allocation2 + $0x3b] sm:$0xff]  ;;  %v2607_v19 = vld [vmem:[#allocation2 + $0x33] sm:$0xff] }
 0x18f   :  { %v5510_v32 = vadd.f32 %v5422_v44, %v6362_v54  ;;  %v5516_v22 = vadd.f32 %v5422_v44, %v6363_v35  ;;  %2669 = vst.msk [vmem:[#allocation2 + $0x1b] sm:$0xff] %vm410_vm3, %v2637_v59  ;;  %v2322_v6 = vadd.f32 %v2290_v17, %v2163_v8  ;;  %v6367_v39 = vmax.f32 %v5304_v42, %v5314_v46  ;;  %v5559_v42 = vpop.f32.mrb[73].mxu1  ;;  %v2293_v49 = vld [vmem:[#allocation2 + $0x84] sm:$0xff]  ;;  %v2292_v59 = vld [vmem:[#allocation2 + $0x7c] sm:$0xff] }
 0x190   :  { %v5522_v60 = vadd.f32 %v5422_v44, %v6364_v34  ;;  %v5528_v10 = vadd.f32 %v5422_v44, %v6365_v14  ;;  %v5534_v11 = vadd.f32 %v5422_v44, %v6366_v5  ;;  %v6368_v29 = vmax.f32 %v5294_v61, %v5296_v31  ;;  %2355 = vst.msk [vmem:[#allocation2 + $0x6c] sm:$0xff] %vm410_vm3, %v2323_v63 }
 0x191   :  { %v5544_v12 = vadd.f32 %v5422_v44, %v6367_v39  ;;  %v6370_v30 = vmax.f32 %v5336_v26, %v6369_v1  ;;  %v6371_v46 = vmax.f32 %v5338_v3, %v5351_v47  ;;  %v6372_v61 = vmax.f32 %v5328_v9, %v5330_v36  ;;  %2354 = vst.msk [vmem:[#allocation2 + $0x64] sm:$0xff] %vm410_vm3, %v2322_v6  ;;  %v3927_v36 = vpop.f32.mrb[74].mxu0  ;;  %v6376_v43 = vld [vmem:[#allocation17_spill] sm:$0xff] }
 0x192   :  { %v5550_v55 = vadd.f32 %v5422_v44, %v6368_v29  ;;  %v6373_v27 = vmax.f32 %v5375_v57, %v5379_v50  ;;  %v6374_v7 = vmax.f32 %v5377_v16, %v5392_v13  ;;  %v2640_v47 = vadd.f32 %v5410_v38, %v2608_v58  ;;  %v2173_v13 = vpop.f32.mrb[75].mxu0  ;;  %v2294_v6 = vld [vmem:[#allocation2 + $0x94] sm:$0xff] }
 0x193   :  { %v5556_v48 = vadd.f32 %v5422_v44, %v6370_v30  ;;  %v5565_v31 = vadd.f32 %v5422_v44, %v6371_v46  ;;  %v5571_v26 = vadd.f32 %v5422_v44, %v6372_v61  ;;  %v2639_v9 = vadd.f32 %v2607_v19, %v5415_v45  ;;  %v3930_v34 = vpop.f32.mrb[76].mxu0 }
 0x194   :  { %v5577_v2 = vadd.f32 %v5422_v44, %v6373_v27  ;;  %v5583_v3 = vadd.f32 %v5422_v44, %v6374_v7  ;;  %v6375_v57 = vmax.f32 %v5367_v52, %v5369_v56  ;;  %v1341_v53 = vmax.f32 %v5428_v21, 0.0  ;;  %2672 = vst.msk [vmem:[#allocation2 + $0x3b] sm:$0xff] %vm410_vm3, %v2640_v47  ;;  %v5600_v56 = vpop.f32.mrb[74].mxu1  ;;  %v2610_v54 = vld [vmem:[#allocation2 + $0x53] sm:$0xff]  ;;  %v2609_v35 = vld [vmem:[#allocation2 + $0x4b] sm:$0xff]  ;;  %v2183_v5 = vpop.f32.mrb[77].mxu0 }
 0x195   :  { %v2325_v16 = vadd.f32 %v3927_v36, %v2293_v49  ;;  %v1342_v51 = vmax.f32 %v6376_v43, 0.0  ;;  %v1343_v41 = vmax.f32 %v5440_v23, 0.0  ;;  %v1344_v38 = vmax.f32 %v5450_v37, 0.0  ;;  %2671 = vst.msk [vmem:[#allocation2 + $0x33] sm:$0xff] %vm410_vm3, %v2639_v9  ;;  %v5606_v23 = vpop.f32.mrb[75].mxu1  ;;  %v3933_v27 = vpop.f32.mrb[78].mxu0 }
 0x196   :  { %v5592_v50 = vadd.f32 %v5422_v44, %v6375_v57  ;;  %v2324_v45 = vadd.f32 %v2292_v59, %v2173_v13  ;;  %v1345_v52 = vmax.f32 %v5456_v15, 0.0  ;;  %v1346_v21 = vmax.f32 %v5462_v25, 0.0  ;;  %v5614_v15 = vld [vmem:[%s6315_s3] sm:$0xff]  ;;  %v2193_v47 = vpop.f32.mrb[79].mxu0  ;;  %v2296_v9 = vld [vmem:[#allocation2 + $0xac] sm:$0xff] }
 0x197   :  { %v1347_v20 = vmax.f32 %v5473_v24, 0.0  ;;  %2357 = vst.msk [vmem:[#allocation2 + $0x84] sm:$0xff] %vm410_vm3, %v2325_v16  ;;  %v1348_v37 = vmax.f32 %v5479_v28, 0.0  ;;  %v1349_v63 = vmax.f32 %v5489_v33, 0.0  ;;  %v1350_v8 = vmax.f32 %v5495_v4, 0.0  ;;  %6377 = vst [vmem:[#allocation14_spill] sm:$0xff] %v5614_v15 }
 0x198   :  { %v5617_v25 = vmul.f32 %v5614_v15, %v1341_v53  ;;  %2356 = vst.msk [vmem:[#allocation2 + $0x7c] sm:$0xff] %vm410_vm3, %v2324_v45  ;;  %v2642_v24 = vadd.f32 %v5467_v18, %v2610_v54  ;;  %v2641_v17 = vadd.f32 %v2609_v35, %v5483_v0  ;;  %v2295_v28 = vld [vmem:[#allocation2 + $0x9c] sm:$0xff]  ;;  %v1351_v33 = vmax.f32 %v5501_v40, 0.0  ;;  %v5629_v0 = vpop.f32.mrb[76].mxu1  ;;  %v5657_v49 = vld [vmem:[%s6315_s3 + $0x10] sm:$0x7f] }
 0x199   :  { %v1352_v4 = vmax.f32 %v5510_v32, 0.0  ;;  %v2327_v14 = vadd.f32 %v3930_v34, %v2295_v28  ;;  %v1353_v39 = vmax.f32 %v5516_v22, 0.0  ;;  %v1354_v29 = vmax.f32 %v5522_v60, 0.0  ;;  %v2612_v22 = vld [vmem:[#allocation2 + $0x6b] sm:$0xff]  ;;  %v2611_v58 = vld [vmem:[#allocation2 + $0x63] sm:$0xff]  ;;  %v5635_v60 = vpop.f32.mrb[77].mxu1 }
 0x19a   :  { %v1355_v1 = vmax.f32 %v5528_v10, 0.0  ;;  %2674 = vst.msk [vmem:[#allocation2 + $0x53] sm:$0xff] %vm410_vm3, %v2642_v24  ;;  %2673 = vst.msk [vmem:[#allocation2 + $0x4b] sm:$0xff] %vm410_vm3, %v2641_v17  ;;  %v2326_v18 = vadd.f32 %v2294_v6, %v2183_v5  ;;  %v1356_v40 = vmax.f32 %v5534_v11, 0.0  ;;  %v1357_v32 = vmax.f32 %v5544_v12, 0.0  ;;  %v5643_v11 = vld [vmem:[%s6315_s3 + $0x8] sm:$0xff] }
 0x19b   :  { %v1358_v30 = vmax.f32 %v5550_v55, 0.0  ;;  %2359 = vst.msk [vmem:[#allocation2 + $0x9c] sm:$0xff] %vm410_vm3, %v2327_v14  ;;  %v1359_v10 = vmax.f32 %v5556_v48, 0.0  ;;  %v1360_v19 = vmax.f32 %v5565_v31, 0.0  ;;  %v1361_v46 = vmax.f32 %v5571_v26, 0.0  ;;  %6378 = vst [vmem:[#allocation13_spill] sm:$0xff] %v5643_v11 }
 0x19c   :  { %v5646_v12 = vmul.f32 %v5643_v11, %v1342_v51  ;;  %2358 = vst.msk [vmem:[#allocation2 + $0x94] sm:$0xff] %vm410_vm3, %v2326_v18  ;;  %v2644_v55 = vadd.f32 %v5538_v62, %v2612_v22  ;;  %v2643_v61 = vadd.f32 %v2611_v58, %v5559_v42  ;;  %v2297_v48 = vld [vmem:[#allocation2 + $0xb4] sm:$0xff]  ;;  %v1362_v31 = vmax.f32 %v5577_v2, 0.0  ;;  %6379 = vst [vmem:[#allocation15_spill] sm:$0xff] %v5657_v49  ;;  %v5666_v53 = vpop.f32.mrb[78].mxu1  ;;  %v2298_v24 = vld [vmem:[#allocation2 + $0xc4] sm:$0xff] }
 0x19d   :  { %v1363_v26 = vmax.f32 %v5583_v3, 0.0  ;;  %v2329_v7 = vadd.f32 %v3933_v27, %v2297_v48  ;;  %v1364_v36 = vmax.f32 %v5592_v50, 0.0  ;;  %v1391_v62 = vmul.f32 %v5657_v49, %v1343_v41 }
 0x19e   :  { %v1392_v42 = vmul.f32 %v5614_v15, %v1344_v38  ;;  %2676 = vst.msk [vmem:[#allocation2 + $0x6b] sm:$0xff] %vm410_vm3, %v2644_v55  ;;  %2675 = vst.msk [vmem:[#allocation2 + $0x63] sm:$0xff] %vm410_vm3, %v2643_v61  ;;  %v2328_v2 = vadd.f32 %v2296_v9, %v2193_v47  ;;  %v1393_v3 = vmul.f32 %v5643_v11, %v1345_v52  ;;  %v5673_v38 = vpop.f32.mrb[79].mxu1  ;;  %v1502_v22 = vsel %vm410_vm3, %v5617_v25, 0.0 }
 0x19f   :  { %v1394_v57 = vmul.f32 %v5657_v49, %v1346_v21  ;;  %v1395_v50 = vmul.f32 %v5614_v15, %v1347_v20  ;;  %2361 = vst.msk [vmem:[#allocation2 + $0xb4] sm:$0xff] %vm410_vm3, %v2329_v7  ;;  %v2614_v16 = vld [vmem:[#allocation2 + $0x83] sm:$0xff]  ;;  %v2613_v13 = vld [vmem:[#allocation2 + $0x7b] sm:$0xff]  ;;  %v1396_v59 = vmul.f32 %v5643_v11, %v1348_v37  ;;  %v1397_v43 = vmul.f32 %v5657_v49, %v1349_v63  ;;  %v3936_v21 = vpop.f32.mrb[80].mxu0  ;;  %v2299_v20 = vld [vmem:[#allocation2 + $0xcc] sm:$0xff] }
 0x1a0   :  { %v1398_v51 = vmul.f32 %v5614_v15, %v1350_v8  ;;  %v1399_v41 = vmul.f32 %v5643_v11, %v1351_v33  ;;  %2360 = vst.msk [vmem:[#allocation2 + $0xac] sm:$0xff] %vm410_vm3, %v2328_v2  ;;  %v2646_v45 = vadd.f32 %v5600_v56, %v2614_v16  ;;  %v2645_v52 = vadd.f32 %v2613_v13, %v5606_v23  ;;  %v2203_v63 = vpop.f32.mrb[81].mxu0 }
 0x1a1   :  { %v1400_v54 = vmul.f32 %v5657_v49, %v1352_v4  ;;  %v1401_v35 = vmul.f32 %v5614_v15, %v1353_v39  ;;  %v2331_v37 = vadd.f32 %v3936_v21, %v2299_v20  ;;  %v1402_v8 = vmul.f32 %v5643_v11, %v1354_v29  ;;  %v5688_v4 = vpop.f32.mrb[80].mxu1  ;;  %v5711_v58 = vpop.f32.mrb[82].mxu0 }
 0x1a2   :  { %v1403_v17 = vmul.f32 %v5657_v49, %v1355_v1  ;;  %v1404_v34 = vmul.f32 %v5614_v15, %v1356_v40  ;;  %2678 = vst.msk [vmem:[#allocation2 + $0x83] sm:$0xff] %vm410_vm3, %v2646_v45  ;;  %2677 = vst.msk [vmem:[#allocation2 + $0x7b] sm:$0xff] %vm410_vm3, %v2645_v52  ;;  %v2330_v56 = vadd.f32 %v2298_v24, %v2203_v63  ;;  %v5701_v18 = vpop.f32.mrb[81].mxu1  ;;  %v1514_v55 = vsel %vm410_vm3, %v1393_v3, 0.0 }
 0x1a3   :  { %v1405_v23 = vmul.f32 %v5643_v11, %v1357_v32  ;;  %v1406_v28 = vmul.f32 %v5657_v49, %v1358_v30  ;;  %v1407_v33 = vmul.f32 %v5614_v15, %v1359_v10  ;;  %2363 = vst.msk [vmem:[#allocation2 + $0xcc] sm:$0xff] %vm410_vm3, %v2331_v37  ;;  %v2616_v14 = vld [vmem:[#allocation2 + $0x9b] sm:$0xff]  ;;  %v2615_v5 = vld [vmem:[#allocation2 + $0x93] sm:$0xff]  ;;  %v1408_v6 = vmul.f32 %v5643_v11, %v1360_v19  ;;  %v5724_v48 = vpop.f32.mrb[82].mxu1 }
 0x1a4   :  { %v5693_v39 = vmul.f32 %v5657_v49, %v1361_v46  ;;  %v5696_v29 = vmul.f32 %v5614_v15, %v1362_v31  ;;  %v5699_v1 = vmul.f32 %v5643_v11, %v1363_v26  ;;  %2362 = vst.msk [vmem:[#allocation2 + $0xc4] sm:$0xff] %vm410_vm3, %v2330_v56  ;;  %v2648_v40 = vadd.f32 %v5629_v0, %v2616_v14  ;;  %v5718_v0 = vpop.f32.mrb[83].mxu0  ;;  %v5732_v2 = vpop.f32.mrb[83].mxu1 }
 0x1a5   :  { %v2647_v32 = vadd.f32 %v2615_v5, %v5635_v60  ;;  %v5707_v30 = vmul.f32 %v5657_v49, %v1364_v36  ;;  %v1503_v10 = vsel %vm410_vm3, %v5646_v12, 0.0  ;;  %v1505_v19 = vsel %vm1416_vm4, %v1391_v62, 0.0  ;;  %v5740_v45 = vpop.f32.mrb[84].mxu1 }
 0x1a6   :  { %v1513_v46 = vsel %vm410_vm3, %v1392_v42, 0.0  ;;  %2680 = vst.msk [vmem:[#allocation2 + $0x9b] sm:$0xff] %vm410_vm3, %v2648_v40  ;;  %v1504_v60 = vadd.f32 %v1503_v10, %v1502_v22  ;;  %v1516_v25 = vsel %vm1416_vm4, %v1394_v57, 0.0  ;;  %v1524_v27 = vsel %vm410_vm3, %v1395_v50, 0.0  ;;  %v5730_v42 = vpop.f32.mrb[84].mxu0 }
 0x1a7   :  { %2679 = vst.msk [vmem:[#allocation2 + $0x93] sm:$0xff] %vm410_vm3, %v2647_v32  ;;  %v1515_v61 = vadd.f32 %v1514_v55, %v1513_v46  ;;  %v1525_v12 = vsel %vm410_vm3, %v1396_v59, 0.0  ;;  %v1527_v31 = vsel %vm1416_vm4, %v1397_v43, 0.0  ;;  %v1535_v26 = vsel %vm410_vm3, %v1398_v51, 0.0  ;;  %v5738_v13 = vpop.f32.mrb[85].mxu0 }
 0x1a8   :  { %v1536_v7 = vsel %vm410_vm3, %v1399_v41, 0.0  ;;  %v1506_v47 = vadd.f32 %v1505_v19, %v1504_v60  ;;  %v1526_v36 = vadd.f32 %v1525_v12, %v1524_v27  ;;  %v1538_v3 = vsel %vm1416_vm4, %v1400_v54, 0.0 }
 0x1a9   :  { %v1517_v9 = vadd.f32 %v1516_v25, %v1515_v61  ;;  %v1537_v62 = vadd.f32 %v1536_v7, %v1535_v26  ;;  %v1546_v57 = vsel %vm410_vm3, %v1401_v35, 0.0  ;;  %v1547_v50 = vsel %vm410_vm3, %v1402_v8, 0.0  ;;  %v5745_v35 = vpop.f32.mrb[85].mxu1 }
 0x1aa   :  { %v1549_v16 = vsel %vm1416_vm4, %v1403_v17, 0.0  ;;  %v1507_v59 = vrot.slane %v1506_v47, 4  ;;  %v1528_v51 = vadd.f32 %v1527_v31, %v1526_v36  ;;  %v1548_v52 = vadd.f32 %v1547_v50, %v1546_v57  ;;  %v5747_v17 = vpop.f32.mrb[86].mxu0  ;;  %v5753_v10 = vpop.f32.mrb[86].mxu1 }
 0x1ab   :  { %v1518_v43 = vrot.slane %v1517_v9, 4  ;;  %v1539_v41 = vadd.f32 %v1538_v3, %v1537_v62  ;;  %v1557_v21 = vsel %vm410_vm3, %v1404_v34, 0.0  ;;  %v1558_v20 = vsel %vm410_vm3, %v1405_v23, 0.0  ;;  %v5751_v32 = vpop.f32.mrb[87].mxu0  ;;  %v5757_v61 = vpop.f32.mrb[87].mxu1 }
 0x1ac   :  { %v1560_v54 = vsel %vm1416_vm4, %v1406_v28, 0.0  ;;  %v1508_v37 = vadd.f32 %v1507_v59, %v1506_v47  ;;  %v1529_v24 = vrot.slane %v1528_v51, 4  ;;  %v1550_v56 = vadd.f32 %v1549_v16, %v1548_v52  ;;  %v5759_v12 = vpop.f32.mrb[88].mxu0  ;;  %v5765_v57 = vpop.f32.mrb[88].mxu1 }
 0x1ad   :  { %v1519_v63 = vadd.f32 %v1518_v43, %v1517_v9  ;;  %v1540_v8 = vrot.slane %v1539_v41, 4  ;;  %v1559_v14 = vadd.f32 %v1558_v20, %v1557_v21  ;;  %v1568_v5 = vsel %vm410_vm3, %v1407_v33, 0.0  ;;  %v5763_v9 = vpop.f32.mrb[89].mxu0  ;;  %v5921_v15 = vld [vmem:[#allocation2 + $0xa0] sm:$0x7f] }
 0x1ae   :  { %v1569_v40 = vsel %vm410_vm3, %v1408_v6, 0.0  ;;  %v1509_v34 = vrot.slane %v1508_v37, 2  ;;  %v1530_v22 = vadd.f32 %v1529_v24, %v1528_v51  ;;  %v1551_v19 = vrot.slane %v1550_v56, 4  ;;  %v5769_v51 = vpop.f32.mrb[89].mxu1  ;;  %v5771_v20 = vpop.f32.mrb[90].mxu0  ;;  %v5919_v11 = vld [vmem:[#allocation2 + $0x98] sm:$0xff] }
 0x1af   :  { %v1520_v23 = vrot.slane %v1519_v63, 2  ;;  %v1541_v28 = vadd.f32 %v1540_v8, %v1539_v41  ;;  %v1561_v46 = vadd.f32 %v1560_v54, %v1559_v14  ;;  %v1570_v55 = vadd.f32 %v1569_v40, %v1568_v5  ;;  %v2618_v8 = vld [vmem:[#allocation2 + $0xb3] sm:$0xff] }
 0x1b0   :  { %v1571_v60 = vsel %vm1416_vm4, %v5693_v39, 0.0  ;;  %v1510_v25 = vadd.f32 %v1509_v34, %v1508_v37  ;;  %v1531_v27 = vrot.slane %v1530_v22, 2  ;;  %v1552_v31 = vadd.f32 %v1551_v19, %v1550_v56  ;;  %v5773_v56 = vpop.f32.mrb[91].mxu0  ;;  %v5778_v34 = vpop.f32.mrb[90].mxu1 }
 0x1b1   :  { %v1521_v33 = vadd.f32 %v1520_v23, %v1519_v63  ;;  %v1542_v6 = vrot.slane %v1541_v28, 2  ;;  %v1562_v26 = vrot.slane %v1561_v46, 4  ;;  %v1572_v7 = vadd.f32 %v1571_v60, %v1570_v55  ;;  %v2300_v55 = vld [vmem:[#allocation2 + $0xdc] sm:$0xff]  ;;  %v2617_v60 = vld [vmem:[#allocation2 + $0xab] sm:$0xff] }
 0x1b2   :  { %v1579_v47 = vsel %vm410_vm3, %v5696_v29, 0.0  ;;  %v1511_v36 = vrot.slane %v1510_v25, 1  ;;  %v1532_v3 = vadd.f32 %v1531_v27, %v1530_v22  ;;  %v1553_v50 = vrot.slane %v1552_v31, 2 }
 0x1b3   :  { %v1522_v62 = vrot.slane %v1521_v33, 1  ;;  %v1543_v39 = vadd.f32 %v1542_v6, %v1541_v28  ;;  %v1563_v16 = vadd.f32 %v1562_v26, %v1561_v46  ;;  %v1573_v59 = vrot.slane %v1572_v7, 4  ;;  %v2301_v46 = vld [vmem:[#allocation2 + $0xe4] sm:$0xff]  ;;  %v5786_v26 = vpop.f32.mrb[92].mxu0 }
 0x1b4   :  { %v1580_v43 = vsel %vm410_vm3, %v5699_v1, 0.0  ;;  %v1512_v41 = vadd.f32 %v1511_v36, %v1510_v25  ;;  %v1533_v21 = vrot.slane %v1532_v3, 1  ;;  %v1554_v54 = vadd.f32 %v1553_v50, %v1552_v31  ;;  %v5780_v25 = vpop.f32.mrb[91].mxu1  ;;  %v2303_v31 = vld [vmem:[#allocation2 + $0xfc] sm:$0xff] }
 0x1b5   :  { %v1523_v52 = vadd.f32 %v1522_v62, %v1521_v33  ;;  %v1544_v29 = vrot.slane %v1543_v39, 1  ;;  %v1564_v37 = vrot.slane %v1563_v16, 2  ;;  %v1574_v63 = vadd.f32 %v1573_v59, %v1572_v7  ;;  %v2619_v50 = vld [vmem:[#allocation2 + $0xc3] sm:$0xff] }
 0x1b6   :  { %v1581_v24 = vadd.f32 %v1580_v43, %v1579_v47  ;;  %v1534_v14 = vadd.f32 %v1533_v21, %v1532_v3  ;;  %v1582_v1 = vsel %vm1416_vm4, %v5707_v30, 0.0  ;;  %v1555_v23 = vrot.slane %v1554_v54, 1  ;;  %v2302_v3 = vld [vmem:[#allocation2 + $0xf4] sm:$0xff]  ;;  %v5797_v21 = vpop.f32.mrb[92].mxu1 }
 0x1b7   :  { %v1545_v5 = vadd.f32 %v1544_v29, %v1543_v39  ;;  %v1620_v40 = vsel %vm1606_vm5, %v1523_v52, %v1512_v41  ;;  %v1565_v22 = vadd.f32 %v1564_v37, %v1563_v16  ;;  %v1575_v28 = vrot.slane %v1574_v63, 2  ;;  %v2620_v39 = vld [vmem:[#allocation2 + $0xcb] sm:$0xff]  ;;  %v5788_v16 = vpop.f32.mrb[93].mxu0  ;;  %v2305_v43 = vld [vmem:[#allocation2 + $0x114] sm:$0xff] }
 0x1b8   :  { %v1583_v19 = vadd.f32 %v1582_v1, %v1581_v24  ;;  %v1621_v33 = vsel %vm1608_vm6, %v1534_v14, %v1620_v40  ;;  %v2333_v27 = vadd.f32 %v5711_v58, %v2301_v46  ;;  %v2332_v6 = vadd.f32 %v2300_v55, %v5718_v0  ;;  %v2304_v41 = vld [vmem:[#allocation2 + $0x10c] sm:$0xff]  ;;  %v2306_v24 = vld [vmem:[#allocation2 + $0x124] sm:$0xff]  ;;  %v2308_v14 = vld [vmem:[#allocation2 + $0x13c] sm:$0xff]  ;;  %v5800_v1 = vpop.f32.mrb[93].mxu1 }
 0x1b9   :  { %v2650_v30 = vadd.f32 %v5666_v53, %v2618_v8  ;;  %v1556_v7 = vadd.f32 %v1555_v23, %v1554_v54  ;;  %v1566_v47 = vrot.slane %v1565_v22, 1  ;;  %v1576_v36 = vadd.f32 %v1575_v28, %v1574_v63  ;;  %v2307_v52 = vld [vmem:[#allocation2 + $0x12c] sm:$0xff]  ;;  %v2309_v8 = vld [vmem:[#allocation2 + $0x144] sm:$0xff]  ;;  %v2310_v55 = vld [vmem:[#allocation2 + $0x154] sm:$0xff] }
 0x1ba   :  { %v1584_v62 = vrot.slane %v1583_v19, 4  ;;  %v1622_v59 = vsel %vm1610_vm7, %v1545_v5, %v1621_v33  ;;  %2365 = vst.msk [vmem:[#allocation2 + $0xe4] sm:$0xff] %vm410_vm3, %v2333_v27  ;;  %2364 = vst.msk [vmem:[#allocation2 + $0xdc] sm:$0xff] %vm410_vm3, %v2332_v6  ;;  %v2649_v53 = vadd.f32 %v2617_v60, %v5673_v38  ;;  %v2335_v58 = vadd.f32 %v5730_v42, %v2303_v31  ;;  %v2311_v5 = vld [vmem:[#allocation2 + $0x15c] sm:$0xff]  ;;  %v5804_v42 = vld [vmem:[#allocation2 + $0x8] sm:$0xff]  ;;  %v3957_v60 = vpop.f32.mrb[94].mxu0 }
 0x1bb   :  { %2682 = vst.msk [vmem:[#allocation2 + $0xb3] sm:$0xff] %vm410_vm3, %v2650_v30  ;;  %v2334_v0 = vadd.f32 %v2302_v3, %v5738_v13  ;;  %v1567_v29 = vadd.f32 %v1566_v47, %v1565_v22  ;;  %v1577_v54 = vrot.slane %v1576_v36, 1  ;;  %v1623_v63 = vsel %vm1612_vm8, %v1556_v7, %v1622_v59  ;;  %v5802_v38 = vld [vmem:[#allocation2] sm:$0xff]  ;;  %v5806_v13 = vld [vmem:[#allocation2 + $0x10] sm:$0x7f]  ;;  %v5819_v27 = vld [vmem:[#allocation2 + $0x18] sm:$0xff] }
 0x1bc   :  { %v1585_v37 = vadd.f32 %v1584_v62, %v1583_v19  ;;  %v5808_v40 = vld [vmem:[#allocation2 + $0x1] sm:$0xff]  ;;  %v5810_v23 = vld [vmem:[#allocation2 + $0x9] sm:$0xff]  ;;  %2681 = vst.msk [vmem:[#allocation2 + $0xab] sm:$0xff] %vm410_vm3, %v2649_v53  ;;  %2367 = vst.msk [vmem:[#allocation2 + $0xfc] sm:$0xff] %vm410_vm3, %v2335_v58  ;;  %v2652_v22 = vadd.f32 %v5688_v4, %v2620_v39  ;;  %v2651_v28 = vadd.f32 %v2619_v50, %v5701_v18  ;;  %v2273_v62 = vpop.f32.mrb[95].mxu0 }
 0x1bd   :  { %2366 = vst.msk [vmem:[#allocation2 + $0xf4] sm:$0xff] %vm410_vm3, %v2334_v0  ;;  %v2337_v19 = vadd.f32 %v5747_v17, %v2305_v43  ;;  %v2336_v46 = vadd.f32 %v2304_v41, %v5751_v32  ;;  %v2313_v33 = vld [vmem:[#allocation2 + $0x174] sm:$0xff]  ;;  %v5821_v6 = vld [vmem:[#allocation2 + $0x20] sm:$0xff]  ;;  %v5823_v30 = vld [vmem:[#allocation2 + $0x28] sm:$0x7f]  ;;  %v1578_v18 = vadd.f32 %v1577_v54, %v1576_v36  ;;  %v1624_v17 = vsel %vm1614_vm9, %v1567_v29, %v1623_v63  ;;  %v5851_v41 = vpop.f32.mrb[94].mxu1 }
 0x1be   :  { %6380 = vst [vmem:[#allocation11_spill] sm:$0xff] %v5823_v30  ;;  %v5825_v31 = vld [vmem:[#allocation2 + $0x11] sm:$0x7f]  ;;  %v5827_v7 = vld [vmem:[#allocation2 + $0x19] sm:$0xff]  ;;  %v5829_v4 = vld [vmem:[#allocation2 + $0x21] sm:$0xff]  ;;  %v1586_v47 = vrot.slane %v1585_v37, 2  ;;  %v2339_v32 = vadd.f32 %v5759_v12, %v2307_v52  ;;  %v2338_v12 = vadd.f32 %v2306_v24, %v5763_v9  ;;  %v2341_v36 = vadd.f32 %v5771_v20, %v2309_v8 }
 0x1bf   :  { %v2312_v3 = vld [vmem:[#allocation2 + $0x16c] sm:$0xff]  ;;  %v5835_v50 = vld [vmem:[#allocation2 + $0x38] sm:$0xff]  ;;  %2684 = vst.msk [vmem:[#allocation2 + $0xcb] sm:$0xff] %vm410_vm3, %v2652_v22  ;;  %2683 = vst.msk [vmem:[#allocation2 + $0xc3] sm:$0xff] %vm410_vm3, %v2651_v28  ;;  %v2340_v0 = vadd.f32 %v2308_v14, %v5773_v56  ;;  %v2343_v43 = vadd.f32 %v5786_v26, %v2311_v5  ;;  %v1625_v20 = vsel %vm1616_vm10, %v1578_v18, %v1624_v17  ;;  %v5868_v24 = vpop.f32.mrb[95].mxu1 }
 0x1c0   :  { %v5833_v39 = vld [vmem:[#allocation2 + $0x30] sm:$0xff]  ;;  %v5837_v59 = vld [vmem:[#allocation2 + $0x29] sm:$0x7f]  ;;  %v5841_v58 = vld [vmem:[#allocation2 + $0x39] sm:$0xff]  ;;  %2369 = vst.msk [vmem:[#allocation2 + $0x114] sm:$0xff] %vm410_vm3, %v2337_v19  ;;  %v1587_v9 = vadd.f32 %v1586_v47, %v1585_v37  ;;  %v2342_v56 = vadd.f32 %v2310_v55, %v5788_v16  ;;  %v2345_v26 = vadd.f32 %v3957_v60, %v2313_v33  ;;  %v2344_v16 = vadd.f32 %v2312_v3, %v2273_v62 }
 0x1c1   :  { %6381 = vst [vmem:[#allocation12_spill] sm:$0xff] %v5837_v59  ;;  %v5839_v53 = vld [vmem:[#allocation2 + $0x31] sm:$0xff]  ;;  %6382 = vst [vmem:[#allocation16_spill] sm:$0xff] %v5841_v58  ;;  %v5853_v52 = vld [vmem:[#allocation2 + $0x40] sm:$0x7f] }
 0x1c2   :  { %2368 = vst.msk [vmem:[#allocation2 + $0x10c] sm:$0xff] %vm410_vm3, %v2336_v46  ;;  %v5855_v29 = vld [vmem:[#allocation2 + $0x48] sm:$0xff]  ;;  %v5857_v54 = vld [vmem:[#allocation2 + $0x50] sm:$0xff]  ;;  %v5859_v63 = vld [vmem:[#allocation2 + $0x41] sm:$0x7f]  ;;  %v1588_v62 = vrot.slane %v1587_v9, 1 }
 0x1c3   :  { %v5861_v22 = vld [vmem:[#allocation2 + $0x49] sm:$0xff]  ;;  %v5863_v28 = vld [vmem:[#allocation2 + $0x51] sm:$0xff]  ;;  %2371 = vst.msk [vmem:[#allocation2 + $0x12c] sm:$0xff] %vm410_vm3, %v2339_v32  ;;  %v5872_v14 = vld [vmem:[#allocation2 + $0x60] sm:$0xff] }
 0x1c4   :  { %6383 = vst [vmem:[#allocation17_spill] sm:$0xff] %v5863_v28  ;;  %v5870_v8 = vld [vmem:[#allocation2 + $0x58] sm:$0x7f]  ;;  %6384 = vst [vmem:[#allocation18_spill] sm:$0xff] %v5872_v14  ;;  %v5876_v19 = vld [vmem:[#allocation2 + $0x61] sm:$0xff] }
 0x1c5   :  { %v5874_v5 = vld [vmem:[#allocation2 + $0x59] sm:$0x7f]  ;;  %6385 = vst [vmem:[#allocation19_spill] sm:$0xff] %v5876_v19  ;;  %2370 = vst.msk [vmem:[#allocation2 + $0x124] sm:$0xff] %vm410_vm3, %v2338_v12  ;;  %v5882_v37 = vld [vmem:[#allocation2 + $0x68] sm:$0xff] }
 0x1c6   :  { %2373 = vst.msk [vmem:[#allocation2 + $0x144] sm:$0xff] %vm410_vm3, %v2341_v36  ;;  %2372 = vst.msk [vmem:[#allocation2 + $0x13c] sm:$0xff] %vm410_vm3, %v2340_v0  ;;  %v5884_v46 = vld [vmem:[#allocation2 + $0x70] sm:$0x7f]  ;;  %v5886_v55 = vld [vmem:[#allocation2 + $0x78] sm:$0xff] }
 0x1c7   :  { %2375 = vst.msk [vmem:[#allocation2 + $0x15c] sm:$0xff] %vm410_vm3, %v2343_v43  ;;  %v5888_v60 = vld [vmem:[#allocation2 + $0x69] sm:$0xff]  ;;  %v5890_v33 = vld [vmem:[#allocation2 + $0x71] sm:$0x7f]  ;;  %v5892_v18 = vld [vmem:[#allocation2 + $0x79] sm:$0xff] }
 0x1c8   :  { %v2622_v3 = vld [vmem:[#allocation2 + $0xe3] sm:$0xff]  ;;  %v2621_v12 = vld [vmem:[#allocation2 + $0xdb] sm:$0xff]  ;;  %2374 = vst.msk [vmem:[#allocation2 + $0x154] sm:$0xff] %vm410_vm3, %v2342_v56  ;;  %2377 = vst.msk [vmem:[#allocation2 + $0x174] sm:$0xff] %vm410_vm3, %v2345_v26 }
 0x1c9   :  { %v5902_v36 = vld [vmem:[#allocation2 + $0x80] sm:$0xff]  ;;  %v2654_v47 = vadd.f32 %v5724_v48, %v2622_v3  ;;  %v2653_v49 = vadd.f32 %v2621_v12, %v5732_v2  ;;  %2376 = vst.msk [vmem:[#allocation2 + $0x16c] sm:$0xff] %vm410_vm3, %v2344_v16  ;;  %v5915_v56 = vld [vmem:[#allocation2 + $0x88] sm:$0x7f]  ;;  %v5917_v26 = vld [vmem:[#allocation2 + $0x90] sm:$0xff]  ;;  %v1589_v3 = vadd.f32 %v1588_v62, %v1587_v9 }
 0x1ca   :  { %v5904_v0 = vld [vmem:[#allocation2 + $0x81] sm:$0xff]  ;;  %v5923_v43 = vld [vmem:[#allocation2 + $0x91] sm:$0xff]  ;;  %v5929_v16 = vld [vmem:[#allocation2 + $0x99] sm:$0xff] }
 0x1cb   :  { %v2624_v2 = vld [vmem:[#allocation2 + $0xfb] sm:$0xff]  ;;  %v2623_v12 = vld [vmem:[#allocation2 + $0xf3] sm:$0xff]  ;;  %2686 = vst.msk [vmem:[#allocation2 + $0xe3] sm:$0xff] %vm410_vm3, %v2654_v47  ;;  %2685 = vst.msk [vmem:[#allocation2 + $0xdb] sm:$0xff] %vm410_vm3, %v2653_v49  ;;  %v1626_v47 = vsel %vm1618_vm11, %v1589_v3, %v1625_v20 }
 0x1cc   :  { %v2656_v48 = vadd.f32 %v5740_v45, %v2624_v2  ;;  %v2655_v9 = vadd.f32 %v2623_v12, %v5745_v35  ;;  %v5941_v62 = vld [vmem:[#allocation2 + $0xa8] sm:$0xff]  ;;  %v5945_v58 = vld [vmem:[#allocation2 + $0xa1] sm:$0x7f]  ;;  %v2626_v32 = vld [vmem:[#allocation2 + $0x113] sm:$0xff]  ;;  %v2808_v35 = vmax.f32 %v5882_v37, %v5888_v60  ;;  %v2809_v2 = vmax.f32 %v5884_v46, %v5890_v33 }
 0x1cd   :  { %v5943_v17 = vld [vmem:[#allocation2 + $0x89] sm:$0x7f]  ;;  %v5952_v28 = vld [vmem:[#allocation2 + $0xb8] sm:$0x7f]  ;;  %v2810_v12 = vmax.f32 %v5886_v55, %v5892_v18  ;;  %v1632_v59 = vsel %vm410_vm3, %v1626_v47, 0.0  ;;  %v2658_v20 = vadd.f32 %v5753_v10, %v2626_v32  ;;  %v2721_v30 = vld [vmem:[#allocation2 + $0xb0] sm:$0xff]  ;;  %v2811_v37 = vmax.f32 %v5902_v36, %v5904_v0 }
 0x1ce   :  { %v2625_v49 = vld [vmem:[#allocation2 + $0x10b] sm:$0xff]  ;;  %2688 = vst.msk [vmem:[#allocation2 + $0xfb] sm:$0xff] %vm410_vm3, %v2656_v48  ;;  %2687 = vst.msk [vmem:[#allocation2 + $0xf3] sm:$0xff] %vm410_vm3, %v2655_v9  ;;  %v2770_v14 = vld [vmem:[#allocation2 + $0xb9] sm:$0x7f]  ;;  %1633 = vadd.xlane.f32.xlu0 %v1632_v59  ;;  %v2812_v33 = vmax.f32 %v5915_v56, %v5943_v17  ;;  %v2813_v18 = vmax.f32 %v5917_v26, %v5923_v43  ;;  %v2814_v10 = vmax.f32 %v5919_v11, %v5929_v16 }
 0x1cf   :  { %v5954_v45 = vld [vmem:[#allocation2 + $0xa9] sm:$0xff]  ;;  %v2657_v3 = vadd.f32 %v2625_v49, %v5757_v61  ;;  %v2769_v19 = vld [vmem:[#allocation2 + $0xb1] sm:$0xff]  ;;  %v2815_v61 = vmax.f32 %v5921_v15, %v5945_v58  ;;  %2690 = vst.msk [vmem:[#allocation2 + $0x113] sm:$0xff] %vm410_vm3, %v2658_v20  ;;  %v2629_v17 = vld [vmem:[#allocation2 + $0x13b] sm:$0xff]  ;;  %v6398_v47 = vmax.f32 %v5855_v29, %v5861_v22  ;;  %v2857_v29 = vadd.f32 %v5422_v44, %v2809_v2 }
 0x1d0   :  { %v2628_v46 = vld [vmem:[#allocation2 + $0x12b] sm:$0xff]  ;;  %v2627_v60 = vld [vmem:[#allocation2 + $0x123] sm:$0xff]  ;;  %v2632_v0 = vld [vmem:[#allocation2 + $0x15b] sm:$0xff]  ;;  %v2816_v43 = vmax.f32 %v5941_v62, %v5954_v45  ;;  %v2661_v11 = vadd.f32 %v2629_v17, %v5780_v25  ;;  %v2817_v16 = vmax.f32 %v2721_v30, %v2769_v19  ;;  %v6386_v25 = vmax.f32 %v5802_v38, %v5808_v40 }
 0x1d1   :  { %v2630_v55 = vld [vmem:[#allocation2 + $0x143] sm:$0xff]  ;;  %2689 = vst.msk [vmem:[#allocation2 + $0x10b] sm:$0xff] %vm410_vm3, %v2657_v3  ;;  %v2660_v59 = vadd.f32 %v5765_v57, %v2628_v46  ;;  %v2659_v32 = vadd.f32 %v2627_v60, %v5769_v51  ;;  %v2631_v56 = vld [vmem:[#allocation2 + $0x153] sm:$0xff]  ;;  %v2664_v15 = vadd.f32 %v5797_v21, %v2632_v0  ;;  %v2633_v48 = vld [vmem:[#allocation2 + $0x16b] sm:$0xff]  ;;  %v6389_v38 = vmax.f32 %v5819_v27, %v5827_v7 }
 0x1d2   :  { %v2662_v36 = vadd.f32 %v5778_v34, %v2630_v55  ;;  %v2663_v58 = vadd.f32 %v2631_v56, %v5800_v1  ;;  %v2634_v26 = vld [vmem:[#allocation2 + $0x173] sm:$0xff]  ;;  %v2665_v51 = vadd.f32 %v2633_v48, %v5868_v24  ;;  %v2818_v34 = vmax.f32 %v5952_v28, %v2770_v14  ;;  %2693 = vst.msk [vmem:[#allocation2 + $0x13b] sm:$0xff] %vm410_vm3, %v2661_v11  ;;  %v6395_v7 = vld [vmem:[#allocation16_spill] sm:$0xff]  ;;  %v6403_v46 = vld [vmem:[#allocation19_spill] sm:$0xff] }
 0x1d3   :  { %2692 = vst.msk [vmem:[#allocation2 + $0x12b] sm:$0xff] %vm410_vm3, %v2660_v59  ;;  %2691 = vst.msk [vmem:[#allocation2 + $0x123] sm:$0xff] %vm410_vm3, %v2659_v32  ;;  %v2666_v57 = vadd.f32 %v5851_v41, %v2634_v26  ;;  %v2843_v21 = vadd.f32 %v5422_v44, %v6386_v25  ;;  %v6387_v1 = vmax.f32 %v5804_v42, %v5810_v23  ;;  %v6391_v42 = vld [vmem:[#allocation11_spill] sm:$0xff]  ;;  %v6392_v23 = vld [vmem:[#allocation12_spill] sm:$0xff]  ;;  %v2905_v48 = vmax.f32 %v2857_v29, 0.0 }
 0x1d4   :  { %2694 = vst.msk [vmem:[#allocation2 + $0x143] sm:$0xff] %vm410_vm3, %v2662_v36  ;;  %2696 = vst.msk [vmem:[#allocation2 + $0x15b] sm:$0xff] %vm410_vm3, %v2664_v15  ;;  %v6388_v41 = vmax.f32 %v5806_v13, %v5825_v31  ;;  %v2846_v40 = vadd.f32 %v5422_v44, %v6389_v38  ;;  %v6390_v24 = vmax.f32 %v5821_v6, %v5829_v4  ;;  %v6399_v45 = vld [vmem:[#allocation17_spill] sm:$0xff]  ;;  %v6402_v3 = vld [vmem:[#allocation18_spill] sm:$0xff] }
 0x1d5   :  { %2695 = vst.msk [vmem:[#allocation2 + $0x153] sm:$0xff] %vm410_vm3, %v2663_v58  ;;  %v2844_v30 = vadd.f32 %v5422_v44, %v6387_v1  ;;  %2698 = vst.msk [vmem:[#allocation2 + $0x173] sm:$0xff] %vm410_vm3, %v2666_v57  ;;  %v6393_v19 = vmax.f32 %v6391_v42, %v6392_v23  ;;  %v6394_v31 = vmax.f32 %v5833_v39, %v5839_v53  ;;  %v2891_v17 = vmax.f32 %v2843_v21, 0.0 }
 0x1d6   :  { %v2845_v28 = vadd.f32 %v5422_v44, %v6388_v41  ;;  %v2847_v14 = vadd.f32 %v5422_v44, %v6390_v24  ;;  %2697 = vst.msk [vmem:[#allocation2 + $0x16b] sm:$0xff] %vm410_vm3, %v2665_v51  ;;  %v6396_v9 = vmax.f32 %v5835_v50, %v6395_v7  ;;  %v6397_v4 = vmax.f32 %v5853_v52, %v5859_v63 }
 0x1d7   :  { %v2848_v13 = vadd.f32 %v5422_v44, %v6393_v19  ;;  %v2849_v27 = vadd.f32 %v5422_v44, %v6394_v31  ;;  %v2852_v49 = vadd.f32 %v5422_v44, %v6398_v47  ;;  %v6400_v39 = vmax.f32 %v5857_v54, %v6399_v45 }
 0x1d8   :  { %v2850_v6 = vadd.f32 %v5422_v44, %v6396_v9  ;;  %v2851_v62 = vadd.f32 %v5422_v44, %v6397_v4  ;;  %v6401_v50 = vmax.f32 %v5870_v8, %v5874_v5  ;;  %v6404_v52 = vmax.f32 %v6402_v3, %v6403_v46 }
 0x1d9   :  { %v2853_v53 = vadd.f32 %v5422_v44, %v6400_v39  ;;  %v2856_v60 = vadd.f32 %v5422_v44, %v2808_v35  ;;  %v2858_v22 = vadd.f32 %v5422_v44, %v2810_v12  ;;  %v2859_v54 = vadd.f32 %v5422_v44, %v2811_v37 }
 0x1da   :  { %v2854_v20 = vadd.f32 %v5422_v44, %v6401_v50  ;;  %v2855_v63 = vadd.f32 %v5422_v44, %v6404_v52  ;;  %v2860_v55 = vadd.f32 %v5422_v44, %v2812_v33  ;;  %v2861_v59 = vadd.f32 %v5422_v44, %v2813_v18 }
 0x1db   :  { %v2862_v8 = vadd.f32 %v5422_v44, %v2814_v10  ;;  %v2863_v5 = vadd.f32 %v5422_v44, %v2815_v61  ;;  %v2864_v32 = vadd.f32 %v5422_v44, %v2816_v43  ;;  %v2865_v36 = vadd.f32 %v5422_v44, %v2817_v16 }
 0x1dc   :  { %v2866_v35 = vadd.f32 %v5422_v44, %v2818_v34  ;;  %v2892_v2 = vmax.f32 %v2844_v30, 0.0  ;;  %v2893_v0 = vmax.f32 %v2845_v28, 0.0  ;;  %v2894_v12 = vmax.f32 %v2846_v40, 0.0  ;;  %v6405_v30 = vld [vmem:[#allocation14_spill] sm:$0xff]  ;;  %v6406_v28 = vld [vmem:[#allocation13_spill] sm:$0xff]  ;;  %v6407_v40 = vld [vmem:[#allocation15_spill] sm:$0xff] }
 0x1dd   :  { %v2895_v56 = vmax.f32 %v2847_v14, 0.0  ;;  %v2896_v37 = vmax.f32 %v2848_v13, 0.0  ;;  %v2897_v11 = vmax.f32 %v2849_v27, 0.0  ;;  %v2898_v33 = vmax.f32 %v2850_v6, 0.0 }
 0x1de   :  { %v2899_v15 = vmax.f32 %v2851_v62, 0.0  ;;  %v2900_v18 = vmax.f32 %v2852_v49, 0.0  ;;  %v2901_v58 = vmax.f32 %v2853_v53, 0.0  ;;  %v2902_v10 = vmax.f32 %v2854_v20, 0.0 }
 0x1df   :  { %v2903_v26 = vmax.f32 %v2855_v63, 0.0  ;;  %v2904_v61 = vmax.f32 %v2856_v60, 0.0  ;;  %v2906_v43 = vmax.f32 %v2858_v22, 0.0  ;;  %v2907_v57 = vmax.f32 %v2859_v54, 0.0 }
 0x1e0   :  { %v2908_v16 = vmax.f32 %v2860_v55, 0.0  ;;  %v2909_v51 = vmax.f32 %v2861_v59, 0.0  ;;  %v2910_v44 = vmax.f32 %v2862_v8, 0.0  ;;  %v2911_v34 = vmax.f32 %v2863_v5, 0.0 }
 0x1e1   :  { %v2912_v25 = vmax.f32 %v2864_v32, 0.0  ;;  %v2913_v21 = vmax.f32 %v2865_v36, 0.0  ;;  %v2914_v1 = vmax.f32 %v2866_v35, 0.0  ;;  %v2939_v41 = vmul.f32 %v6405_v30, %v2891_v17 }
 0x1e2   :  { %v2940_v38 = vmul.f32 %v6406_v28, %v2892_v2  ;;  %v2941_v24 = vmul.f32 %v6407_v40, %v2893_v0  ;;  %v2942_v14 = vmul.f32 %v6405_v30, %v2894_v12  ;;  %v2943_v42 = vmul.f32 %v6406_v28, %v2895_v56 }
 0x1e3   :  { %v2944_v23 = vmul.f32 %v6407_v40, %v2896_v37  ;;  %v2945_v19 = vmul.f32 %v6405_v30, %v2897_v11  ;;  %v2946_v13 = vmul.f32 %v6406_v28, %v2898_v33  ;;  %v2947_v31 = vmul.f32 %v6407_v40, %v2899_v15 }
 0x1e4   :  { %v2948_v27 = vmul.f32 %v6405_v30, %v2900_v18  ;;  %v2949_v7 = vmul.f32 %v6406_v28, %v2901_v58  ;;  %v2950_v9 = vmul.f32 %v6407_v40, %v2902_v10  ;;  %v2951_v6 = vmul.f32 %v6405_v30, %v2903_v26 }
 0x1e5   :  { %v2952_v4 = vmul.f32 %v6406_v28, %v2904_v61  ;;  %v2953_v62 = vmul.f32 %v6407_v40, %v2905_v48  ;;  %v2954_v47 = vmul.f32 %v6405_v30, %v2906_v43  ;;  %v2955_v49 = vmul.f32 %v6406_v28, %v2907_v57 }
 0x1e6   :  { %v2956_v45 = vmul.f32 %v6407_v40, %v2908_v16  ;;  %v2957_v39 = vmul.f32 %v6405_v30, %v2909_v51  ;;  %v2958_v53 = vmul.f32 %v6406_v28, %v2910_v44  ;;  %v2959_v50 = vmul.f32 %v6407_v40, %v2911_v34 }
 0x1e7   :  { %v2960_v20 = vmul.f32 %v6405_v30, %v2912_v25  ;;  %v2961_v3 = vmul.f32 %v6406_v28, %v2913_v21  ;;  %v6085_v46 = vmul.f32 %v6407_v40, %v2914_v1  ;;  %v2987_v52 = vsel %vm410_vm3, %v2939_v41, 0.0 }
 0x1e8   :  { %v2988_v63 = vsel %vm410_vm3, %v2940_v38, 0.0  ;;  %v2990_v60 = vsel %vm1416_vm4, %v2941_v24, 0.0  ;;  %v2998_v29 = vsel %vm410_vm3, %v2942_v14, 0.0  ;;  %v2999_v22 = vsel %vm410_vm3, %v2943_v42, 0.0 }
 0x1e9   :  { %v2989_v54 = vadd.f32 %v2988_v63, %v2987_v52  ;;  %v3000_v55 = vadd.f32 %v2999_v22, %v2998_v29  ;;  %v3001_v59 = vsel %vm1416_vm4, %v2944_v23, 0.0  ;;  %v3009_v8 = vsel %vm410_vm3, %v2945_v19, 0.0 }
 0x1ea   :  { %v3010_v5 = vsel %vm410_vm3, %v2946_v13, 0.0  ;;  %v3012_v32 = vsel %vm1416_vm4, %v2947_v31, 0.0  ;;  %v3020_v36 = vsel %vm410_vm3, %v2948_v27, 0.0  ;;  %v3021_v35 = vsel %vm410_vm3, %v2949_v7, 0.0 }
 0x1eb   :  { %v2991_v17 = vadd.f32 %v2990_v60, %v2989_v54  ;;  %v3002_v2 = vadd.f32 %v3001_v59, %v3000_v55  ;;  %v3011_v0 = vadd.f32 %v3010_v5, %v3009_v8  ;;  %v3022_v12 = vadd.f32 %v3021_v35, %v3020_v36  ;;  %v6110_v8 = vld [vmem:[#allocation2 + $0xc0] sm:$0xff]  ;;  %v6114_v5 = vld [vmem:[#allocation2 + $0xd0] sm:$0x7f] }
 0x1ec   :  { %v3023_v56 = vsel %vm1416_vm4, %v2950_v9, 0.0  ;;  %v3031_v37 = vsel %vm410_vm3, %v2951_v6, 0.0  ;;  %v3032_v11 = vsel %vm410_vm3, %v2952_v4, 0.0  ;;  %v3034_v33 = vsel %vm1416_vm4, %v2953_v62, 0.0  ;;  %v6118_v36 = vld [vmem:[#allocation2 + $0xc9] sm:$0xff] }
 0x1ed   :  { %v2992_v15 = vrot.slane %v2991_v17, 4  ;;  %v3003_v18 = vrot.slane %v3002_v2, 4  ;;  %v3013_v58 = vadd.f32 %v3012_v32, %v3011_v0  ;;  %v3024_v10 = vadd.f32 %v3023_v56, %v3022_v12  ;;  %v6116_v32 = vld [vmem:[#allocation2 + $0xc1] sm:$0xff]  ;;  %v6123_v0 = vld [vmem:[#allocation2 + $0xd8] sm:$0xff]  ;;  %v6125_v12 = vld [vmem:[#allocation2 + $0xd1] sm:$0x7f] }
 0x1ee   :  { %v3033_v26 = vadd.f32 %v3032_v11, %v3031_v37  ;;  %v3042_v61 = vsel %vm410_vm3, %v2954_v47, 0.0  ;;  %v3043_v48 = vsel %vm410_vm3, %v2955_v49, 0.0  ;;  %v3045_v43 = vsel %vm1416_vm4, %v2956_v45, 0.0  ;;  %v6127_v56 = vld [vmem:[#allocation2 + $0xd9] sm:$0xff] }
 0x1ef   :  { %v2993_v57 = vadd.f32 %v2992_v15, %v2991_v17  ;;  %v3004_v16 = vadd.f32 %v3003_v18, %v3002_v2  ;;  %v3014_v51 = vrot.slane %v3013_v58, 4  ;;  %v3025_v44 = vrot.slane %v3024_v10, 4  ;;  %v6129_v18 = vld [vmem:[#allocation2 + $0xe0] sm:$0xff] }
 0x1f0   :  { %v3035_v34 = vadd.f32 %v3034_v33, %v3033_v26  ;;  %v3044_v25 = vadd.f32 %v3043_v48, %v3042_v61  ;;  %v3053_v21 = vsel %vm410_vm3, %v2957_v39, 0.0  ;;  %v3054_v1 = vsel %vm410_vm3, %v2958_v53, 0.0  ;;  %v6135_v26 = vld [vmem:[#allocation2 + $0xe1] sm:$0xff]  ;;  %v6140_v48 = vld [vmem:[#allocation2 + $0xf8] sm:$0xff] }
 0x1f1   :  { %v2994_v30 = vrot.slane %v2993_v57, 2  ;;  %v3005_v41 = vrot.slane %v3004_v16, 2  ;;  %v3015_v28 = vadd.f32 %v3014_v51, %v3013_v58  ;;  %v3026_v38 = vadd.f32 %v3025_v44, %v3024_v10  ;;  %v6131_v58 = vld [vmem:[#allocation2 + $0xe8] sm:$0x7f]  ;;  %v6133_v10 = vld [vmem:[#allocation2 + $0xf0] sm:$0xff] }
 0x1f2   :  { %v3036_v40 = vrot.slane %v3035_v34, 4  ;;  %v3046_v24 = vadd.f32 %v3045_v43, %v3044_v25  ;;  %v3055_v14 = vadd.f32 %v3054_v1, %v3053_v21  ;;  %v3056_v42 = vsel %vm1416_vm4, %v2959_v50, 0.0  ;;  %v6142_v43 = vld [vmem:[#allocation2 + $0x100] sm:$0x7f]  ;;  %v6150_v1 = vld [vmem:[#allocation2 + $0x108] sm:$0xff] }
 0x1f3   :  { %v2995_v23 = vadd.f32 %v2994_v30, %v2993_v57  ;;  %v3006_v19 = vadd.f32 %v3005_v41, %v3004_v16  ;;  %v3016_v13 = vrot.slane %v3015_v28, 2  ;;  %v3027_v31 = vrot.slane %v3026_v38, 2  ;;  %v6144_v57 = vld [vmem:[#allocation2 + $0xf1] sm:$0xff]  ;;  %v6146_v16 = vld [vmem:[#allocation2 + $0xf9] sm:$0xff]  ;;  %v6148_v51 = vld [vmem:[#allocation2 + $0x101] sm:$0x7f] }
 0x1f4   :  { %v3037_v27 = vadd.f32 %v3036_v40, %v3035_v34  ;;  %v3047_v7 = vrot.slane %v3046_v24, 4  ;;  %v3057_v9 = vadd.f32 %v3056_v42, %v3055_v14  ;;  %v3064_v6 = vsel %vm410_vm3, %v2960_v20, 0.0  ;;  %v6112_v20 = vld [vmem:[#allocation2 + $0xc8] sm:$0xff]  ;;  %v6152_v30 = vld [vmem:[#allocation2 + $0x110] sm:$0xff]  ;;  %v6154_v41 = vld [vmem:[#allocation2 + $0x118] sm:$0x7f] }
 0x1f5   :  { %v2996_v4 = vrot.slane %v2995_v23, 1  ;;  %v3007_v62 = vrot.slane %v3006_v19, 1  ;;  %v3017_v47 = vadd.f32 %v3016_v13, %v3015_v28  ;;  %v3028_v49 = vadd.f32 %v3027_v31, %v3026_v38  ;;  %v6156_v28 = vld [vmem:[#allocation2 + $0x109] sm:$0xff]  ;;  %v6158_v38 = vld [vmem:[#allocation2 + $0x111] sm:$0xff]  ;;  %v6160_v40 = vld [vmem:[#allocation2 + $0x119] sm:$0x7f] }
 0x1f6   :  { %v3038_v45 = vrot.slane %v3037_v27, 2  ;;  %v3048_v39 = vadd.f32 %v3047_v7, %v3046_v24  ;;  %v3058_v53 = vrot.slane %v3057_v9, 4  ;;  %v3065_v52 = vsel %vm410_vm3, %v2961_v3, 0.0  ;;  %v6163_v14 = vld [vmem:[#allocation2 + $0x120] sm:$0xff]  ;;  %v6165_v42 = vld [vmem:[#allocation2 + $0x128] sm:$0xff] }
 0x1f7   :  { %v2997_v63 = vadd.f32 %v2996_v4, %v2995_v23  ;;  %v3008_v50 = vadd.f32 %v3007_v62, %v3006_v19  ;;  %v3018_v60 = vrot.slane %v3017_v47, 1  ;;  %v3029_v29 = vrot.slane %v3028_v49, 1  ;;  %v6167_v23 = vld [vmem:[#allocation2 + $0x130] sm:$0x7f]  ;;  %v6177_v4 = vld [vmem:[#allocation2 + $0x140] sm:$0xff] }
 0x1f8   :  { %v3039_v22 = vadd.f32 %v3038_v45, %v3037_v27  ;;  %v3049_v54 = vrot.slane %v3048_v39, 2  ;;  %v3059_v55 = vadd.f32 %v3058_v53, %v3057_v9  ;;  %v3066_v59 = vadd.f32 %v3065_v52, %v3064_v6  ;;  %v6175_v6 = vld [vmem:[#allocation2 + $0x138] sm:$0xff]  ;;  %v6179_v62 = vld [vmem:[#allocation2 + $0x148] sm:$0x7f]  ;;  %v6184_v45 = vld [vmem:[#allocation2 + $0x150] sm:$0xff] }
 0x1f9   :  { %v3019_v35 = vadd.f32 %v3018_v60, %v3017_v47  ;;  %v3030_v3 = vadd.f32 %v3029_v29, %v3028_v49  ;;  %v3067_v17 = vsel %vm1416_vm4, %v6085_v46, 0.0  ;;  %v3179_v2 = vsel %vm1606_vm5, %v3008_v50, %v2997_v63  ;;  %v6137_v46 = vld [vmem:[#allocation2 + $0xe9] sm:$0x7f]  ;;  %v6188_v53 = vld [vmem:[#allocation2 + $0x160] sm:$0x7f] }
 0x1fa   :  { %v3040_v37 = vrot.slane %v3039_v22, 1  ;;  %v3050_v11 = vadd.f32 %v3049_v54, %v3048_v39  ;;  %v3060_v33 = vrot.slane %v3059_v55, 2  ;;  %v3068_v15 = vadd.f32 %v3067_v17, %v3066_v59  ;;  %v6186_v39 = vld [vmem:[#allocation2 + $0x158] sm:$0xff]  ;;  %v2783_v52 = vld [vmem:[#allocation2 + $0x121] sm:$0xff]  ;;  %v2784_v63 = vld [vmem:[#allocation2 + $0x129] sm:$0xff] }
 0x1fb   :  { %v3180_v61 = vsel %vm1608_vm6, %v3019_v35, %v3179_v2  ;;  %v2819_v19 = vmax.f32 %v6110_v8, %v6116_v32  ;;  %v2820_v13 = vmax.f32 %v6112_v20, %v6118_v36  ;;  %v2821_v31 = vmax.f32 %v6114_v5, %v6125_v12  ;;  %v2785_v50 = vld [vmem:[#allocation2 + $0x131] sm:$0x7f]  ;;  %v2744_v59 = vld [vmem:[#allocation2 + $0x168] sm:$0xff]  ;;  %v2746_v20 = vld [vmem:[#allocation2 + $0x178] sm:$0x7f] }
 0x1fc   :  { %v3041_v44 = vadd.f32 %v3040_v37, %v3039_v22  ;;  %v3051_v34 = vrot.slane %v3050_v11, 1  ;;  %v3061_v25 = vadd.f32 %v3060_v33, %v3059_v55  ;;  %v3069_v21 = vrot.slane %v3068_v15, 4  ;;  %v2745_v8 = vld [vmem:[#allocation2 + $0x170] sm:$0xff]  ;;  %v2786_v5 = vld [vmem:[#allocation2 + $0x139] sm:$0xff]  ;;  %v2787_v32 = vld [vmem:[#allocation2 + $0x141] sm:$0xff] }
 0x1fd   :  { %v3181_v24 = vsel %vm1610_vm7, %v3030_v3, %v3180_v61  ;;  %v2822_v47 = vmax.f32 %v6123_v0, %v6127_v56  ;;  %v2823_v60 = vmax.f32 %v6129_v18, %v6135_v26  ;;  %v2824_v29 = vmax.f32 %v6131_v58, %v6137_v46  ;;  %v2788_v36 = vld [vmem:[#allocation2 + $0x149] sm:$0x7f]  ;;  %v2789_v2 = vld [vmem:[#allocation2 + $0x151] sm:$0xff]  ;;  %v2790_v0 = vld [vmem:[#allocation2 + $0x159] sm:$0xff] }
 0x1fe   :  { %v3052_v27 = vadd.f32 %v3051_v34, %v3050_v11  ;;  %v3062_v7 = vrot.slane %v3061_v25, 1  ;;  %v3070_v9 = vadd.f32 %v3069_v21, %v3068_v15  ;;  %v3182_v49 = vsel %vm1612_vm8, %v3041_v44, %v3181_v24  ;;  %v2791_v12 = vld [vmem:[#allocation2 + $0x161] sm:$0x7f]  ;;  %v2792_v15 = vld [vmem:[#allocation2 + $0x169] sm:$0xff]  ;;  %v2793_v18 = vld [vmem:[#allocation2 + $0x171] sm:$0xff] }
 0x1ff   :  { %v2825_v22 = vmax.f32 %v6133_v10, %v6144_v57  ;;  %v2826_v35 = vmax.f32 %v6140_v48, %v6146_v16  ;;  %v2827_v3 = vmax.f32 %v6142_v43, %v6148_v51  ;;  %v2828_v56 = vmax.f32 %v6150_v1, %v6156_v28  ;;  %v2794_v58 = vld [vmem:[#allocation2 + $0x179] sm:$0x7f] }
 0x200   :  { %v3063_v54 = vadd.f32 %v3062_v7, %v3061_v25  ;;  %v3071_v55 = vrot.slane %v3070_v9, 2  ;;  %v3183_v17 = vsel %vm1614_vm9, %v3052_v27, %v3182_v49  ;;  %v2829_v37 = vmax.f32 %v6152_v30, %v6158_v38  ;;  %v4071_v30 = vld [vmem:[%s6314_s2] ss:$0 sm:$0xff] }
 0x201   :  { %v2830_v11 = vmax.f32 %v6154_v41, %v6160_v40  ;;  %v2831_v10 = vmax.f32 %v6163_v14, %v2783_v52  ;;  %v2832_v26 = vmax.f32 %v6165_v42, %v2784_v63  ;;  %v2833_v46 = vmax.f32 %v6167_v23, %v2785_v50 }
 0x202   :  { %v3072_v33 = vadd.f32 %v3071_v55, %v3070_v9  ;;  %v3184_v61 = vsel %vm1616_vm10, %v3063_v54, %v3183_v17  ;;  %v2834_v48 = vmax.f32 %v6175_v6, %v2786_v5  ;;  %v2835_v43 = vmax.f32 %v6177_v4, %v2787_v32 }
 0x203   :  { %v2836_v57 = vmax.f32 %v6179_v62, %v2788_v36  ;;  %v2837_v51 = vmax.f32 %v6184_v45, %v2789_v2  ;;  %v2838_v44 = vmax.f32 %v6186_v39, %v2790_v0  ;;  %v2839_v34 = vmax.f32 %v6188_v53, %v2791_v12 }
 0x204   :  { %v3073_v16 = vrot.slane %v3072_v33, 1  ;;  %v2840_v25 = vmax.f32 %v2744_v59, %v2792_v15  ;;  %v2841_v21 = vmax.f32 %v2745_v8, %v2793_v18  ;;  %v2842_v1 = vmax.f32 %v2746_v20, %v2794_v58 }
 0x205   :  { %v2867_v41 = vadd.f32 %v4071_v30, %v2819_v19  ;;  %v2868_v38 = vadd.f32 %v4071_v30, %v2820_v13  ;;  %v2869_v40 = vadd.f32 %v4071_v30, %v2821_v31  ;;  %v2870_v24 = vadd.f32 %v4071_v30, %v2822_v47 }
 0x206   :  { %v3074_v28 = vadd.f32 %v3073_v16, %v3072_v33  ;;  %v2871_v14 = vadd.f32 %v4071_v30, %v2823_v60  ;;  %v2872_v42 = vadd.f32 %v4071_v30, %v2824_v29  ;;  %v2873_v23 = vadd.f32 %v4071_v30, %v2825_v22 }
 0x207   :  { %v2874_v27 = vadd.f32 %v4071_v30, %v2826_v35  ;;  %v2875_v9 = vadd.f32 %v4071_v30, %v2827_v3  ;;  %v2876_v6 = vadd.f32 %v4071_v30, %v2828_v56  ;;  %v2877_v4 = vadd.f32 %v4071_v30, %v2829_v37 }
 0x208   :  { %v3185_v7 = vsel %vm1618_vm11, %v3074_v28, %v3184_v61  ;;  %v2878_v49 = vadd.f32 %v4071_v30, %v2830_v11  ;;  %v2879_v45 = vadd.f32 %v4071_v30, %v2831_v10  ;;  %v2880_v39 = vadd.f32 %v4071_v30, %v2832_v26 }
 0x209   :  { %v3195_v62 = vsel %vm410_vm3, %v3185_v7, 0.0  ;;  %v2881_v19 = vadd.f32 %v4071_v30, %v2833_v46  ;;  %v2882_v53 = vadd.f32 %v4071_v30, %v2834_v48  ;;  %v2883_v13 = vadd.f32 %v4071_v30, %v2835_v43  ;;  %v4072_v46 = vld [vmem:[%s6315_s3] sm:$0xff]  ;;  %v6234_v48 = vld [vmem:[%s6315_s3 + $0x8] sm:$0xff] }
 0x20a   :  { %3196 = vadd.xlane.f32.xlu1 %v3195_v62  ;;  %v2884_v31 = vadd.f32 %v4071_v30, %v2836_v57  ;;  %v2885_v47 = vadd.f32 %v4071_v30, %v2837_v51  ;;  %v2886_v52 = vadd.f32 %v4071_v30, %v2838_v44  ;;  %v2887_v63 = vadd.f32 %v4071_v30, %v2839_v34  ;;  %v6240_v57 = vld [vmem:[%s6315_s3 + $0x10] sm:$0x7f] }
 0x20b   :  { %v2888_v50 = vadd.f32 %v4071_v30, %v2840_v25  ;;  %v6222_v60 = vadd.f32 %v4071_v30, %v2841_v21  ;;  %v6224_v29 = vadd.f32 %v4071_v30, %v2842_v1  ;;  %v2915_v22 = vmax.f32 %v2867_v41, 0.0 }
 0x20c   :  { %v2916_v54 = vmax.f32 %v2868_v38, 0.0  ;;  %v2917_v55 = vmax.f32 %v2869_v40, 0.0  ;;  %v2918_v59 = vmax.f32 %v2870_v24, 0.0  ;;  %v2919_v8 = vmax.f32 %v2871_v14, 0.0 }
 0x20d   :  { %v2920_v20 = vmax.f32 %v2872_v42, 0.0  ;;  %v2921_v5 = vmax.f32 %v2873_v23, 0.0  ;;  %v2922_v32 = vmax.f32 %v2874_v27, 0.0  ;;  %v2923_v36 = vmax.f32 %v2875_v9, 0.0 }
 0x20e   :  { %v2924_v35 = vmax.f32 %v2876_v6, 0.0  ;;  %v2925_v3 = vmax.f32 %v2877_v4, 0.0  ;;  %v2926_v17 = vmax.f32 %v2878_v49, 0.0  ;;  %v2927_v2 = vmax.f32 %v2879_v45, 0.0 }
 0x20f   :  { %v2928_v0 = vmax.f32 %v2880_v39, 0.0  ;;  %v2929_v12 = vmax.f32 %v2881_v19, 0.0  ;;  %v2930_v56 = vmax.f32 %v2882_v53, 0.0  ;;  %v2931_v37 = vmax.f32 %v2883_v13, 0.0 }
 0x210   :  { %v2932_v11 = vmax.f32 %v2884_v31, 0.0  ;;  %v2933_v33 = vmax.f32 %v2885_v47, 0.0  ;;  %v2934_v15 = vmax.f32 %v2886_v52, 0.0  ;;  %v2935_v18 = vmax.f32 %v2887_v63, 0.0 }
 0x211   :  { %v2936_v58 = vmax.f32 %v2888_v50, 0.0  ;;  %v2937_v10 = vmax.f32 %v6222_v60, 0.0  ;;  %v2938_v26 = vmax.f32 %v6224_v29, 0.0  ;;  %v2963_v61 = vmul.f32 %v4072_v46, %v2915_v22 }
 0x212   :  { %v2964_v43 = vmul.f32 %v6234_v48, %v2916_v54  ;;  %v2965_v16 = vmul.f32 %v6240_v57, %v2917_v55  ;;  %v2966_v51 = vmul.f32 %v4072_v46, %v2918_v59  ;;  %v2967_v44 = vmul.f32 %v6234_v48, %v2919_v8 }
 0x213   :  { %v2968_v34 = vmul.f32 %v6240_v57, %v2920_v20  ;;  %v2969_v25 = vmul.f32 %v4072_v46, %v2921_v5  ;;  %v2970_v21 = vmul.f32 %v6234_v48, %v2922_v32  ;;  %v2971_v1 = vmul.f32 %v6240_v57, %v2923_v36 }
 0x214   :  { %v2972_v30 = vmul.f32 %v4072_v46, %v2924_v35  ;;  %v2973_v41 = vmul.f32 %v6234_v48, %v2925_v3  ;;  %v2974_v28 = vmul.f32 %v6240_v57, %v2926_v17  ;;  %v2975_v38 = vmul.f32 %v4072_v46, %v2927_v2 }
 0x215   :  { %v2976_v40 = vmul.f32 %v6234_v48, %v2928_v0  ;;  %v2977_v24 = vmul.f32 %v6240_v57, %v2929_v12  ;;  %v2978_v14 = vmul.f32 %v4072_v46, %v2930_v56  ;;  %v2979_v42 = vmul.f32 %v6234_v48, %v2931_v37 }
 0x216   :  { %v2980_v23 = vmul.f32 %v6240_v57, %v2932_v11  ;;  %v2981_v27 = vmul.f32 %v4072_v46, %v2933_v33  ;;  %v2982_v7 = vmul.f32 %v6234_v48, %v2934_v15  ;;  %v2983_v9 = vmul.f32 %v6240_v57, %v2935_v18 }
 0x217   :  { %v3075_v6 = vsel %vm410_vm3, %v2963_v61, 0.0  ;;  %v2984_v4 = vmul.f32 %v4072_v46, %v2936_v58  ;;  %v3076_v62 = vsel %vm410_vm3, %v2964_v43, 0.0  ;;  %v3086_v49 = vsel %vm410_vm3, %v2966_v51, 0.0 }
 0x218   :  { %v3087_v45 = vsel %vm410_vm3, %v2967_v44, 0.0  ;;  %v3077_v39 = vadd.f32 %v3076_v62, %v3075_v6  ;;  %v3078_v19 = vsel %vm1416_vm4, %v2965_v16, 0.0  ;;  %v3097_v13 = vsel %vm410_vm3, %v2969_v25, 0.0  ;;  %v1631_v29 = vpop.xlane.xlu0 %1630 }
 0x219   :  { %v3088_v53 = vadd.f32 %v3087_v45, %v3086_v49  ;;  %v3089_v31 = vsel %vm1416_vm4, %v2968_v34, 0.0  ;;  %v3098_v47 = vsel %vm410_vm3, %v2970_v21, 0.0  ;;  %v3108_v52 = vsel %vm410_vm3, %v2972_v30, 0.0  ;;  %1636 = vst.msk [vmem:[#allocation3] sm:$0xff] %vm1635_vm12, %v1631_v29 }
 0x21a   :  { %v3109_v63 = vsel %vm410_vm3, %v2973_v41, 0.0  ;;  %v3079_v50 = vadd.f32 %v3078_v19, %v3077_v39  ;;  %v3099_v54 = vadd.f32 %v3098_v47, %v3097_v13  ;;  %v3100_v59 = vsel %vm1416_vm4, %v2971_v1, 0.0 }
 0x21b   :  { %v3090_v22 = vadd.f32 %v3089_v31, %v3088_v53  ;;  %v3110_v55 = vadd.f32 %v3109_v63, %v3108_v52  ;;  %v3111_v8 = vsel %vm1416_vm4, %v2974_v28, 0.0  ;;  %v3119_v20 = vsel %vm410_vm3, %v2975_v38, 0.0 }
 0x21c   :  { %v3120_v5 = vsel %vm410_vm3, %v2976_v40, 0.0  ;;  %v3080_v32 = vrot.slane %v3079_v50, 4  ;;  %v3101_v35 = vadd.f32 %v3100_v59, %v3099_v54  ;;  %v3122_v2 = vsel %vm1416_vm4, %v2977_v24, 0.0 }
 0x21d   :  { %v3091_v36 = vrot.slane %v3090_v22, 4  ;;  %v3112_v3 = vadd.f32 %v3111_v8, %v3110_v55  ;;  %v3121_v17 = vadd.f32 %v3120_v5, %v3119_v20  ;;  %v3130_v0 = vsel %vm410_vm3, %v2978_v14, 0.0 }
 0x21e   :  { %v3131_v12 = vsel %vm410_vm3, %v2979_v42, 0.0  ;;  %v3081_v56 = vadd.f32 %v3080_v32, %v3079_v50  ;;  %v3102_v11 = vrot.slane %v3101_v35, 4  ;;  %v3141_v58 = vsel %vm410_vm3, %v2981_v27, 0.0 }
 0x21f   :  { %v3092_v37 = vadd.f32 %v3091_v36, %v3090_v22  ;;  %v3113_v33 = vrot.slane %v3112_v3, 4  ;;  %v3123_v15 = vadd.f32 %v3122_v2, %v3121_v17  ;;  %v3132_v18 = vadd.f32 %v3131_v12, %v3130_v0 }
 0x220   :  { %v3142_v46 = vsel %vm410_vm3, %v2982_v7, 0.0  ;;  %v3103_v43 = vadd.f32 %v3102_v11, %v3101_v35  ;;  %v3133_v51 = vsel %vm1416_vm4, %v2980_v23, 0.0  ;;  %v2985_v44 = vmul.f32 %v6234_v48, %v2937_v10  ;;  %v3204_v12 = vld [vmem:[#allocation3] sm:$0xff] }
 0x221   :  { %v3093_v61 = vrot.slane %v3092_v37, 2  ;;  %v3114_v16 = vadd.f32 %v3113_v33, %v3112_v3  ;;  %v3124_v34 = vrot.slane %v3123_v15, 4  ;;  %v3134_v25 = vadd.f32 %v3133_v51, %v3132_v18  ;;  %3208 = vxpose.xlu0.b32.start [1/4] (short) (narrow) %v3204_v12, 8 }
 0x222   :  { %v3143_v21 = vadd.f32 %v3142_v46, %v3141_v58  ;;  %v3082_v1 = vrot.slane %v3081_v56, 2  ;;  %v3104_v30 = vrot.slane %v3103_v43, 2  ;;  %v3144_v41 = vsel %vm1416_vm4, %v2983_v9, 0.0 }
 0x223   :  { %v3115_v28 = vrot.slane %v3114_v16, 2  ;;  %v3125_v38 = vadd.f32 %v3124_v34, %v3123_v15  ;;  %v3135_v40 = vrot.slane %v3134_v25, 4  ;;  %v2986_v14 = vmul.f32 %v6240_v57, %v2938_v26 }
 0x224   :  { %v3145_v24 = vadd.f32 %v3144_v41, %v3143_v21  ;;  %v3094_v42 = vadd.f32 %v3093_v61, %v3092_v37  ;;  %v3152_v60 = vsel %vm410_vm3, %v2984_v4, 0.0  ;;  %v3153_v27 = vsel %vm410_vm3, %v2985_v44, 0.0 }
 0x225   :  { %v3126_v23 = vrot.slane %v3125_v38, 2  ;;  %v3136_v10 = vadd.f32 %v3135_v40, %v3134_v25  ;;  %v3083_v7 = vadd.f32 %v3082_v1, %v3081_v56  ;;  %v3105_v6 = vadd.f32 %v3104_v30, %v3103_v43 }
 0x226   :  { %v3146_v48 = vrot.slane %v3145_v24, 4  ;;  %v3116_v62 = vadd.f32 %v3115_v28, %v3114_v16  ;;  %v3154_v45 = vadd.f32 %v3153_v27, %v3152_v60  ;;  %v3155_v19 = vsel %vm1416_vm4, %v2986_v14, 0.0 }
 0x227   :  { %v3137_v9 = vrot.slane %v3136_v10, 2  ;;  %v3127_v39 = vadd.f32 %v3126_v23, %v3125_v38  ;;  %v3095_v53 = vrot.slane %v3094_v42, 1  ;;  %v3106_v4 = vrot.slane %v3105_v6, 1 }
 0x228   :  { %v3147_v49 = vadd.f32 %v3146_v48, %v3145_v24  ;;  %v3156_v13 = vadd.f32 %v3155_v19, %v3154_v45  ;;  %v3084_v31 = vrot.slane %v3083_v7, 1  ;;  %v3117_v47 = vrot.slane %v3116_v62, 1 }
 0x229   :  { %v3138_v26 = vadd.f32 %v3137_v9, %v3136_v10  ;;  %v3128_v50 = vrot.slane %v3127_v39, 1  ;;  %v3096_v22 = vadd.f32 %v3095_v53, %v3094_v42  ;;  %v3107_v59 = vadd.f32 %v3106_v4, %v3105_v6 }
 0x22a   :  { %v3148_v57 = vrot.slane %v3147_v49, 2  ;;  %v3157_v63 = vrot.slane %v3156_v13, 4  ;;  %v3085_v20 = vadd.f32 %v3084_v31, %v3083_v7  ;;  %v3118_v5 = vadd.f32 %v3117_v47, %v3116_v62 }
 0x22b   :  { %v3139_v54 = vrot.slane %v3138_v26, 1  ;;  %v3129_v36 = vadd.f32 %v3128_v50, %v3127_v39  ;;  %v3241_v25 = vstv %s6316_s4 }
 0x22c   :  { %v3149_v52 = vadd.f32 %v3148_v57, %v3147_v49  ;;  %v3158_v55 = vadd.f32 %v3157_v63, %v3156_v13  ;;  %v3186_v17 = vsel %vm1606_vm5, %v3096_v22, %v3085_v20 }
 0x22d   :  { %v3140_v35 = vadd.f32 %v3139_v54, %v3138_v26  ;;  %v3187_v0 = vsel %vm1608_vm6, %v3107_v59, %v3186_v17 }
 0x22e   :  { %v3150_v8 = vrot.slane %v3149_v52, 1  ;;  %v3159_v32 = vrot.slane %v3158_v55, 2  ;;  %v3188_v37 = vsel %vm1610_vm7, %v3118_v5, %v3187_v0 }
 0x22f   :  { %v3189_v11 = vsel %vm1612_vm8, %v3129_v36, %v3188_v37 }
 0x230   :  { %v3160_v3 = vadd.f32 %v3159_v32, %v3158_v55  ;;  %v3151_v2 = vadd.f32 %v3150_v8, %v3149_v52  ;;  %v3190_v15 = vsel %vm1614_vm9, %v3140_v35, %v3189_v11 }
 0x232   :  { %v3161_v56 = vrot.slane %v3160_v3, 1  ;;  %v3191_v18 = vsel %vm1616_vm10, %v3151_v2, %v3190_v15 }
 0x234   :  { %v3162_v33 = vadd.f32 %v3161_v56, %v3160_v3 }
 0x236   :  { %v3192_v58 = vsel %vm1618_vm11, %v3162_v33, %v3191_v18 }
 0x237   :  { %v3198_v46 = vsel %vm410_vm3, %v3192_v58, 0.0 }
 0x238   :  { %3199 = vadd.xlane.f32.xlu1 %v3198_v46 }
 0x25b   :  { %v1634_v61 = vpop.xlane.xlu0 %1633 }
 0x25c   :  { %1637 = vst.msk [vmem:[#allocation3 + $0x8] sm:$0xff] %vm1635_vm12, %v1634_v61 }
 0x263   :  { %v3205_v43 = vld [vmem:[#allocation3 + $0x8] sm:$0xff] }
 0x264   :  { %3209 = vxpose.xlu0.b32.cont [2/4] (short) (narrow) %v3205_v43, 8 }
 0x297   :  { %v3197_v16 = vpop.xlane.xlu1 %3196 }
 0x298   :  { %3202 = vst.msk [vmem:[#allocation3 + $0x10] sm:$0xff] %vm1635_vm12, %v3197_v16 }
 0x29f   :  { %v3206_v51 = vld [vmem:[#allocation3 + $0x10] sm:$0xff] }
 0x2a0   :  { %3210 = vxpose.xlu0.b32.cont [3/4] (short) (narrow) %v3206_v51, 8 }
 0x2c5   :  { %v3200_v44 = vpop.xlane.xlu1 %3199 }
 0x2c6   :  { %3203 = vst.msk [vmem:[#allocation3 + $0x18] sm:$0xff] %vm1635_vm12, %v3200_v44 }
 0x2cd   :  { %v3207_v34 = vld [vmem:[#allocation3 + $0x18] sm:$0xff] }
 0x2ce   :  { %3211 = vxpose.xlu0.b32.end [4/4] (short) (narrow) %v3207_v34, 8 }
 0x342   :  { %v3224_v21 = vpop.trf.xlu0 }
 0x343   :  { %v3242_v1 = vadd.f32 %v3241_v25, %v3224_v21 }
 0x345   :  { %3244 = vst.msk [vmem:[#allocation8] sm:$0x1] %vm3243_vm13, %v3242_v1 }
 0x346   :  { %4108 = shalt.err (!%p4105_p12)
}
 0x347   :  { %s4109_s7 = scalar_lea.hbm %s6317_s5, 16 }
 0x348   :  { %p4110_p13 = scmp.ne.s32.totalorder %s6317_s5, %s4109_s7  ;;  %p4113_p0 = scmp.lt.u32.totalorder %s4109_s7, %s6317_s5 }
 0x34a   :  { %p4115_p1 = pnand %p4113_p0, %p4110_p13 }
 0x34c   :  { %4118 = shalt.err (!%p4115_p1)
}
 0x34d   :  { %3254 = dma.vmem_to_hbm [thread:$0]  %s3252_s28, 16, %s6317_s5, [#allocation7]  }
 0x34e   :  { %4121 = dma.done.wait [#allocation7], 16  }
 0x34f   :  { %4122 = vsyncadd [#allocation7], 4294967280 }
 0x350   :  { %3258 = vsyncpa [#allocation6], 1 }
 0x351   :  { %3259 = vsyncpa [#allocation7], 1 }

</bundles_post_ra>
